<compile_context>
chip_gen: v5e
topology: v5e:2x2
jax: 0.10.0
libtpu: 0.0.40
codegen_flags: <defaults>
</compile_context>

<pallas_src>
import jax
import jax.numpy as jnp
from jax.experimental import pallas as pl
from jax.experimental.pallas import tpu as pltpu


def _u_node_kernel(x_ref, w1_ref, b1_ref, w2_ref, b2_ref, o_ref):
    """Fused relu(conv2(relu(conv1(x)))) for one batch element.

    x_ref : (1, H, W, Cin)   input image (bf16 by default, f32 for exact check)
    w1_ref: (9*Cin, Cout)    conv1 weights, rows ordered (ky, kx, cin)
    b1_ref: (1, Cout)        conv1 bias (f32)
    w2_ref: (9*Cout, Cout)   conv2 weights, rows ordered (ky, kx, c)
    b2_ref: (1, Cout)        conv2 bias (f32)
    o_ref : (1, H*W, Cout)   output (f32); wrapper reshapes to NHWC for free
    """
    H, W = x_ref.shape[1], x_ref.shape[2]
    Cout = b1_ref.shape[1]
    mxu_dtype = w1_ref.dtype  # bf16 by default (f32 path used for exactness check)

    def pad1(img):
        # (H, W, C) -> (H+2, W+2, C) with a zero border (in-kernel padding).
        C = img.shape[-1]
        zr = jnp.zeros((1, W, C), img.dtype)
        img = jnp.concatenate([zr, img, zr], axis=0)
        zc = jnp.zeros((H + 2, 1, C), img.dtype)
        return jnp.concatenate([zc, img, zc], axis=1)

    def im2col(img_pad):
        # (H+2, W+2, C) -> (H*W, 9*C): all 9 taps concatenated on the lane
        # axis so the conv becomes a single deep matmul (K = 9*C).
        C = img_pad.shape[-1]
        taps = [img_pad[dy:dy + H, dx:dx + W, :]
                for dy in range(3) for dx in range(3)]
        return jnp.concatenate(taps, axis=-1).reshape(H * W, 9 * C)

    def conv3x3_relu(img, w_ref, b_ref):
        cols = im2col(pad1(img.astype(mxu_dtype)))
        acc = jnp.dot(cols, w_ref[...], preferred_element_type=jnp.float32)
        return jnp.maximum(acc + b_ref[...], 0.0)        # (H*W, Cout), f32

    h = conv3x3_relu(x_ref[0], w1_ref, b1_ref)                   # conv1 + relu
    y = conv3x3_relu(h.reshape(H, W, Cout), w2_ref, b2_ref)      # conv2 + relu
    o_ref[0] = y.astype(o_ref.dtype)


def u_node_forward_nhwc(x_nhwc, params, *, mxu_dtype=jnp.bfloat16):
    """Core NHWC entry point (use this inside a full NHWC U-Net)."""
    N, H, W, Cin = x_nhwc.shape
    Cout = params["w1"].shape[0]

    def tap_major(w):
        # (Cout, C, 3, 3) -> (9*C, Cout), rows ordered (ky, kx, c) to match
        # the im2col concatenation order inside the kernel.
        C = w.shape[1]
        return jnp.transpose(w, (2, 3, 1, 0)).reshape(9 * C, Cout).astype(mxu_dtype)

    w1 = tap_major(params["w1"])
    w2 = tap_major(params["w2"])
    b1 = params["b1"].reshape(1, Cout).astype(jnp.float32)
    b2 = params["b2"].reshape(1, Cout).astype(jnp.float32)

    # Cast activations to the MXU dtype on the host side of the boundary:
    # halves the input DMA bytes and the im2col VMEM on the bf16 path.
    x_in = x_nhwc.astype(mxu_dtype)
    itemsize = jnp.dtype(mxu_dtype).itemsize

    # Explicit scoped-VMEM budget (v5e default is only 16 MiB): double-buffered
    # x/out blocks + weights + im2col patches + f32 intermediates, with headroom.
    est = (2 * H * W * Cin * itemsize                 # x block, double-buffered
           + 2 * H * W * Cout * 4                     # out block, double-buffered
           + 2 * (9 * Cin * Cout + 9 * Cout * Cout + 2 * Cout) * itemsize
           + H * W * (9 * Cin + 9 * Cout) * itemsize  # im2col patch matrices
           + 3 * H * W * Cout * 4)                    # f32 acc / relu / h temps
    vmem_limit = int(min(2 * est + (8 << 20), 64 << 20))

    flops = 2 * N * H * W * 9 * Cout * (Cin + Cout)
    bytes_accessed = int(N * H * W * (Cin * itemsize + Cout * 4)
                         + 9 * (Cin + Cout) * Cout * itemsize + 2 * Cout * 4)

    out = pl.pallas_call(
        _u_node_kernel,
        out_shape=jax.ShapeDtypeStruct((N, H * W, Cout), jnp.float32),
        grid_spec=pltpu.PrefetchScalarGridSpec(
            num_scalar_prefetch=0,
            grid=(N,),
            in_specs=[
                pl.BlockSpec((1, H, W, Cin), lambda n: (n, 0, 0, 0)),
                pl.BlockSpec((9 * Cin, Cout), lambda n: (0, 0)),
                pl.BlockSpec((1, Cout), lambda n: (0, 0)),
                pl.BlockSpec((9 * Cout, Cout), lambda n: (0, 0)),
                pl.BlockSpec((1, Cout), lambda n: (0, 0)),
            ],
            out_specs=pl.BlockSpec((1, H * W, Cout), lambda n: (n, 0, 0)),
        ),
        compiler_params=pltpu.CompilerParams(
            dimension_semantics=("parallel",),
            vmem_limit_bytes=vmem_limit),
        cost_estimate=pl.CostEstimate(
            flops=flops, transcendentals=0, bytes_accessed=bytes_accessed),
    )(x_in, w1, b1, w2, b2)
    return out.reshape(N, H, W, Cout)


def u_node_forward(x_nchw, params, *, mxu_dtype=jnp.bfloat16):
    """PyTorch-compatible wrapper: NCHW in, NCHW out (f32).

    (In a full U-Net keep data NHWC end-to-end and call u_node_forward_nhwc
    directly to avoid the per-node boundary transposes.)
    """
    x = jnp.transpose(x_nchw, (0, 2, 3, 1))
    y = u_node_forward_nhwc(x, params, mxu_dtype=mxu_dtype)
    return jnp.transpose(y, (0, 3, 1, 2))


def init_params(key, in_ch, out_ch):
    """Mirror the module init: xavier_normal_ conv weights, torch-default bias."""
    k1, k2, k3, k4 = jax.random.split(key, 4)

    def xavier_normal(k, cout, cin, kh, kw):
        fan_in = cin * kh * kw
        fan_out = cout * kh * kw
        std = (2.0 / (fan_in + fan_out)) ** 0.5
        return std * jax.random.normal(k, (cout, cin, kh, kw), jnp.float32)

    def bias_init(k, cout, cin, kh, kw):
        bound = 1.0 / (cin * kh * kw) ** 0.5
        return jax.random.uniform(k, (cout,), jnp.float32, -bound, bound)

    return {
        "w1": xavier_normal(k1, out_ch, in_ch, 3, 3),
        "b1": bias_init(k2, out_ch, in_ch, 3, 3),
        "w2": xavier_normal(k3, out_ch, out_ch, 3, 3),
        "b2": bias_init(k4, out_ch, out_ch, 3, 3),
    }


if __name__ == "__main__":
    def ref_forward(xn, p):
        def ref_conv(x, w, b):
            y = jax.lax.conv_general_dilated(
                x, w, window_strides=(1, 1), padding="SAME",
                dimension_numbers=("NCHW", "OIHW", "NCHW"))
            return jnp.maximum(y + b[None, :, None, None], 0.0)
        return ref_conv(ref_conv(xn, p["w1"], p["b1"]), p["w2"], p["b2"])

    key = jax.random.PRNGKey(0)

    # --- Config 1: small shapes matching the module's intent ----------------
    N, in_ch, out_ch, H, W = 2, 4, 8, 16, 16
    kx, kp = jax.random.split(key)
    x = jax.random.normal(kx, (N, in_ch, H, W), jnp.float32)
    params = init_params(kp, in_ch, out_ch)
    ref = ref_forward(x, params)

    # f32-MXU path: exact check.
    out_f32 = jax.block_until_ready(
        u_node_forward(x, params, mxu_dtype=jnp.float32))
    assert out_f32.shape == (N, out_ch, H, W), out_f32.shape
    assert jnp.allclose(out_f32, ref, atol=1e-4, rtol=1e-4), float(
        jnp.max(jnp.abs(out_f32 - ref)))

    # Default bf16-MXU path (f32 accumulation): loosened tolerance.
    out_bf16 = jax.block_until_ready(u_node_forward(x, params))
    assert out_bf16.shape == (N, out_ch, H, W), out_bf16.shape
    assert jnp.allclose(out_bf16, ref, atol=5e-2, rtol=5e-2), float(
        jnp.max(jnp.abs(out_bf16 - ref)))

    # --- Config 2: realistic U-Net width (lane-dense Cout=128 channels) -----
    N2, in2, out2 = 1, 8, 128
    kx2, kp2 = jax.random.split(kp)
    x2 = jax.random.normal(kx2, (N2, in2, H, W), jnp.float32)
    p2 = init_params(kp2, in2, out2)
    o2 = jax.block_until_ready(u_node_forward(x2, p2))
    r2 = ref_forward(x2, p2)
    assert o2.shape == (N2, out2, H, W), o2.shape
    assert jnp.allclose(o2, r2, atol=5e-2, rtol=5e-2), float(
        jnp.max(jnp.abs(o2 - r2)))

    print("KERNEL_OK")
</pallas_src>

<mosaic_0001>
module attributes {stable_mosaic.version = 11 : i64} {
  func.func @_u_node_kernel(%arg0: i32, %arg1: memref<1x16x16x4xf32, #tpu.memory_space<vmem>>, %arg2: memref<36x8xf32, #tpu.memory_space<vmem>>, %arg3: memref<1x8xf32, #tpu.memory_space<vmem>>, %arg4: memref<72x8xf32, #tpu.memory_space<vmem>>, %arg5: memref<1x8xf32, #tpu.memory_space<vmem>>, %arg6: memref<1x256x8xf32, #tpu.memory_space<vmem>>) attributes {dimension_semantics = [#tpu.dimension_semantics<parallel>], iteration_bounds = array<i64: 2>, scalar_prefetch = 0 : i64, scratch_operands = 0 : i64, tpu.core_type = #tpu.core_type<tc>, window_params = [{transform_indices = @transform_0, window_bounds = array<i64: 1, 16, 16, 4>}, {pipeline_mode = #tpu.pipeline_mode<synchronous>, transform_indices = @transform_1, window_bounds = array<i64: 36, 8>}, {pipeline_mode = #tpu.pipeline_mode<synchronous>, transform_indices = @transform_2, window_bounds = array<i64: 1, 8>}, {pipeline_mode = #tpu.pipeline_mode<synchronous>, transform_indices = @transform_3, window_bounds = array<i64: 72, 8>}, {pipeline_mode = #tpu.pipeline_mode<synchronous>, transform_indices = @transform_4, window_bounds = array<i64: 1, 8>}, {transform_indices = @transform_5, window_bounds = array<i64: 1, 256, 8>}]} {
    %c0 = arith.constant 0 : index
    %c0_0 = arith.constant 0 : index
    %c0_1 = arith.constant 0 : index
    %c0_2 = arith.constant 0 : index
    %0 = vector.load %arg1[%c0, %c0_0, %c0_1, %c0_2] : memref<1x16x16x4xf32, #tpu.memory_space<vmem>>, vector<1x16x16x4xf32>
    %1 = vector.shape_cast %0 : vector<1x16x16x4xf32> to vector<16x16x4xf32>
    %cst = arith.constant 0.000000e+00 : f32
    %2 = vector.broadcast %cst : f32 to vector<1x16x4xf32>
    %3 = tpu.concatenate %2, %1, %2 in 0 : vector<1x16x4xf32>, vector<16x16x4xf32>, vector<1x16x4xf32> -> vector<18x16x4xf32>
    %cst_3 = arith.constant 0.000000e+00 : f32
    %4 = vector.broadcast %cst_3 : f32 to vector<18x1x4xf32>
    %5 = tpu.concatenate %4, %3, %4 in 1 : vector<18x1x4xf32>, vector<18x16x4xf32>, vector<18x1x4xf32> -> vector<18x18x4xf32>
    %6 = vector.extract_strided_slice %5 {offsets = [0, 0, 0], sizes = [16, 16, 4], strides = [1, 1, 1]} : vector<18x18x4xf32> to vector<16x16x4xf32>
    %7 = vector.extract_strided_slice %5 {offsets = [0, 1, 0], sizes = [16, 16, 4], strides = [1, 1, 1]} : vector<18x18x4xf32> to vector<16x16x4xf32>
    %8 = vector.extract_strided_slice %5 {offsets = [0, 2, 0], sizes = [16, 16, 4], strides = [1, 1, 1]} : vector<18x18x4xf32> to vector<16x16x4xf32>
    %9 = vector.extract_strided_slice %5 {offsets = [1, 0, 0], sizes = [16, 16, 4], strides = [1, 1, 1]} : vector<18x18x4xf32> to vector<16x16x4xf32>
    %10 = vector.extract_strided_slice %5 {offsets = [1, 1, 0], sizes = [16, 16, 4], strides = [1, 1, 1]} : vector<18x18x4xf32> to vector<16x16x4xf32>
    %11 = vector.extract_strided_slice %5 {offsets = [1, 2, 0], sizes = [16, 16, 4], strides = [1, 1, 1]} : vector<18x18x4xf32> to vector<16x16x4xf32>
    %12 = vector.extract_strided_slice %5 {offsets = [2, 0, 0], sizes = [16, 16, 4], strides = [1, 1, 1]} : vector<18x18x4xf32> to vector<16x16x4xf32>
    %13 = vector.extract_strided_slice %5 {offsets = [2, 1, 0], sizes = [16, 16, 4], strides = [1, 1, 1]} : vector<18x18x4xf32> to vector<16x16x4xf32>
    %14 = vector.extract_strided_slice %5 {offsets = [2, 2, 0], sizes = [16, 16, 4], strides = [1, 1, 1]} : vector<18x18x4xf32> to vector<16x16x4xf32>
    %15 = tpu.concatenate %6, %7, %8, %9, %10, %11, %12, %13, %14 in 2 : vector<16x16x4xf32>, vector<16x16x4xf32>, vector<16x16x4xf32>, vector<16x16x4xf32>, vector<16x16x4xf32>, vector<16x16x4xf32>, vector<16x16x4xf32>, vector<16x16x4xf32>, vector<16x16x4xf32> -> vector<16x16x36xf32>
    %16 = vector.shape_cast %15 : vector<16x16x36xf32> to vector<256x36xf32>
    %c0_4 = arith.constant 0 : index
    %c0_5 = arith.constant 0 : index
    %17 = vector.load %arg2[%c0_4, %c0_5] : memref<36x8xf32, #tpu.memory_space<vmem>>, vector<36x8xf32>
    %cst_6 = arith.constant dense<0.000000e+00> : vector<256x8xf32>
    %18 = tpu.matmul %16, %17, %cst_6 {dimension_numbers = #tpu.dot_dimension_numbers<[1], [0], [0], [1], [0, 0, 1, 1], [], []>} : vector<256x36xf32>, vector<36x8xf32>, vector<256x8xf32> -> vector<256x8xf32>
    %c0_7 = arith.constant 0 : index
    %c0_8 = arith.constant 0 : index
    %19 = vector.load %arg3[%c0_7, %c0_8] : memref<1x8xf32, #tpu.memory_space<vmem>>, vector<1x8xf32>
    %20 = vector.broadcast %19 : vector<1x8xf32> to vector<256x8xf32>
    %21 = arith.addf %18, %20 : vector<256x8xf32>
    %cst_9 = arith.constant 0.000000e+00 : f32
    %22 = vector.broadcast %cst_9 : f32 to vector<256x8xf32>
    %23 = arith.maximumf %21, %22 : vector<256x8xf32>
    %24 = vector.shape_cast %23 : vector<256x8xf32> to vector<16x16x8xf32>
    %cst_10 = arith.constant 0.000000e+00 : f32
    %25 = vector.broadcast %cst_10 : f32 to vector<1x16x8xf32>
    %26 = tpu.concatenate %25, %24, %25 in 0 : vector<1x16x8xf32>, vector<16x16x8xf32>, vector<1x16x8xf32> -> vector<18x16x8xf32>
    %cst_11 = arith.constant 0.000000e+00 : f32
    %27 = vector.broadcast %cst_11 : f32 to vector<18x1x8xf32>
    %28 = tpu.concatenate %27, %26, %27 in 1 : vector<18x1x8xf32>, vector<18x16x8xf32>, vector<18x1x8xf32> -> vector<18x18x8xf32>
    %29 = vector.extract_strided_slice %28 {offsets = [0, 0, 0], sizes = [16, 16, 8], strides = [1, 1, 1]} : vector<18x18x8xf32> to vector<16x16x8xf32>
    %30 = vector.extract_strided_slice %28 {offsets = [0, 1, 0], sizes = [16, 16, 8], strides = [1, 1, 1]} : vector<18x18x8xf32> to vector<16x16x8xf32>
    %31 = vector.extract_strided_slice %28 {offsets = [0, 2, 0], sizes = [16, 16, 8], strides = [1, 1, 1]} : vector<18x18x8xf32> to vector<16x16x8xf32>
    %32 = vector.extract_strided_slice %28 {offsets = [1, 0, 0], sizes = [16, 16, 8], strides = [1, 1, 1]} : vector<18x18x8xf32> to vector<16x16x8xf32>
    %33 = vector.extract_strided_slice %28 {offsets = [1, 1, 0], sizes = [16, 16, 8], strides = [1, 1, 1]} : vector<18x18x8xf32> to vector<16x16x8xf32>
    %34 = vector.extract_strided_slice %28 {offsets = [1, 2, 0], sizes = [16, 16, 8], strides = [1, 1, 1]} : vector<18x18x8xf32> to vector<16x16x8xf32>
    %35 = vector.extract_strided_slice %28 {offsets = [2, 0, 0], sizes = [16, 16, 8], strides = [1, 1, 1]} : vector<18x18x8xf32> to vector<16x16x8xf32>
    %36 = vector.extract_strided_slice %28 {offsets = [2, 1, 0], sizes = [16, 16, 8], strides = [1, 1, 1]} : vector<18x18x8xf32> to vector<16x16x8xf32>
    %37 = vector.extract_strided_slice %28 {offsets = [2, 2, 0], sizes = [16, 16, 8], strides = [1, 1, 1]} : vector<18x18x8xf32> to vector<16x16x8xf32>
    %38 = tpu.concatenate %29, %30, %31, %32, %33, %34, %35, %36, %37 in 2 : vector<16x16x8xf32>, vector<16x16x8xf32>, vector<16x16x8xf32>, vector<16x16x8xf32>, vector<16x16x8xf32>, vector<16x16x8xf32>, vector<16x16x8xf32>, vector<16x16x8xf32>, vector<16x16x8xf32> -> vector<16x16x72xf32>
    %39 = vector.shape_cast %38 : vector<16x16x72xf32> to vector<256x72xf32>
    %c0_12 = arith.constant 0 : index
    %c0_13 = arith.constant 0 : index
    %40 = vector.load %arg4[%c0_12, %c0_13] : memref<72x8xf32, #tpu.memory_space<vmem>>, vector<72x8xf32>
    %cst_14 = arith.constant dense<0.000000e+00> : vector<256x8xf32>
    %41 = tpu.matmul %39, %40, %cst_14 {dimension_numbers = #tpu.dot_dimension_numbers<[1], [0], [0], [1], [0, 0, 1, 1], [], []>} : vector<256x72xf32>, vector<72x8xf32>, vector<256x8xf32> -> vector<256x8xf32>
    %c0_15 = arith.constant 0 : index
    %c0_16 = arith.constant 0 : index
    %42 = vector.load %arg5[%c0_15, %c0_16] : memref<1x8xf32, #tpu.memory_space<vmem>>, vector<1x8xf32>
    %43 = vector.broadcast %42 : vector<1x8xf32> to vector<256x8xf32>
    %44 = arith.addf %41, %43 : vector<256x8xf32>
    %cst_17 = arith.constant 0.000000e+00 : f32
    %45 = vector.broadcast %cst_17 : f32 to vector<256x8xf32>
    %46 = arith.maximumf %44, %45 : vector<256x8xf32>
    %c0_18 = arith.constant 0 : index
    %c0_19 = arith.constant 0 : index
    %c0_20 = arith.constant 0 : index
    %47 = vector.load %arg6[%c0_18, %c0_19, %c0_20] : memref<1x256x8xf32, #tpu.memory_space<vmem>>, vector<1x256x8xf32>
    %48 = vector.shape_cast %47 : vector<1x256x8xf32> to vector<256x8xf32>
    %49 = vector.shape_cast %46 : vector<256x8xf32> to vector<1x256x8xf32>
    tpu.vector_store %arg6[%c0_18, %c0_19, %c0_20], %49 {strides = array<i32>} : memref<1x256x8xf32, #tpu.memory_space<vmem>>, vector<1x256x8xf32>,
    return
  }
  func.func @transform_0(%arg0: i32) -> (i32, i32, i32, i32) {
    %c0_i32 = arith.constant 0 : i32
    %c0_i32_0 = arith.constant 0 : i32
    %c0_i32_1 = arith.constant 0 : i32
    %c0_i32_2 = arith.constant 0 : i32
    return %arg0, %c0_i32, %c0_i32_0, %c0_i32_1 : i32, i32, i32, i32
  }
  func.func @transform_1(%arg0: i32) -> (i32, i32) {
    %c0_i32 = arith.constant 0 : i32
    %c0_i32_0 = arith.constant 0 : i32
    %c0_i32_1 = arith.constant 0 : i32
    return %c0_i32, %c0_i32_0 : i32, i32
  }
  func.func @transform_2(%arg0: i32) -> (i32, i32) {
    %c0_i32 = arith.constant 0 : i32
    %c0_i32_0 = arith.constant 0 : i32
    %c0_i32_1 = arith.constant 0 : i32
    return %c0_i32, %c0_i32_0 : i32, i32
  }
  func.func @transform_3(%arg0: i32) -> (i32, i32) {
    %c0_i32 = arith.constant 0 : i32
    %c0_i32_0 = arith.constant 0 : i32
    %c0_i32_1 = arith.constant 0 : i32
    return %c0_i32, %c0_i32_0 : i32, i32
  }
  func.func @transform_4(%arg0: i32) -> (i32, i32) {
    %c0_i32 = arith.constant 0 : i32
    %c0_i32_0 = arith.constant 0 : i32
    %c0_i32_1 = arith.constant 0 : i32
    return %c0_i32, %c0_i32_0 : i32, i32
  }
  func.func @transform_5(%arg0: i32) -> (i32, i32, i32) {
    %c0_i32 = arith.constant 0 : i32
    %c0_i32_0 = arith.constant 0 : i32
    %c0_i32_1 = arith.constant 0 : i32
    return %arg0, %c0_i32, %c0_i32_0 : i32, i32, i32
  }
}

</mosaic_0001>

<bundles_post_ra>
// kernel: tpu_custom_call.1
= control target key start
LH: loop header
LB: loop body
LE: loop exit
PB: predicated region body
PF: predicated region fallthrough
CT: control target
= control target key end

     0   :  { %s3844_s18 = smov 0   ;;  %s7827_s0 = inlined_call_operand.vmem [shape: f32[2,16,16,4], index: 0, kind: input, shape index: {}]   ;;  %s7828_s1 = inlined_call_operand.vmem [shape: f32[36,8], index: 1, kind: input, shape index: {}]   ;;  %s7829_s2 = inlined_call_operand.vmem [shape: f32[1,8], index: 2, kind: input, shape index: {}]   ;;  %s7830_s3 = inlined_call_operand.vmem [shape: f32[72,8], index: 3, kind: input, shape index: {}]   ;;  %s7831_s4 = inlined_call_operand.vmem [shape: f32[1,8], index: 4, kind: input, shape index: {}]   ;;  %s7832_s5 = inlined_call_operand.vmem [shape: f32[2,256,8], index: 5, kind: output, shape index: {}]  }
   0x1 LB: > { %s3638_s19 = sadd.s32 4294967295, %s3799_s18   ;;  %p3642_p0 = scmp.ge.s32.totalorder %s3799_s18, 1  ;;  %s3799_s18 = sphi %s3844_s18, %s15_s18  }
   0x2   : > { %p187_p1 = scmp.lt.s32.totalorder %s3799_s18, 3 }
   0x4   : > { %p188_p2 = pnand %p3642_p0, %p187_p1 }
   0x6   : > { %191 = sbr.rel (%p188_p2) target bundleno = 1862 (0x746), region = 40 }
   0xb   : > { %vm290_vm0 = vcmask 1040384   ;;  %p215_p3 = scmp.lt.s32.totalorder %s3638_s19, 1  ;;  %v3801_v0 = vmov 0.0   ;;  %vm456_vm1 = vcmask 1046528   ;;  %s3802_s24 = smov 4   ;;  %vm633_vm2 = vcmask 1045504  }
   0xc   : > { %v3852_v1 = vrot.slane %v3801_v0, 7  ;;  %s3803_s25 = smov 8   ;;  %s3804_s26 = smov 12   ;;  %vm1768_vm3 = vcmask 1043456   ;;  %vm1398_vm4 = vcmask 31744   ;;  %vm1464_vm5 = vcmask 97280  }
   0xd   : > { %s8969_s19 = smov (!%p215_p3, %s3638_s19), 1  ;;  %s3805_s27 = smov 16   ;;  %vm1431_vm6 = vcmask 64512   ;;  %vm1497_vm7 = vcmask 130048   ;;  %vm1563_vm8 = vcmask 195584   ;;  %vm1530_vm9 = vcmask 162816  }
   0xe   : > { %8075 = vst [vmem:[#allocation2_spill] sm:$0xff] %v3852_v1  ;;  %v3858_v2 = vsel %vm290_vm0, 0.0, %v3852_v1  ;;  %v3862_v3 = vsel %vm290_vm0, %v3852_v1, 0.0  ;;  %v458_v4 = vrot.slane %v3852_v1, 1  ;;  %s3714_s20 = sshll.u32 %s8969_s19, 8  ;;  %s3806_s28 = smov 20  }
   0xf   : > { %8076 = vst [vmem:[#allocation3_spill] sm:$0xff] %v3858_v2  ;;  %v457_v5 = vrot.slane %v3858_v2, 1  ;;  %v460_v6 = vrot.slane %v3862_v3, 1  ;;  %s3873_s23 = scalar_lea.vmem %s7827_s0, %s3714_s20  ;;  %s3807_s29 = smov 24   ;;  %vm1596_vm10 = vcmask 228352   ;;  %vm1671_vm11 = vcmask 293888  }
  0x10   : > { %v227_v9 = vld [vmem:[%s3873_s23 + $0x10] sm:$0xff]  ;;  %v228_v10 = vld [vmem:[%s3873_s23 + $0x18] sm:$0xff]  ;;  %v225_v11 = vld [vmem:[%s3873_s23] sm:$0xff]  ;;  %s3808_s30 = smov 28   ;;  %s3809_s6 = smov 32   ;;  %vm1629_vm12 = vcmask 261120  }
  0x11   : > { %v3876_v7 = vsel %vm456_vm1, %v457_v5, %v458_v4  ;;  %v3879_v8 = vsel %vm456_vm1, %v458_v4, %v460_v6  ;;  %v296_v13 = vrot.slane %v227_v9, 7  ;;  %v297_v14 = vrot.slane %v228_v10, 7  ;;  %v226_v15 = vld [vmem:[%s3873_s23 + $0x8] sm:$0xff]  ;;  %v229_v17 = vld [vmem:[%s3873_s23 + $0x20] sm:$0xff]  ;;  %v231_v36 = vld [vmem:[%s3873_s23 + $0x30] sm:$0xff]  ;;  %s3810_s22 = smov 40  }
  0x12   : > { %8077 = vst [vmem:[#allocation4_spill] sm:$0xff] %v3876_v7  ;;  %v3886_v12 = vpack.i.bf16 %v3879_v8, %v3876_v7  ;;  %v293_v16 = vrot.slane %v225_v11, 7  ;;  %v230_v18 = vld [vmem:[%s3873_s23 + $0x28] sm:$0xff]  ;;  %v294_v19 = vrot.slane %v226_v15, 7  ;;  %v299_v20 = vrot.slane %v229_v17, 7  ;;  %v232_v37 = vld [vmem:[%s3873_s23 + $0x38] sm:$0xff] }
  0x13   : > { %8078 = vst [vmem:[#allocation5_spill] sm:$0xff] %v3879_v8  ;;  %v300_v21 = vrot.slane %v230_v18, 7  ;;  %v3894_v22 = vsel %vm290_vm0, %v296_v13, %v297_v14  ;;  %v3897_v23 = vsel %vm290_vm0, %v297_v14, 0.0  ;;  %v3903_v25 = vsel %vm290_vm0, 0.0, %v296_v13  ;;  %v233_v46 = vld [vmem:[%s3873_s23 + $0x40] sm:$0xff]  ;;  %v234_v47 = vld [vmem:[%s3873_s23 + $0x48] sm:$0xff] }
  0x14   : > { %8079 = vst [vmem:[#allocation6_spill] sm:$0xff] %v3886_v12  ;;  %3752 = vrot.lane.b32.xlu0 %v3886_v12, %s3802_s24  ;;  %v3900_v24 = vsel %vm290_vm0, 0.0, %v293_v16  ;;  %v468_v26 = vrot.slane %v3894_v22, 1  ;;  %v470_v27 = vrot.slane %v3897_v23, 1  ;;  %v3908_v28 = vsel %vm290_vm0, %v293_v16, %v294_v19  ;;  %v235_v55 = vld [vmem:[%s3873_s23 + $0x50] sm:$0xff]  ;;  %v236_v57 = vld [vmem:[%s3873_s23 + $0x58] sm:$0xff] }
  0x15   : > { %8080 = vst [vmem:[#allocation7_spill] sm:$0xff] %v3900_v24  ;;  %v3911_v29 = vsel %vm290_vm0, %v294_v19, 0.0  ;;  %v463_v30 = vrot.slane %v3908_v28, 1  ;;  %v462_v32 = vrot.slane %v3900_v24, 1  ;;  %v3917_v33 = vsel %vm290_vm0, %v299_v20, %v300_v21  ;;  %v237_v14 = vld [vmem:[%s3873_s23 + $0x60] sm:$0xff]  ;;  %v238_v16 = vld [vmem:[%s3873_s23 + $0x68] sm:$0xff] }
  0x16   : > { %8081 = vst [vmem:[#allocation8_spill] sm:$0xff] %v3908_v28  ;;  %v465_v31 = vrot.slane %v3911_v29, 1  ;;  %v3920_v34 = vsel %vm456_vm1, %v468_v26, %v470_v27  ;;  %v3923_v35 = vsel %vm290_vm0, 0.0, %v299_v20  ;;  %v473_v41 = vrot.slane %v3917_v33, 1  ;;  %v248_v7 = vld [vmem:[%s3873_s23 + $0xb8] sm:$0xff] }
  0x17   : > { %8082 = vst [vmem:[#allocation9_spill] sm:$0xff] %v3920_v34  ;;  %547 = vrot.lane.b32.xlu2 %v3920_v34, %s3802_s24  ;;  %v3935_v39 = vsel %vm456_vm1, %v462_v32, %v463_v30  ;;  %v472_v40 = vrot.slane %v3923_v35, 1  ;;  %v467_v42 = vrot.slane %v3903_v25, 1  ;;  %v3941_v43 = vsel %vm290_vm0, %v300_v21, 0.0 }
  0x18   : > { %v3930_v38 = vsel %vm456_vm1, %v463_v30, %v465_v31  ;;  %v302_v44 = vrot.slane %v231_v36, 7  ;;  %v303_v45 = vrot.slane %v232_v37, 7  ;;  %v475_v50 = vrot.slane %v3941_v43, 1  ;;  %v239_v30 = vld [vmem:[%s3873_s23 + $0x70] sm:$0xff]  ;;  %v240_v31 = vld [vmem:[%s3873_s23 + $0x78] sm:$0xff] }
  0x19   : > { %543 = vrot.lane.b32.xlu1 %v3930_v38, %s3802_s24  ;;  %v3948_v48 = vsel %vm456_vm1, %v472_v40, %v473_v41  ;;  %v3951_v49 = vsel %vm456_vm1, %v467_v42, %v468_v26  ;;  %v305_v53 = vrot.slane %v233_v46, 7  ;;  %v306_v54 = vrot.slane %v234_v47, 7  ;;  %v241_v46 = vld [vmem:[%s3873_s23 + $0x80] sm:$0xff]  ;;  %v242_v47 = vld [vmem:[%s3873_s23 + $0x88] sm:$0xff] }
  0x1a   : > { %v3955_v51 = vsel %vm290_vm0, %v302_v44, %v303_v45  ;;  %v3958_v52 = vsel %vm290_vm0, %v303_v45, 0.0  ;;  %v3962_v56 = vsel %vm290_vm0, 0.0, %v302_v44  ;;  %v3970_v58 = vsel %vm456_vm1, %v473_v41, %v475_v50 }
  0x1b   : > { %8083 = vst [vmem:[#allocation10_spill] sm:$0xff] %v3955_v51  ;;  %v478_v59 = vrot.slane %v3955_v51, 1  ;;  %v480_v60 = vrot.slane %v3958_v52, 1  ;;  %v308_v61 = vrot.slane %v235_v55, 7  ;;  %v477_v62 = vrot.slane %v3962_v56, 1 }
  0x1c   : > { %541 = vrot.lane.b32.xlu0 %v3935_v39, %s3802_s24  ;;  %8084 = vst [vmem:[#allocation11_spill] sm:$0xff] %v3970_v58  ;;  %v3976_v63 = vsel %vm290_vm0, %v305_v53, %v306_v54  ;;  %v3979_v0 = vsel %vm290_vm0, 0.0, %v305_v53  ;;  %v309_v4 = vrot.slane %v236_v57, 7  ;;  %v3999_v15 = vsel %vm290_vm0, %v306_v54, 0.0 }
  0x1d   : > { %8085 = vst [vmem:[#allocation12_spill] sm:$0xff] %v3976_v63  ;;  %v3984_v5 = vsel %vm456_vm1, %v478_v59, %v480_v60  ;;  %v482_v6 = vrot.slane %v3979_v0, 1  ;;  %v483_v9 = vrot.slane %v3976_v63, 1  ;;  %v3989_v10 = vsel %vm456_vm1, %v477_v62, %v478_v59 }
  0x1e   : > { %8086 = vst [vmem:[#allocation13_spill] sm:$0xff] %v3979_v0  ;;  %v3992_v11 = vsel %vm290_vm0, %v308_v61, %v309_v4  ;;  %v3995_v13 = vsel %vm290_vm0, 0.0, %v308_v61  ;;  %v311_v20 = vrot.slane %v237_v14, 7  ;;  %v485_v21 = vrot.slane %v3999_v15, 1 }
  0x1f   : > { %549 = vrot.lane.b32.xlu2 %v3948_v48, %s3802_s24  ;;  %8087 = vst [vmem:[#allocation14_spill] sm:$0xff] %v3984_v5  ;;  %v4007_v17 = vsel %vm456_vm1, %v482_v6, %v483_v9  ;;  %v487_v18 = vrot.slane %v3995_v13, 1  ;;  %v488_v19 = vrot.slane %v3992_v11, 1  ;;  %v4013_v26 = vsel %vm290_vm0, %v309_v4, 0.0 }
  0x20   : > { %8088 = vst [vmem:[#allocation15_spill] sm:$0xff] %v3989_v10  ;;  %v312_v27 = vrot.slane %v238_v16, 7  ;;  %v490_v36 = vrot.slane %v4013_v26, 1  ;;  %v4024_v37 = vsel %vm290_vm0, 0.0, %v311_v20  ;;  %v314_v40 = vrot.slane %v239_v30, 7 }
  0x21   : > { %545 = vrot.lane.b32.xlu1 %v3951_v49, %s3802_s24  ;;  %8089 = vst [vmem:[#allocation16_spill] sm:$0xff] %v3992_v11  ;;  %v4020_v32 = vsel %vm456_vm1, %v487_v18, %v488_v19  ;;  %v4027_v41 = vsel %vm456_vm1, %v483_v9, %v485_v21  ;;  %v315_v45 = vrot.slane %v240_v31, 7  ;;  %v492_v55 = vrot.slane %v4024_v37, 1  ;;  %v243_v9 = vld [vmem:[%s3873_s23 + $0x90] sm:$0xff] }
  0x22   : > { %8090 = vst [vmem:[#allocation17_spill] sm:$0xff] %v3995_v13  ;;  %v4030_v42 = vsel %vm290_vm0, %v311_v20, %v312_v27  ;;  %v4033_v44 = vsel %vm290_vm0, %v312_v27, 0.0  ;;  %v4042_v50 = vsel %vm456_vm1, %v488_v19, %v490_v36  ;;  %v4051_v59 = vsel %vm290_vm0, 0.0, %v314_v40  ;;  %v244_v19 = vld [vmem:[%s3873_s23 + $0x98] sm:$0xff] }
  0x23   : > { %8091 = vst [vmem:[#allocation18_spill] sm:$0xff] %v4007_v17  ;;  %v493_v53 = vrot.slane %v4030_v42, 1  ;;  %v495_v54 = vrot.slane %v4033_v44, 1  ;;  %v4048_v57 = vsel %vm290_vm0, %v314_v40, %v315_v45  ;;  %v317_v60 = vrot.slane %v241_v46, 7  ;;  %v245_v46 = vld [vmem:[%s3873_s23 + $0xa0] sm:$0xff] }
  0x24   : > { %551 = vrot.lane.b32.xlu0 %v3970_v58, %s3802_s24  ;;  %8092 = vst [vmem:[#allocation19_spill] sm:$0xff] %v4020_v32  ;;  %v318_v61 = vrot.slane %v242_v47, 7  ;;  %v497_v4 = vrot.slane %v4051_v59, 1  ;;  %v498_v6 = vrot.slane %v4048_v57, 1  ;;  %v4072_v20 = vsel %vm290_vm0, %v315_v45, 0.0  ;;  %v246_v47 = vld [vmem:[%s3873_s23 + $0xa8] sm:$0xff] }
  0x25   : > { %8093 = vst [vmem:[#allocation20_spill] sm:$0xff] %v4024_v37  ;;  %v4056_v62 = vsel %vm456_vm1, %v493_v53, %v495_v54  ;;  %v4062_v14 = vsel %vm456_vm1, %v492_v55, %v493_v53  ;;  %v4068_v18 = vsel %vm290_vm0, 0.0, %v317_v60  ;;  %v320_v21 = vrot.slane %v243_v9, 7 }
  0x26   : > { %8094 = vst [vmem:[#allocation21_spill] sm:$0xff] %v4027_v41  ;;  %v4065_v16 = vsel %vm290_vm0, %v317_v60, %v318_v61  ;;  %v4079_v27 = vsel %vm456_vm1, %v497_v4, %v498_v6  ;;  %v502_v30 = vrot.slane %v4068_v18, 1  ;;  %v321_v36 = vrot.slane %v244_v19, 7  ;;  %v247_v19 = vld [vmem:[%s3873_s23 + $0xb0] sm:$0xff] }
  0x27   : > { %555 = vrot.lane.b32.xlu2 %v3984_v5, %s3802_s24  ;;  %8095 = vst [vmem:[#allocation22_spill] sm:$0xff] %v4030_v42  ;;  %v503_v31 = vrot.slane %v4065_v16, 1  ;;  %v500_v40 = vrot.slane %v4072_v20, 1  ;;  %v4085_v45 = vsel %vm290_vm0, %v318_v61, 0.0  ;;  %v323_v61 = vrot.slane %v245_v46, 7 }
  0x28   : > { %8096 = vst [vmem:[#allocation23_spill] sm:$0xff] %v4042_v50  ;;  %v505_v54 = vrot.slane %v4085_v45, 1  ;;  %v4096_v55 = vsel %vm290_vm0, %v320_v21, %v321_v36  ;;  %v4099_v60 = vsel %vm290_vm0, %v321_v36, 0.0  ;;  %v324_v9 = vrot.slane %v246_v47, 7 }
  0x29   : > { %553 = vrot.lane.b32.xlu1 %v3989_v10, %s3802_s24  ;;  %8097 = vst [vmem:[#allocation24_spill] sm:$0xff] %v4051_v59  ;;  %v4092_v53 = vsel %vm456_vm1, %v502_v30, %v503_v31  ;;  %v4102_v4 = vsel %vm456_vm1, %v498_v6, %v500_v40  ;;  %v4106_v8 = vsel %vm290_vm0, 0.0, %v320_v21  ;;  %v508_v30 = vrot.slane %v4096_v55, 1  ;;  %v254_v10 = vld [vmem:[%s3873_s23 + $0xe8] sm:$0xff] }
  0x2a   : > { %8098 = vst [vmem:[#allocation25_spill] sm:$0xff] %v4056_v62  ;;  %v510_v12 = vrot.slane %v4099_v60, 1  ;;  %v4116_v6 = vsel %vm456_vm1, %v503_v31, %v505_v54  ;;  %v326_v36 = vrot.slane %v247_v19, 7  ;;  %v507_v21 = vrot.slane %v4106_v8, 1 }
  0x2b   : > { %8099 = vst [vmem:[#allocation26_spill] sm:$0xff] %v4062_v14  ;;  %v4120_v40 = vsel %vm290_vm0, %v323_v61, %v324_v9  ;;  %v4123_v46 = vsel %vm290_vm0, 0.0, %v323_v61  ;;  %v327_v47 = vrot.slane %v248_v7, 7  ;;  %v4136_v19 = vsel %vm290_vm0, %v324_v9, 0.0 }
  0x2c   : > { %557 = vrot.lane.b32.xlu0 %v4007_v17, %s3802_s24  ;;  %8100 = vst [vmem:[#allocation27_spill] sm:$0xff] %v4079_v27  ;;  %v513_v31 = vrot.slane %v4120_v40, 1  ;;  %v4133_v54 = vsel %vm290_vm0, 0.0, %v326_v36  ;;  %v4139_v7 = vsel %vm456_vm1, %v507_v21, %v508_v30  ;;  %v635_v34 = vrot.slane %v3852_v1, 2 }
  0x2d   : > { %8101 = vst [vmem:[#allocation28_spill] sm:$0xff] %v4092_v53  ;;  %v4142_v61 = vsel %vm290_vm0, %v326_v36, %v327_v47  ;;  %vm3164_vm13 = vcmask 326656   ;;  %vm3197_vm14 = vcmask 392192   ;;  %vm3230_vm15 = vcmask 457728  }
  0x2e   : > { %8102 = vst [vmem:[#allocation29_spill] sm:$0xff] %v4096_v55 }
  0x2f   : > { %561 = vrot.lane.b32.xlu2 %v4020_v32, %s3802_s24  ;;  %8103 = vst [vmem:[#allocation30_spill] sm:$0xff] %v4102_v4 }
  0x30   : > { %8104 = vst [vmem:[#allocation31_spill] sm:$0xff] %v4116_v6 }
  0x31   : > { %559 = vrot.lane.b32.xlu1 %v4027_v41, %s3802_s24  ;;  %8105 = vst [vmem:[#allocation32_spill] sm:$0xff] %v4120_v40 }
  0x32   : > { %8106 = vst [vmem:[#allocation33_spill] sm:$0xff] %v4123_v46 }
  0x33   : > { %8108 = vst [vmem:[#allocation35_spill] sm:$0xff] %v4133_v54 }
  0x34   : > { %563 = vrot.lane.b32.xlu0 %v4042_v50, %s3802_s24  ;;  %8109 = vst [vmem:[#allocation36_spill] sm:$0xff] %v4139_v7  ;;  %v252_v50 = vld [vmem:[%s3873_s23 + $0xd8] sm:$0xff] }
  0x35   : > { %8110 = vst [vmem:[#allocation37_spill] sm:$0xff] %v4142_v61  ;;  %v333_v17 = vrot.slane %v252_v50, 7 }
  0x37   : > { %567 = vrot.lane.b32.xlu2 %v4056_v62, %s3802_s24  ;;  %v4157_v62 = vsel %vm290_vm0, %v327_v47, 0.0 }
  0x39   : > { %565 = vrot.lane.b32.xlu1 %v4062_v14, %s3802_s24  ;;  %v515_v14 = vrot.slane %v4136_v19, 1 }
  0x3c   : > { %569 = vrot.lane.b32.xlu0 %v4079_v27, %s3802_s24  ;;  %v517_v27 = vrot.slane %v4133_v54, 1 }
  0x3f   : > { %573 = vrot.lane.b32.xlu2 %v4092_v53, %s3802_s24  ;;  %v4128_v53 = vsel %vm456_vm1, %v508_v30, %v510_v12  ;;  %v249_v12 = vld [vmem:[%s3873_s23 + $0xc0] sm:$0xff]  ;;  %v518_v30 = vrot.slane %v4142_v61, 1 }
  0x40   : > { %8107 = vst [vmem:[#allocation34_spill] sm:$0xff] %v4128_v53  ;;  %v329_v36 = vrot.slane %v249_v12, 7 }
  0x41   : > { %571 = vrot.lane.b32.xlu1 %v4102_v4, %s3802_s24  ;;  %v512_v4 = vrot.slane %v4123_v46, 1  ;;  %v4164_v41 = vsel %vm456_vm1, %v517_v27, %v518_v30 }
  0x42   : > { %8112 = vst [vmem:[#allocation39_spill] sm:$0xff] %v4164_v41  ;;  %v4177_v47 = vsel %vm290_vm0, 0.0, %v329_v36 }
  0x43   : > { %v4153_v9 = vsel %vm456_vm1, %v512_v4, %v513_v31  ;;  %v4167_v4 = vsel %vm456_vm1, %v513_v31, %v515_v14  ;;  %8115 = vst [vmem:[#allocation42_spill] sm:$0xff] %v4177_v47 }
  0x44   : > { %575 = vrot.lane.b32.xlu0 %v4116_v6, %s3802_s24  ;;  %v250_v6 = vld [vmem:[%s3873_s23 + $0xc8] sm:$0xff]  ;;  %8111 = vst [vmem:[#allocation38_spill] sm:$0xff] %v4153_v9 }
  0x45   : > { %v330_v21 = vrot.slane %v250_v6, 7  ;;  %8113 = vst [vmem:[#allocation40_spill] sm:$0xff] %v4167_v4 }
  0x47   : > { %579 = vrot.lane.b32.xlu2 %v4128_v53, %s3802_s24  ;;  %v251_v53 = vld [vmem:[%s3873_s23 + $0xd0] sm:$0xff]  ;;  %v4171_v32 = vsel %vm290_vm0, %v329_v36, %v330_v21  ;;  %v4174_v6 = vsel %vm290_vm0, %v330_v21, 0.0  ;;  %v522_v36 = vrot.slane %v4177_v47, 1 }
  0x48   : > { %8114 = vst [vmem:[#allocation41_spill] sm:$0xff] %v4171_v32  ;;  %v332_v12 = vrot.slane %v251_v53, 7  ;;  %v523_v27 = vrot.slane %v4171_v32, 1  ;;  %v525_v31 = vrot.slane %v4174_v6, 1 }
  0x49   : > { %577 = vrot.lane.b32.xlu1 %v4139_v7, %s3802_s24  ;;  %v520_v7 = vrot.slane %v4157_v62, 1 }
  0x4a   : > { %v4192_v53 = vsel %vm290_vm0, %v332_v12, %v333_v17  ;;  %v4195_v50 = vsel %vm290_vm0, 0.0, %v332_v12  ;;  %v4205_v5 = vsel %vm456_vm1, %v522_v36, %v523_v27 }
  0x4b   : > { %v4186_v14 = vsel %vm456_vm1, %v518_v30, %v520_v7  ;;  %8117 = vst [vmem:[#allocation44_spill] sm:$0xff] %v4192_v53  ;;  %v4200_v7 = vsel %vm456_vm1, %v523_v27, %v525_v31  ;;  %v527_v30 = vrot.slane %v4195_v50, 1 }
  0x4c   : > { %581 = vrot.lane.b32.xlu0 %v4153_v9, %s3802_s24  ;;  %v253_v9 = vld [vmem:[%s3873_s23 + $0xe0] sm:$0xff]  ;;  %8116 = vst [vmem:[#allocation43_spill] sm:$0xff] %v4186_v14 }
  0x4d   : > { %8118 = vst [vmem:[#allocation45_spill] sm:$0xff] %v4195_v50  ;;  %v335_v21 = vrot.slane %v253_v9, 7 }
  0x4e   : > { %8119 = vst [vmem:[#allocation46_spill] sm:$0xff] %v4200_v7 }
  0x4f   : > { %585 = vrot.lane.b32.xlu2 %v4164_v41, %s3802_s24  ;;  %v336_v41 = vrot.slane %v254_v10, 7  ;;  %8120 = vst [vmem:[#allocation47_spill] sm:$0xff] %v4205_v5  ;;  %v4211_v12 = vsel %vm290_vm0, 0.0, %v335_v21  ;;  %v4214_v10 = vsel %vm290_vm0, %v333_v17, 0.0 }
  0x50   : > { %8122 = vst [vmem:[#allocation49_spill] sm:$0xff] %v4211_v12  ;;  %v532_v27 = vrot.slane %v4211_v12, 1  ;;  %v530_v36 = vrot.slane %v4214_v10, 1 }
  0x51   : > { %583 = vrot.lane.b32.xlu1 %v4167_v4, %s3802_s24  ;;  %v528_v4 = vrot.slane %v4192_v53, 1  ;;  %v4208_v58 = vsel %vm290_vm0, %v335_v21, %v336_v41  ;;  %v4227_v21 = vsel %vm290_vm0, %v336_v41, 0.0 }
  0x52   : > { %8121 = vst [vmem:[#allocation48_spill] sm:$0xff] %v4208_v58  ;;  %v533_v31 = vrot.slane %v4208_v58, 1 }
  0x53   : > { %v4221_v9 = vsel %vm456_vm1, %v527_v30, %v528_v4  ;;  %v637_v30 = vrot.slane %v3862_v3, 2  ;;  %v640_v3 = vrot.slane %v3908_v28, 2 }
  0x54   : > { %587 = vrot.lane.b32.xlu0 %v4186_v14, %s3802_s24  ;;  %8123 = vst [vmem:[#allocation50_spill] sm:$0xff] %v4221_v9  ;;  %v4232_v17 = vsel %vm456_vm1, %v532_v27, %v533_v31  ;;  %v634_v14 = vrot.slane %v3858_v2, 2  ;;  %v639_v27 = vrot.slane %v3900_v24, 2  ;;  %v652_v2 = vrot.slane %v3941_v43, 2 }
  0x55   : > { %v660_v43 = vrot.slane %v3976_v63, 2 }
  0x56   : > { %v4259_v1 = vsel %vm633_vm2, %v639_v27, %v640_v3  ;;  %v644_v27 = vrot.slane %v3903_v25, 2 }
  0x57   : > { %591 = vrot.lane.b32.xlu2 %v4200_v7, %s3802_s24  ;;  %v4237_v7 = vsel %vm456_vm1, %v528_v4, %v530_v36  ;;  %v4251_v4 = vsel %vm633_vm2, %v634_v14, %v635_v34  ;;  %v4254_v36 = vsel %vm633_vm2, %v635_v34, %v637_v30  ;;  %v645_v14 = vrot.slane %v3894_v22, 2 }
  0x58   : > { %8124 = vst [vmem:[#allocation51_spill] sm:$0xff] %v4237_v7  ;;  %v647_v30 = vrot.slane %v3897_v23, 2 }
  0x59   : > { %589 = vrot.lane.b32.xlu1 %v4205_v5, %s3802_s24  ;;  %v535_v5 = vrot.slane %v4227_v21, 1  ;;  %8125 = vst [vmem:[#allocation52_spill] sm:$0xff] %v4251_v4 }
  0x5a   : > { %8126 = vst [vmem:[#allocation53_spill] sm:$0xff] %v4254_v36 }
  0x5b   : > { %v4246_v41 = vsel %vm456_vm1, %v533_v31, %v535_v5  ;;  %v4263_v5 = vpack.i.bf16 %v4254_v36, %v4251_v4  ;;  %v642_v31 = vrot.slane %v3911_v29, 2  ;;  %v4279_v29 = vsel %vm633_vm2, %v645_v14, %v647_v30 }
  0x5c   : > { %593 = vrot.lane.b32.xlu0 %v4221_v9, %s3802_s24  ;;  %8128 = vst [vmem:[#allocation55_spill] sm:$0xff] %v4279_v29  ;;  %v649_v36 = vrot.slane %v3923_v35, 2  ;;  %v650_v4 = vrot.slane %v3917_v33, 2 }
  0x5d   : > { %8127 = vst [vmem:[#allocation54_spill] sm:$0xff] %v4263_v5  ;;  %v4271_v34 = vsel %vm633_vm2, %v640_v3, %v642_v31  ;;  %v654_v3 = vrot.slane %v3962_v56, 2  ;;  %v655_v31 = vrot.slane %v3955_v51, 2 }
  0x5e   : > { %v4291_v23 = vsel %vm633_vm2, %v649_v36, %v650_v4 }
  0x5f   : > { %597 = vrot.lane.b32.xlu2 %v4232_v17, %s3802_s24 }
  0x61   : > { %595 = vrot.lane.b32.xlu1 %v4237_v7, %s3802_s24 }
  0x64   : > { %599 = vrot.lane.b32.xlu0 %v4246_v41, %s3802_s24  ;;  %s3812_s24 = smov 64  }
  0x67   : > { %718 = vrot.lane.b32.xlu2 %v4259_v1, %s3803_s25 }
  0x69   : > { %3757 = vrot.lane.b32.xlu1 %v4263_v5, %s3803_s25  ;;  %v4284_v5 = vsel %vm633_vm2, %v644_v27, %v645_v14  ;;  %v4301_v14 = vsel %vm633_vm2, %v654_v3, %v655_v31  ;;  %v657_v27 = vrot.slane %v3958_v52, 2  ;;  %v659_v52 = vrot.slane %v3979_v0, 2 }
  0x6a   : > { %8130 = vst [vmem:[#allocation57_spill] sm:$0xff] %v4301_v14 }
  0x6b   : > { %v4312_v36 = vsel %vm633_vm2, %v655_v31, %v657_v27  ;;  %v4327_v31 = vsel %vm633_vm2, %v659_v52, %v660_v43  ;;  %v669_v27 = vrot.slane %v4024_v37, 2  ;;  %v672_v52 = vrot.slane %v4033_v44, 2 }
  0x6c   : > { %720 = vrot.lane.b32.xlu0 %v4271_v34, %s3803_s25  ;;  %8132 = vst [vmem:[#allocation59_spill] sm:$0xff] %v4312_v36  ;;  %v674_v44 = vrot.slane %v4051_v59, 2 }
  0x6d   : > { %8135 = vst [vmem:[#allocation62_spill] sm:$0xff] %v4327_v31 }
  0x6f   : > { %724 = vrot.lane.b32.xlu2 %v4279_v29, %s3803_s25  ;;  %v4305_v29 = vsel %vm633_vm2, %v650_v4, %v652_v2  ;;  %v664_v4 = vrot.slane %v3995_v13, 2 }
  0x70   : > { %8131 = vst [vmem:[#allocation58_spill] sm:$0xff] %v4305_v29 }
  0x71   : > { %722 = vrot.lane.b32.xlu1 %v4284_v5, %s3803_s25  ;;  %v4295_v30 = vpop.permute.xlu2 %547 }
  0x72   : > { %8129 = vst [vmem:[#allocation56_spill] sm:$0xff] %v4295_v30  ;;  %v662_v30 = vrot.slane %v3999_v15, 2 }
  0x74   : > { %726 = vrot.lane.b32.xlu0 %v4291_v23, %s3803_s25  ;;  %v4322_v2 = vsel %vm633_vm2, %v660_v43, %v662_v30  ;;  %v670_v30 = vrot.slane %v4030_v42, 2 }
  0x75   : > { %8134 = vst [vmem:[#allocation61_spill] sm:$0xff] %v4322_v2 }
  0x76   : > { %v4344_v43 = vsel %vm633_vm2, %v669_v27, %v670_v30  ;;  %v677_v27 = vrot.slane %v4072_v20, 2 }
  0x77   : > { %730 = vrot.lane.b32.xlu2 %v4301_v14, %s3803_s25  ;;  %v665_v14 = vrot.slane %v3992_v11, 2  ;;  %8138 = vst [vmem:[#allocation65_spill] sm:$0xff] %v4344_v43 }
  0x79   : > { %728 = vrot.lane.b32.xlu1 %v4305_v29, %s3803_s25  ;;  %v4316_v3 = vpop.permute.xlu2 %549  ;;  %v4334_v15 = vsel %vm633_vm2, %v664_v4, %v665_v14 }
  0x7a   : > { %8133 = vst [vmem:[#allocation60_spill] sm:$0xff] %v4316_v3 }
  0x7b   : > { %8136 = vst [vmem:[#allocation63_spill] sm:$0xff] %v4334_v15 }
  0x7c   : > { %732 = vrot.lane.b32.xlu0 %v4312_v36, %s3803_s25  ;;  %v667_v36 = vrot.slane %v4013_v26, 2  ;;  %v4357_v26 = vsel %vm633_vm2, %v670_v30, %v672_v52  ;;  %v680_v30 = vrot.slane %v4065_v16, 2 }
  0x7d   : > { %8141 = vst [vmem:[#allocation68_spill] sm:$0xff] %v4357_v26 }
  0x7e   : > { %v4350_v4 = vsel %vm633_vm2, %v665_v14, %v667_v36  ;;  %v679_v36 = vrot.slane %v4068_v18, 2 }
  0x7f   : > { %736 = vrot.lane.b32.xlu2 %v4322_v2, %s3803_s25  ;;  %8140 = vst [vmem:[#allocation67_spill] sm:$0xff] %v4350_v4 }
  0x81   : > { %734 = vrot.lane.b32.xlu1 %v4327_v31, %s3803_s25  ;;  %v4338_v3 = vpop.permute.xlu2 %555 }
  0x82   : > { %8137 = vst [vmem:[#allocation64_spill] sm:$0xff] %v4338_v3  ;;  %v675_v3 = vrot.slane %v4048_v57, 2 }
  0x84   : > { %738 = vrot.lane.b32.xlu0 %v4334_v15, %s3803_s25  ;;  %v4369_v14 = vsel %vm633_vm2, %v675_v3, %v677_v27  ;;  %v4376_v20 = vsel %vm633_vm2, %v674_v44, %v675_v3  ;;  %v684_v27 = vrot.slane %v4106_v8, 2  ;;  %v687_v44 = vrot.slane %v4099_v60, 2 }
  0x85   : > { %8144 = vst [vmem:[#allocation71_spill] sm:$0xff] %v4369_v14  ;;  %v689_v60 = vrot.slane %v4123_v46, 2 }
  0x86   : > { %v4347_v2 = vpop.permute.xlu0 %3752  ;;  %8146 = vst [vmem:[#allocation73_spill] sm:$0xff] %v4376_v20 }
  0x87   : > { %8139 = vst [vmem:[#allocation66_spill] sm:$0xff] %v4347_v2  ;;  %742 = vrot.lane.b32.xlu2 %v4344_v43, %s3803_s25 }
  0x89   : > { %740 = vrot.lane.b32.xlu1 %v4350_v4, %s3803_s25  ;;  %v4361_v15 = vpop.permute.xlu2 %561 }
  0x8a   : > { %8142 = vst [vmem:[#allocation69_spill] sm:$0xff] %v4361_v15  ;;  %v4383_v15 = vsel %vm633_vm2, %v679_v36, %v680_v30 }
  0x8b   : > { %v4364_v2 = vpop.permute.xlu1 %543  ;;  %8147 = vst [vmem:[#allocation74_spill] sm:$0xff] %v4383_v15 }
  0x8c   : > { %8143 = vst [vmem:[#allocation70_spill] sm:$0xff] %v4364_v2  ;;  %744 = vrot.lane.b32.xlu0 %v4357_v26, %s3803_s25  ;;  %v685_v2 = vrot.slane %v4096_v55, 2 }
  0x8e   : > { %v4373_v52 = vpop.permute.xlu0 %541  ;;  %v4395_v3 = vsel %vm633_vm2, %v684_v27, %v685_v2  ;;  %v692_v27 = vrot.slane %v4136_v19, 2 }
  0x8f   : > { %8145 = vst [vmem:[#allocation72_spill] sm:$0xff] %v4373_v52  ;;  %748 = vrot.lane.b32.xlu2 %v4369_v14, %s3803_s25  ;;  %v682_v52 = vrot.slane %v4085_v45, 2  ;;  %v4408_v45 = vsel %vm633_vm2, %v685_v2, %v687_v44  ;;  %v695_v2 = vrot.slane %v4142_v61, 2 }
  0x90   : > { %8150 = vst [vmem:[#allocation77_spill] sm:$0xff] %v4395_v3 }
  0x91   : > { %746 = vrot.lane.b32.xlu1 %v4376_v20, %s3803_s25  ;;  %v4387_v26 = vpop.permute.xlu2 %567  ;;  %v4401_v14 = vsel %vm633_vm2, %v680_v30, %v682_v52  ;;  %8153 = vst [vmem:[#allocation80_spill] sm:$0xff] %v4408_v45  ;;  %v694_v52 = vrot.slane %v4133_v54, 2 }
  0x92   : > { %8148 = vst [vmem:[#allocation75_spill] sm:$0xff] %v4387_v26  ;;  %v690_v26 = vrot.slane %v4120_v40, 2 }
  0x93   : > { %v4390_v43 = vpop.permute.xlu1 %545  ;;  %8152 = vst [vmem:[#allocation79_spill] sm:$0xff] %v4401_v14 }
  0x94   : > { %8149 = vst [vmem:[#allocation76_spill] sm:$0xff] %v4390_v43  ;;  %750 = vrot.lane.b32.xlu0 %v4383_v15, %s3803_s25  ;;  %v4420_v30 = vsel %vm633_vm2, %v690_v26, %v692_v27  ;;  %v4427_v19 = vsel %vm633_vm2, %v689_v60, %v690_v26  ;;  %v699_v27 = vrot.slane %v4177_v47, 2  ;;  %v702_v60 = vrot.slane %v4174_v6, 2 }
  0x95   : > { %8156 = vst [vmem:[#allocation83_spill] sm:$0xff] %v4420_v30  ;;  %v704_v6 = vrot.slane %v4195_v50, 2 }
  0x96   : > { %v4398_v36 = vpop.permute.xlu0 %551 }
  0x97   : > { %8151 = vst [vmem:[#allocation78_spill] sm:$0xff] %v4398_v36  ;;  %754 = vrot.lane.b32.xlu2 %v4395_v3, %s3803_s25 }
  0x99   : > { %752 = vrot.lane.b32.xlu1 %v4401_v14, %s3803_s25  ;;  %v4412_v43 = vpop.permute.xlu2 %573 }
  0x9a   : > { %8154 = vst [vmem:[#allocation81_spill] sm:$0xff] %v4412_v43  ;;  %v700_v43 = vrot.slane %v4171_v32, 2 }
  0x9b   : > { %v4415_v36 = vpop.permute.xlu1 %553 }
  0x9c   : > { %8155 = vst [vmem:[#allocation82_spill] sm:$0xff] %v4415_v36  ;;  %756 = vrot.lane.b32.xlu0 %v4408_v45, %s3803_s25  ;;  %v4434_v36 = vsel %vm633_vm2, %v694_v52, %v695_v2  ;;  %v4446_v26 = vsel %vm633_vm2, %v699_v27, %v700_v43  ;;  %v707_v27 = vrot.slane %v4214_v10, 2 }
  0x9d   : > { %8160 = vst [vmem:[#allocation87_spill] sm:$0xff] %v4446_v26 }
  0x9e   : > { %v4424_v44 = vpop.permute.xlu0 %557 }
  0x9f   : > { %8157 = vst [vmem:[#allocation84_spill] sm:$0xff] %v4424_v44  ;;  %760 = vrot.lane.b32.xlu2 %v4420_v30, %s3803_s25  ;;  %v697_v44 = vrot.slane %v4157_v62, 2  ;;  %v4459_v62 = vsel %vm633_vm2, %v700_v43, %v702_v60  ;;  %v710_v43 = vrot.slane %v4208_v58, 2 }
  0xa0   : > { %8163 = vst [vmem:[#allocation90_spill] sm:$0xff] %v4459_v62 }
  0xa1   : > { %758 = vrot.lane.b32.xlu1 %v4427_v19, %s3803_s25  ;;  %v4438_v45 = vpop.permute.xlu2 %579  ;;  %v4452_v30 = vsel %vm633_vm2, %v695_v2, %v697_v44  ;;  %v709_v44 = vrot.slane %v4211_v12, 2 }
  0xa2   : > { %8158 = vst [vmem:[#allocation85_spill] sm:$0xff] %v4438_v45 }
  0xa3   : > { %v4441_v3 = vpop.permute.xlu1 %559  ;;  %8162 = vst [vmem:[#allocation89_spill] sm:$0xff] %v4452_v30 }
  0xa4   : > { %8159 = vst [vmem:[#allocation86_spill] sm:$0xff] %v4441_v3  ;;  %762 = vrot.lane.b32.xlu0 %v4434_v36, %s3803_s25  ;;  %v705_v3 = vrot.slane %v4192_v53, 2 }
  0xa6   : > { %v4449_v52 = vpop.permute.xlu0 %563  ;;  %v4471_v2 = vsel %vm633_vm2, %v705_v3, %v707_v27  ;;  %v4478_v10 = vsel %vm633_vm2, %v704_v6, %v705_v3 }
  0xa7   : > { %8161 = vst [vmem:[#allocation88_spill] sm:$0xff] %v4449_v52  ;;  %766 = vrot.lane.b32.xlu2 %v4446_v26, %s3803_s25 }
  0xa8   : > { %8166 = vst [vmem:[#allocation93_spill] sm:$0xff] %v4471_v2 }
  0xa9   : > { %764 = vrot.lane.b32.xlu1 %v4452_v30, %s3803_s25  ;;  %v4463_v45 = vpop.permute.xlu2 %585  ;;  %8168 = vst [vmem:[#allocation95_spill] sm:$0xff] %v4478_v10 }
  0xaa   : > { %8164 = vst [vmem:[#allocation91_spill] sm:$0xff] %v4463_v45  ;;  %v712_v45 = vrot.slane %v4227_v21, 2 }
  0xab   : > { %v4466_v52 = vpop.permute.xlu1 %565 }
  0xac   : > { %8165 = vst [vmem:[#allocation92_spill] sm:$0xff] %v4466_v52  ;;  %768 = vrot.lane.b32.xlu0 %v4459_v62, %s3803_s25  ;;  %v4485_v52 = vsel %vm633_vm2, %v709_v44, %v710_v43  ;;  %v4497_v6 = vsel %vm633_vm2, %v710_v43, %v712_v45 }
  0xae   : > { %v4475_v60 = vpop.permute.xlu0 %569 }
  0xaf   : > { %8167 = vst [vmem:[#allocation94_spill] sm:$0xff] %v4475_v60  ;;  %772 = vrot.lane.b32.xlu2 %v4471_v2, %s3803_s25 }
  0xb1   : > { %770 = vrot.lane.b32.xlu1 %v4478_v10, %s3803_s25  ;;  %v4487_v27 = vpop.permute.xlu2 %591 }
  0xb2   : > { %8169 = vst [vmem:[#allocation96_spill] sm:$0xff] %v4487_v27 }
  0xb3   : > { %v4490_v62 = vpop.permute.xlu1 %571 }
  0xb4   : > { %8170 = vst [vmem:[#allocation97_spill] sm:$0xff] %v4490_v62  ;;  %774 = vrot.lane.b32.xlu0 %v4485_v52, %s3803_s25 }
  0xb6   : > { %v4494_v3 = vpop.permute.xlu0 %575 }
  0xb7   : > { %8171 = vst [vmem:[#allocation98_spill] sm:$0xff] %v4494_v3  ;;  %811 = vrot.lane.b32.xlu2 %v3900_v24, %s3804_s26 }
  0xb9   : > { %776 = vrot.lane.b32.xlu1 %v4497_v6, %s3803_s25  ;;  %v4503_v44 = vpop.permute.xlu2 %597 }
  0xba   : > { %8172 = vst [vmem:[#allocation99_spill] sm:$0xff] %v4503_v44 }
  0xbb   : > { %v4505_v21 = vpop.permute.xlu1 %577 }
  0xbc   : > { %8173 = vst [vmem:[#allocation100_spill] sm:$0xff] %v4505_v21  ;;  %813 = vrot.lane.b32.xlu0 %v3908_v28, %s3804_s26  ;;  %v4615_v28 = vld [vmem:[%s3873_s23 + $0xf8] sm:$0xff] }
  0xbe   : > { %v4509_v60 = vpop.permute.xlu0 %581 }
  0xbf   : > { %8174 = vst [vmem:[#allocation101_spill] sm:$0xff] %v4509_v60  ;;  %817 = vrot.lane.b32.xlu2 %v3894_v22, %s3804_s26 }
  0xc1   : > { %815 = vrot.lane.b32.xlu1 %v3903_v25, %s3804_s26  ;;  %v4515_v45 = vpop.permute.xlu2 %718 }
  0xc2   : > { %8175 = vst [vmem:[#allocation102_spill] sm:$0xff] %v4515_v45 }
  0xc3   : > { %v4517_v43 = vpop.permute.xlu1 %583 }
  0xc4   : > { %8176 = vst [vmem:[#allocation103_spill] sm:$0xff] %v4517_v43  ;;  %819 = vrot.lane.b32.xlu0 %v3923_v35, %s3804_s26 }
  0xc6   : > { %v4521_v44 = vpop.permute.xlu0 %587 }
  0xc7   : > { %8177 = vst [vmem:[#allocation104_spill] sm:$0xff] %v4521_v44  ;;  %823 = vrot.lane.b32.xlu2 %v3962_v56, %s3804_s26 }
  0xc9   : > { %821 = vrot.lane.b32.xlu1 %v3917_v33, %s3804_s26  ;;  %v4527_v27 = vpop.permute.xlu2 %724 }
  0xca   : > { %8178 = vst [vmem:[#allocation105_spill] sm:$0xff] %v4527_v27 }
  0xcb   : > { %v4529_v60 = vpop.permute.xlu1 %589 }
  0xcc   : > { %8179 = vst [vmem:[#allocation106_spill] sm:$0xff] %v4529_v60  ;;  %825 = vrot.lane.b32.xlu0 %v3955_v51, %s3804_s26 }
  0xce   : > { %v4533_v21 = vpop.permute.xlu0 %593 }
  0xcf   : > { %8180 = vst [vmem:[#allocation107_spill] sm:$0xff] %v4533_v21  ;;  %829 = vrot.lane.b32.xlu2 %v3976_v63, %s3804_s26 }
  0xd1   : > { %827 = vrot.lane.b32.xlu1 %v3979_v0, %s3804_s26  ;;  %v4539_v44 = vpop.permute.xlu2 %730 }
  0xd2   : > { %8181 = vst [vmem:[#allocation108_spill] sm:$0xff] %v4539_v44 }
  0xd3   : > { %v4541_v43 = vpop.permute.xlu1 %595 }
  0xd4   : > { %8182 = vst [vmem:[#allocation109_spill] sm:$0xff] %v4541_v43  ;;  %831 = vrot.lane.b32.xlu0 %v3995_v13, %s3804_s26 }
  0xd6   : > { %v4545_v3 = vpop.permute.xlu0 %599 }
  0xd7   : > { %8183 = vst [vmem:[#allocation110_spill] sm:$0xff] %v4545_v3  ;;  %835 = vrot.lane.b32.xlu2 %v4024_v37, %s3804_s26 }
  0xd9   : > { %833 = vrot.lane.b32.xlu1 %v3992_v11, %s3804_s26  ;;  %v4551_v21 = vpop.permute.xlu2 %736 }
  0xda   : > { %8184 = vst [vmem:[#allocation111_spill] sm:$0xff] %v4551_v21 }
  0xdb   : > { %v4553_v60 = vpop.permute.xlu1 %3757 }
  0xdc   : > { %8185 = vst [vmem:[#allocation112_spill] sm:$0xff] %v4553_v60  ;;  %837 = vrot.lane.b32.xlu0 %v4030_v42, %s3804_s26 }
  0xde   : > { %v4557_v44 = vpop.permute.xlu0 %720 }
  0xdf   : > { %8186 = vst [vmem:[#allocation113_spill] sm:$0xff] %v4557_v44  ;;  %841 = vrot.lane.b32.xlu2 %v4048_v57, %s3804_s26 }
  0xe1   : > { %839 = vrot.lane.b32.xlu1 %v4051_v59, %s3804_s26  ;;  %v4563_v3 = vpop.permute.xlu2 %742 }
  0xe2   : > { %8187 = vst [vmem:[#allocation114_spill] sm:$0xff] %v4563_v3 }
  0xe3   : > { %v4565_v43 = vpop.permute.xlu1 %722 }
  0xe4   : > { %8188 = vst [vmem:[#allocation115_spill] sm:$0xff] %v4565_v43  ;;  %843 = vrot.lane.b32.xlu0 %v4068_v18, %s3804_s26 }
  0xe6   : > { %v4569_v21 = vpop.permute.xlu0 %726 }
  0xe7   : > { %8189 = vst [vmem:[#allocation116_spill] sm:$0xff] %v4569_v21  ;;  %847 = vrot.lane.b32.xlu2 %v4106_v8, %s3804_s26 }
  0xe9   : > { %845 = vrot.lane.b32.xlu1 %v4065_v16, %s3804_s26  ;;  %v4575_v62 = vpop.permute.xlu2 %748 }
  0xea   : > { %8190 = vst [vmem:[#allocation117_spill] sm:$0xff] %v4575_v62 }
  0xeb   : > { %v4577_v27 = vpop.permute.xlu1 %728 }
  0xec   : > { %8191 = vst [vmem:[#allocation118_spill] sm:$0xff] %v4577_v27  ;;  %849 = vrot.lane.b32.xlu0 %v4096_v55, %s3804_s26 }
  0xee   : > { %v4581_v3 = vpop.permute.xlu0 %732 }
  0xef   : > { %8192 = vst [vmem:[#allocation119_spill] sm:$0xff] %v4581_v3  ;;  %853 = vrot.lane.b32.xlu2 %v4120_v40, %s3804_s26 }
  0xf1   : > { %851 = vrot.lane.b32.xlu1 %v4123_v46, %s3804_s26  ;;  %v4587_v21 = vpop.permute.xlu2 %754 }
  0xf2   : > { %8193 = vst [vmem:[#allocation120_spill] sm:$0xff] %v4587_v21 }
  0xf3   : > { %v4589_v43 = vpop.permute.xlu1 %734 }
  0xf4   : > { %8194 = vst [vmem:[#allocation121_spill] sm:$0xff] %v4589_v43  ;;  %855 = vrot.lane.b32.xlu0 %v4133_v54, %s3804_s26  ;;  %v255_v43 = vld [vmem:[%s3873_s23 + $0xf0] sm:$0xff]  ;;  %s3811_s23 = smov 56  }
  0xf6   : > { %v4593_v27 = vpop.permute.xlu0 %738 }
  0xf7   : > { %8195 = vst [vmem:[#allocation122_spill] sm:$0xff] %v4593_v27  ;;  %859 = vrot.lane.b32.xlu2 %v4177_v47, %s3804_s26  ;;  %v338_v27 = vrot.slane %v255_v43, 7 }
  0xf9   : > { %857 = vrot.lane.b32.xlu1 %v4142_v61, %s3804_s26  ;;  %v4599_v3 = vpop.permute.xlu2 %760 }
  0xfa   : > { %8196 = vst [vmem:[#allocation123_spill] sm:$0xff] %v4599_v3 }
  0xfb   : > { %v4601_v62 = vpop.permute.xlu1 %740 }
  0xfc   : > { %8197 = vst [vmem:[#allocation124_spill] sm:$0xff] %v4601_v62  ;;  %861 = vrot.lane.b32.xlu0 %v4171_v32, %s3804_s26  ;;  %v4622_v62 = vsel %vm290_vm0, 0.0, %v338_v27 }
  0xfe   : > { %v4605_v21 = vpop.permute.xlu0 %744 }
  0xff   : > { %8198 = vst [vmem:[#allocation125_spill] sm:$0xff] %v4605_v21  ;;  %865 = vrot.lane.b32.xlu2 %v4192_v53, %s3804_s26  ;;  %v7916_v21 = vrot.slane %v4615_v28, 7 }
 0x101   : > { %863 = vrot.lane.b32.xlu1 %v4195_v50, %s3804_s26  ;;  %v4612_v44 = vpop.permute.xlu2 %766  ;;  %v4634_v43 = vsel %vm290_vm0, %v338_v27, %v7916_v21 }
 0x102   : > { %8199 = vst [vmem:[#allocation126_spill] sm:$0xff] %v4612_v44 }
 0x103   : > { %v4617_v3 = vpop.permute.xlu1 %746 }
 0x104   : > { %8200 = vst [vmem:[#allocation127_spill] sm:$0xff] %v4617_v3  ;;  %867 = vrot.lane.b32.xlu0 %v4211_v12, %s3804_s26 }
 0x106   : > { %v4625_v45 = vpop.permute.xlu0 %750 }
 0x107   : > { %8201 = vst [vmem:[#allocation128_spill] sm:$0xff] %v4625_v45  ;;  %871 = vrot.lane.b32.xlu2 %v4622_v62, %s3804_s26 }
 0x109   : > { %869 = vrot.lane.b32.xlu1 %v4208_v58, %s3804_s26  ;;  %v4636_v3 = vpop.permute.xlu2 %772 }
 0x10a   : > { %8202 = vst [vmem:[#allocation129_spill] sm:$0xff] %v4636_v3  ;;  %v8208_v3 = vld [vmem:[#allocation9_spill] sm:$0xff] }
 0x10b   : > { %v4638_v44 = vpop.permute.xlu1 %752 }
 0x10c   : > { %8203 = vst [vmem:[#allocation130_spill] sm:$0xff] %v4638_v44  ;;  %873 = vrot.lane.b32.xlu0 %v4634_v43, %s3804_s26 }
 0x10e   : > { %v4642_v24 = vpop.permute.xlu0 %756 }
 0x10f   : > { %8204 = vst [vmem:[#allocation131_spill] sm:$0xff] %v4642_v24  ;;  %915 = vrot.lane.b32.xlu2 %v3930_v38, %s3805_s27 }
 0x111   : > { %913 = vrot.lane.b32.xlu1 %v3935_v39, %s3805_s27  ;;  %v4648_v45 = vpop.permute.xlu2 %811  ;;  %v8211_v39 = vld [vmem:[#allocation11_spill] sm:$0xff] }
 0x112   : > { %8205 = vst [vmem:[#allocation132_spill] sm:$0xff] %v4648_v45 }
 0x113   : > { %v4650_v27 = vpop.permute.xlu1 %758 }
 0x114   : > { %8206 = vst [vmem:[#allocation133_spill] sm:$0xff] %v4650_v27  ;;  %917 = vrot.lane.b32.xlu0 %v3951_v49, %s3805_s27  ;;  %v8213_v27 = vld [vmem:[#allocation14_spill] sm:$0xff] }
 0x116   : > { %v4654_v21 = vpop.permute.xlu0 %762 }
 0x117   : > { %8207 = vst [vmem:[#allocation134_spill] sm:$0xff] %v4654_v21  ;;  %921 = vrot.lane.b32.xlu2 %v3948_v48, %s3805_s27  ;;  %v8214_v21 = vld [vmem:[#allocation15_spill] sm:$0xff] }
 0x119   : > { %919 = vrot.lane.b32.xlu1 %v8208_v3, %s3805_s27  ;;  %v4660_v24 = vpop.permute.xlu2 %817  ;;  %v8217_v3 = vld [vmem:[#allocation18_spill] sm:$0xff] }
 0x11a   : > { %8209 = vst [vmem:[#allocation135_spill] sm:$0xff] %v4660_v24 }
 0x11b   : > { %v4662_v38 = vpop.permute.xlu1 %764 }
 0x11c   : > { %8210 = vst [vmem:[#allocation136_spill] sm:$0xff] %v4662_v38  ;;  %923 = vrot.lane.b32.xlu0 %v8211_v39, %s3805_s27  ;;  %v8219_v38 = vld [vmem:[#allocation19_spill] sm:$0xff] }
 0x11e   : > { %v4666_v44 = vpop.permute.xlu0 %768 }
 0x11f   : > { %8212 = vst [vmem:[#allocation137_spill] sm:$0xff] %v4666_v44  ;;  %927 = vrot.lane.b32.xlu2 %v8213_v27, %s3805_s27  ;;  %v8220_v44 = vld [vmem:[#allocation21_spill] sm:$0xff] }
 0x121   : > { %925 = vrot.lane.b32.xlu1 %v8214_v21, %s3805_s27  ;;  %v4672_v45 = vpop.permute.xlu2 %823  ;;  %v8223_v21 = vld [vmem:[#allocation23_spill] sm:$0xff] }
 0x122   : > { %8215 = vst [vmem:[#allocation138_spill] sm:$0xff] %v4672_v45 }
 0x123   : > { %v4674_v60 = vpop.permute.xlu1 %770 }
 0x124   : > { %8216 = vst [vmem:[#allocation139_spill] sm:$0xff] %v4674_v60  ;;  %929 = vrot.lane.b32.xlu0 %v8217_v3, %s3805_s27  ;;  %v8225_v60 = vld [vmem:[#allocation25_spill] sm:$0xff] }
 0x126   : > { %v4678_v24 = vpop.permute.xlu0 %774 }
 0x127   : > { %8218 = vst [vmem:[#allocation140_spill] sm:$0xff] %v4678_v24  ;;  %933 = vrot.lane.b32.xlu2 %v8219_v38, %s3805_s27  ;;  %v8226_v24 = vld [vmem:[#allocation26_spill] sm:$0xff] }
 0x129   : > { %931 = vrot.lane.b32.xlu1 %v8220_v44, %s3805_s27  ;;  %v4684_v39 = vpop.permute.xlu2 %829  ;;  %v8229_v44 = vld [vmem:[#allocation27_spill] sm:$0xff] }
 0x12a   : > { %8221 = vst [vmem:[#allocation141_spill] sm:$0xff] %v4684_v39 }
 0x12b   : > { %v4686_v27 = vpop.permute.xlu1 %776 }
 0x12c   : > { %8222 = vst [vmem:[#allocation142_spill] sm:$0xff] %v4686_v27  ;;  %935 = vrot.lane.b32.xlu0 %v8223_v21, %s3805_s27  ;;  %v8231_v27 = vld [vmem:[#allocation28_spill] sm:$0xff] }
 0x12e   : > { %v4690_v45 = vpop.permute.xlu0 %813 }
 0x12f   : > { %8224 = vst [vmem:[#allocation143_spill] sm:$0xff] %v4690_v45  ;;  %939 = vrot.lane.b32.xlu2 %v8225_v60, %s3805_s27  ;;  %v8232_v45 = vld [vmem:[#allocation30_spill] sm:$0xff] }
 0x131   : > { %937 = vrot.lane.b32.xlu1 %v8226_v24, %s3805_s27  ;;  %v4696_v3 = vpop.permute.xlu2 %835  ;;  %v8235_v24 = vld [vmem:[#allocation31_spill] sm:$0xff] }
 0x132   : > { %8227 = vst [vmem:[#allocation144_spill] sm:$0xff] %v4696_v3 }
 0x133   : > { %v4698_v38 = vpop.permute.xlu1 %815 }
 0x134   : > { %8228 = vst [vmem:[#allocation145_spill] sm:$0xff] %v4698_v38  ;;  %941 = vrot.lane.b32.xlu0 %v8229_v44, %s3805_s27  ;;  %v8237_v38 = vld [vmem:[#allocation34_spill] sm:$0xff] }
 0x136   : > { %v4702_v39 = vpop.permute.xlu0 %819 }
 0x137   : > { %8230 = vst [vmem:[#allocation146_spill] sm:$0xff] %v4702_v39  ;;  %945 = vrot.lane.b32.xlu2 %v8231_v27, %s3805_s27  ;;  %v8238_v39 = vld [vmem:[#allocation36_spill] sm:$0xff] }
 0x139   : > { %943 = vrot.lane.b32.xlu1 %v8232_v45, %s3805_s27  ;;  %v4708_v21 = vpop.permute.xlu2 %841  ;;  %v8241_v45 = vld [vmem:[#allocation38_spill] sm:$0xff] }
 0x13a   : > { %8233 = vst [vmem:[#allocation147_spill] sm:$0xff] %v4708_v21 }
 0x13b   : > { %v4710_v60 = vpop.permute.xlu1 %821 }
 0x13c   : > { %8234 = vst [vmem:[#allocation148_spill] sm:$0xff] %v4710_v60  ;;  %947 = vrot.lane.b32.xlu0 %v8235_v24, %s3805_s27  ;;  %v8243_v60 = vld [vmem:[#allocation39_spill] sm:$0xff] }
 0x13e   : > { %v4714_v3 = vpop.permute.xlu0 %825 }
 0x13f   : > { %8236 = vst [vmem:[#allocation149_spill] sm:$0xff] %v4714_v3  ;;  %951 = vrot.lane.b32.xlu2 %v8237_v38, %s3805_s27  ;;  %v8244_v3 = vld [vmem:[#allocation40_spill] sm:$0xff] }
 0x141   : > { %949 = vrot.lane.b32.xlu1 %v8238_v39, %s3805_s27  ;;  %v4720_v44 = vpop.permute.xlu2 %847  ;;  %v8247_v39 = vld [vmem:[#allocation43_spill] sm:$0xff] }
 0x142   : > { %8239 = vst [vmem:[#allocation150_spill] sm:$0xff] %v4720_v44 }
 0x143   : > { %v4722_v27 = vpop.permute.xlu1 %827 }
 0x144   : > { %8240 = vst [vmem:[#allocation151_spill] sm:$0xff] %v4722_v27  ;;  %953 = vrot.lane.b32.xlu0 %v8241_v45, %s3805_s27  ;;  %v8249_v27 = vld [vmem:[#allocation46_spill] sm:$0xff] }
 0x146   : > { %v4726_v21 = vpop.permute.xlu0 %831 }
 0x147   : > { %8242 = vst [vmem:[#allocation152_spill] sm:$0xff] %v4726_v21  ;;  %957 = vrot.lane.b32.xlu2 %v8243_v60, %s3805_s27  ;;  %v8250_v21 = vld [vmem:[#allocation47_spill] sm:$0xff] }
 0x149   : > { %955 = vrot.lane.b32.xlu1 %v8244_v3, %s3805_s27  ;;  %v4732_v24 = vpop.permute.xlu2 %853 }
 0x14a   : > { %8245 = vst [vmem:[#allocation40_spill] sm:$0xff] %v4732_v24 }
 0x14b   : > { %v4734_v38 = vpop.permute.xlu1 %833 }
 0x14c   : > { %8246 = vst [vmem:[#allocation153_spill] sm:$0xff] %v4734_v38  ;;  %959 = vrot.lane.b32.xlu0 %v8247_v39, %s3805_s27  ;;  %v8254_v38 = vrot.slane %v4615_v28, 7 }
 0x14e   : > { %v4738_v44 = vpop.permute.xlu0 %837  ;;  %v4755_v39 = vsel %vm290_vm0, %v8254_v38, 0.0 }
 0x14f   : > { %8248 = vst [vmem:[#allocation154_spill] sm:$0xff] %v4738_v44  ;;  %963 = vrot.lane.b32.xlu2 %v8249_v27, %s3805_s27  ;;  %v909_v44 = vrot.slane %v4634_v43, 1 }
 0x151   : > { %961 = vrot.lane.b32.xlu1 %v8250_v21, %s3805_s27  ;;  %v4744_v45 = vpop.permute.xlu2 %859 }
 0x152   : > { %8251 = vst [vmem:[#allocation46_spill] sm:$0xff] %v4744_v45 }
 0x153   : > { %v4746_v60 = vpop.permute.xlu1 %839 }
 0x154   : > { %8252 = vst [vmem:[#allocation47_spill] sm:$0xff] %v4746_v60  ;;  %965 = vrot.lane.b32.xlu0 %v4221_v9, %s3805_s27  ;;  %v911_v60 = vrot.slane %v4755_v39, 1  ;;  %v908_v9 = vrot.slane %v4622_v62, 1 }
 0x156   : > { %v4750_v24 = vpop.permute.xlu0 %843  ;;  %v4771_v28 = vsel %vm456_vm1, %v909_v44, %v911_v60 }
 0x157   : > { %8253 = vst [vmem:[#allocation155_spill] sm:$0xff] %v4750_v24  ;;  %969 = vrot.lane.b32.xlu2 %v4232_v17, %s3805_s27 }
 0x159   : > { %967 = vrot.lane.b32.xlu1 %v4237_v7, %s3805_s27  ;;  %v4763_v45 = vpop.permute.xlu2 %865  ;;  %v4776_v7 = vsel %vm456_vm1, %v908_v9, %v909_v44 }
 0x15a   : > { %8255 = vst [vmem:[#allocation156_spill] sm:$0xff] %v4763_v45 }
 0x15b   : > { %v4766_v24 = vpop.permute.xlu1 %845 }
 0x15c   : > { %8256 = vst [vmem:[#allocation157_spill] sm:$0xff] %v4766_v24  ;;  %971 = vrot.lane.b32.xlu0 %v4246_v41, %s3805_s27 }
 0x15e   : > { %v4773_v38 = vpop.permute.xlu0 %849 }
 0x15f   : > { %8257 = vst [vmem:[#allocation158_spill] sm:$0xff] %v4773_v38  ;;  %975 = vrot.lane.b32.xlu2 %v4771_v28, %s3805_s27 }
 0x161   : > { %973 = vrot.lane.b32.xlu1 %v4776_v7, %s3805_s27  ;;  %v4782_v45 = vpop.permute.xlu2 %871 }
 0x162   : > { %8258 = vst [vmem:[#allocation159_spill] sm:$0xff] %v4782_v45  ;;  %v8263_v45 = vld [vmem:[#allocation55_spill] sm:$0xff] }
 0x163   : > { %v4784_v24 = vpop.permute.xlu1 %851 }
 0x164   : > { %8259 = vst [vmem:[#allocation160_spill] sm:$0xff] %v4784_v24  ;;  %1014 = vrot.lane.b32.xlu0 %v4259_v1, %s3806_s28 }
 0x166   : > { %v4788_v60 = vpop.permute.xlu0 %855 }
 0x167   : > { %8260 = vst [vmem:[#allocation161_spill] sm:$0xff] %v4788_v60  ;;  %1018 = vrot.lane.b32.xlu2 %v4284_v5, %s3806_s28 }
 0x169   : > { %1016 = vrot.lane.b32.xlu1 %v4271_v34, %s3806_s28  ;;  %v4794_v9 = vpop.permute.xlu2 %915  ;;  %v8267_v34 = vld [vmem:[#allocation57_spill] sm:$0xff] }
 0x16a   : > { %8261 = vst [vmem:[#allocation162_spill] sm:$0xff] %v4794_v9 }
 0x16b   : > { %v4796_v44 = vpop.permute.xlu1 %857 }
 0x16c   : > { %8262 = vst [vmem:[#allocation163_spill] sm:$0xff] %v4796_v44  ;;  %1020 = vrot.lane.b32.xlu0 %v8263_v45, %s3806_s28 }
 0x16e   : > { %v4800_v24 = vpop.permute.xlu0 %861 }
 0x16f   : > { %8264 = vst [vmem:[#allocation55_spill] sm:$0xff] %v4800_v24  ;;  %1024 = vrot.lane.b32.xlu2 %v4305_v29, %s3806_s28  ;;  %v8269_v24 = vld [vmem:[#allocation59_spill] sm:$0xff]  ;;  %v8272_v29 = vld [vmem:[#allocation61_spill] sm:$0xff] }
 0x171   : > { %1022 = vrot.lane.b32.xlu1 %v4291_v23, %s3806_s28  ;;  %v4806_v1 = vpop.permute.xlu2 %921 }
 0x172   : > { %8265 = vst [vmem:[#allocation164_spill] sm:$0xff] %v4806_v1 }
 0x173   : > { %v4808_v60 = vpop.permute.xlu1 %863 }
 0x174   : > { %8266 = vst [vmem:[#allocation165_spill] sm:$0xff] %v4808_v60  ;;  %1026 = vrot.lane.b32.xlu0 %v8267_v34, %s3806_s28 }
 0x176   : > { %v4812_v38 = vpop.permute.xlu0 %867 }
 0x177   : > { %8268 = vst [vmem:[#allocation57_spill] sm:$0xff] %v4812_v38  ;;  %1030 = vrot.lane.b32.xlu2 %v4327_v31, %s3806_s28  ;;  %v8274_v38 = vld [vmem:[#allocation63_spill] sm:$0xff] }
 0x179   : > { %1028 = vrot.lane.b32.xlu1 %v8269_v24, %s3806_s28  ;;  %v4818_v44 = vpop.permute.xlu2 %927  ;;  %v8277_v24 = vld [vmem:[#allocation65_spill] sm:$0xff] }
 0x17a   : > { %8270 = vst [vmem:[#allocation166_spill] sm:$0xff] %v4818_v44 }
 0x17b   : > { %v4820_v9 = vpop.permute.xlu1 %869 }
 0x17c   : > { %8271 = vst [vmem:[#allocation167_spill] sm:$0xff] %v4820_v9  ;;  %1032 = vrot.lane.b32.xlu0 %v8272_v29, %s3806_s28 }
 0x17e   : > { %v4824_v1 = vpop.permute.xlu0 %873 }
 0x17f   : > { %8273 = vst [vmem:[#allocation61_spill] sm:$0xff] %v4824_v1  ;;  %1036 = vrot.lane.b32.xlu2 %v4350_v4, %s3806_s28  ;;  %v8279_v1 = vld [vmem:[#allocation68_spill] sm:$0xff] }
 0x181   : > { %1034 = vrot.lane.b32.xlu1 %v8274_v38, %s3806_s28  ;;  %v4830_v60 = vpop.permute.xlu2 %933  ;;  %v8282_v38 = vld [vmem:[#allocation71_spill] sm:$0xff] }
 0x182   : > { %8275 = vst [vmem:[#allocation168_spill] sm:$0xff] %v4830_v60 }
 0x183   : > { %v4832_v31 = vpop.permute.xlu1 %913 }
 0x184   : > { %8276 = vst [vmem:[#allocation169_spill] sm:$0xff] %v4832_v31  ;;  %1038 = vrot.lane.b32.xlu0 %v8277_v24, %s3806_s28 }
 0x186   : > { %v4836_v44 = vpop.permute.xlu0 %917 }
 0x187   : > { %8278 = vst [vmem:[#allocation65_spill] sm:$0xff] %v4836_v44  ;;  %1042 = vrot.lane.b32.xlu2 %v4376_v20, %s3806_s28  ;;  %v8286_v20 = vld [vmem:[#allocation77_spill] sm:$0xff] }
 0x189   : > { %1040 = vrot.lane.b32.xlu1 %v8279_v1, %s3806_s28  ;;  %v4842_v9 = vpop.permute.xlu2 %939 }
 0x18a   : > { %8280 = vst [vmem:[#allocation68_spill] sm:$0xff] %v4842_v9 }
 0x18b   : > { %v4844_v4 = vpop.permute.xlu1 %919 }
 0x18c   : > { %8281 = vst [vmem:[#allocation170_spill] sm:$0xff] %v4844_v4  ;;  %1044 = vrot.lane.b32.xlu0 %v8282_v38, %s3806_s28 }
 0x18e   : > { %v4848_v60 = vpop.permute.xlu0 %923 }
 0x18f   : > { %8283 = vst [vmem:[#allocation71_spill] sm:$0xff] %v4848_v60  ;;  %1048 = vrot.lane.b32.xlu2 %v4401_v14, %s3806_s28  ;;  %v8288_v60 = vld [vmem:[#allocation80_spill] sm:$0xff] }
 0x191   : > { %1046 = vrot.lane.b32.xlu1 %v4383_v15, %s3806_s28  ;;  %v4854_v44 = vpop.permute.xlu2 %945  ;;  %v8291_v15 = vld [vmem:[#allocation83_spill] sm:$0xff] }
 0x192   : > { %8284 = vst [vmem:[#allocation171_spill] sm:$0xff] %v4854_v44 }
 0x193   : > { %v4856_v31 = vpop.permute.xlu1 %925 }
 0x194   : > { %8285 = vst [vmem:[#allocation172_spill] sm:$0xff] %v4856_v31  ;;  %1050 = vrot.lane.b32.xlu0 %v8286_v20, %s3806_s28 }
 0x196   : > { %v4860_v9 = vpop.permute.xlu0 %929 }
 0x197   : > { %8287 = vst [vmem:[#allocation77_spill] sm:$0xff] %v4860_v9  ;;  %1054 = vrot.lane.b32.xlu2 %v4427_v19, %s3806_s28 }
 0x199   : > { %1052 = vrot.lane.b32.xlu1 %v8288_v60, %s3806_s28  ;;  %v4866_v4 = vpop.permute.xlu2 %951 }
 0x19a   : > { %8289 = vst [vmem:[#allocation80_spill] sm:$0xff] %v4866_v4 }
 0x19b   : > { %v4868_v14 = vpop.permute.xlu1 %931 }
 0x19c   : > { %8290 = vst [vmem:[#allocation173_spill] sm:$0xff] %v4868_v14  ;;  %1056 = vrot.lane.b32.xlu0 %v8291_v15, %s3806_s28 }
 0x19e   : > { %v4872_v44 = vpop.permute.xlu0 %935 }
 0x19f   : > { %8292 = vst [vmem:[#allocation83_spill] sm:$0xff] %v4872_v44  ;;  %1060 = vrot.lane.b32.xlu2 %v4452_v30, %s3806_s28  ;;  %v8296_v44 = vld [vmem:[#allocation90_spill] sm:$0xff] }
 0x1a1   : > { %1058 = vrot.lane.b32.xlu1 %v4434_v36, %s3806_s28  ;;  %v4878_v9 = vpop.permute.xlu2 %957 }
 0x1a2   : > { %8293 = vst [vmem:[#allocation174_spill] sm:$0xff] %v4878_v9  ;;  %v1010_v9 = vrot.slane %v4634_v43, 2 }
 0x1a3   : > { %v4880_v31 = vpop.permute.xlu1 %937 }
 0x1a4   : > { %8294 = vst [vmem:[#allocation175_spill] sm:$0xff] %v4880_v31  ;;  %1062 = vrot.lane.b32.xlu0 %v4446_v26, %s3806_s28  ;;  %v1009_v31 = vrot.slane %v4622_v62, 2 }
 0x1a6   : > { %v4884_v4 = vpop.permute.xlu0 %941 }
 0x1a7   : > { %8295 = vst [vmem:[#allocation176_spill] sm:$0xff] %v4884_v4  ;;  %1066 = vrot.lane.b32.xlu2 %v4478_v10, %s3806_s28  ;;  %v4905_v4 = vsel %vm633_vm2, %v1009_v31, %v1010_v9 }
 0x1a9   : > { %1064 = vrot.lane.b32.xlu1 %v8296_v44, %s3806_s28  ;;  %v4890_v14 = vpop.permute.xlu2 %963 }
 0x1aa   : > { %8297 = vst [vmem:[#allocation90_spill] sm:$0xff] %v4890_v14 }
 0x1ab   : > { %v4892_v30 = vpop.permute.xlu1 %943 }
 0x1ac   : > { %8298 = vst [vmem:[#allocation177_spill] sm:$0xff] %v4892_v30  ;;  %1068 = vrot.lane.b32.xlu0 %v4471_v2, %s3806_s28  ;;  %v1012_v30 = vrot.slane %v4755_v39, 2 }
 0x1ae   : > { %v4898_v26 = vpop.permute.xlu0 %947 }
 0x1af   : > { %8299 = vst [vmem:[#allocation178_spill] sm:$0xff] %v4898_v26  ;;  %1072 = vrot.lane.b32.xlu2 %v4497_v6, %s3806_s28  ;;  %v4917_v26 = vsel %vm633_vm2, %v1010_v9, %v1012_v30 }
 0x1b1   : > { %1070 = vrot.lane.b32.xlu1 %v4485_v52, %s3806_s28  ;;  %v4907_v14 = vpop.permute.xlu2 %969 }
 0x1b2   : > { %8300 = vst [vmem:[#allocation179_spill] sm:$0xff] %v4907_v14 }
 0x1b3   : > { %v4910_v10 = vpop.permute.xlu1 %949 }
 0x1b4   : > { %1074 = vrot.lane.b32.xlu0 %v4905_v4, %s3806_s28 }
 0x1b6   : > { %v4914_v2 = vpop.permute.xlu0 %953 }
 0x1b7   : > { %8301 = vst [vmem:[#allocation180_spill] sm:$0xff] %v4914_v2  ;;  %1110 = vrot.lane.b32.xlu2 %v3903_v25, %s3807_s29 }
 0x1b9   : > { %1076 = vrot.lane.b32.xlu1 %v4917_v26, %s3806_s28  ;;  %v4923_v31 = vpop.permute.xlu2 %975 }
 0x1ba   : > { %8302 = vst [vmem:[#allocation181_spill] sm:$0xff] %v4923_v31 }
 0x1bb   : > { %v4925_v39 = vpop.permute.xlu1 %955 }
 0x1bc   : > { %8303 = vst [vmem:[#allocation182_spill] sm:$0xff] %v4925_v39  ;;  %1112 = vrot.lane.b32.xlu0 %v3894_v22, %s3807_s29 }
 0x1be   : > { %v4929_v14 = vpop.permute.xlu0 %959 }
 0x1bf   : > { %8304 = vst [vmem:[#allocation183_spill] sm:$0xff] %v4929_v14  ;;  %1116 = vrot.lane.b32.xlu2 %v3917_v33, %s3807_s29 }
 0x1c1   : > { %1114 = vrot.lane.b32.xlu1 %v3923_v35, %s3807_s29  ;;  %v4935_v30 = vpop.permute.xlu2 %1018 }
 0x1c3   : > { %v4937_v9 = vpop.permute.xlu1 %961 }
 0x1c4   : > { %8305 = vst [vmem:[#allocation184_spill] sm:$0xff] %v4937_v9  ;;  %1118 = vrot.lane.b32.xlu0 %v3962_v56, %s3807_s29 }
 0x1c6   : > { %v4941_v31 = vpop.permute.xlu0 %965 }
 0x1c7   : > { %8306 = vst [vmem:[#allocation185_spill] sm:$0xff] %v4941_v31  ;;  %1122 = vrot.lane.b32.xlu2 %v3979_v0, %s3807_s29 }
 0x1c9   : > { %1120 = vrot.lane.b32.xlu1 %v3955_v51, %s3807_s29  ;;  %v4947_v14 = vpop.permute.xlu2 %1024  ;;  %v8353_v51 = vld [vmem:[#allocation39_spill] sm:$0xff] }
 0x1cb   : > { %v4949_v39 = vpop.permute.xlu1 %967 }
 0x1cc   : > { %8307 = vst [vmem:[#allocation186_spill] sm:$0xff] %v4949_v39  ;;  %1124 = vrot.lane.b32.xlu0 %v3976_v63, %s3807_s29 }
 0x1ce   : > { %v4953_v2 = vpop.permute.xlu0 %971 }
 0x1cf   : > { %8308 = vst [vmem:[#allocation187_spill] sm:$0xff] %v4953_v2  ;;  %1128 = vrot.lane.b32.xlu2 %v3992_v11, %s3807_s29 }
 0x1d1   : > { %1126 = vrot.lane.b32.xlu1 %v3995_v13, %s3807_s29  ;;  %v4959_v31 = vpop.permute.xlu2 %1030 }
 0x1d3   : > { %v4961_v9 = vpop.permute.xlu1 %973 }
 0x1d4   : > { %8309 = vst [vmem:[#allocation188_spill] sm:$0xff] %v4961_v9  ;;  %1130 = vrot.lane.b32.xlu0 %v4024_v37, %s3807_s29 }
 0x1d6   : > { %v4965_v0 = vpop.permute.xlu0 %1014 }
 0x1d7   : > { %1134 = vrot.lane.b32.xlu2 %v4051_v59, %s3807_s29 }
 0x1d9   : > { %1132 = vrot.lane.b32.xlu1 %v4030_v42, %s3807_s29  ;;  %v4971_v2 = vpop.permute.xlu2 %1036 }
 0x1da   : > { %8310 = vst [vmem:[#allocation189_spill] sm:$0xff] %v4971_v2 }
 0x1db   : > { %v4973_v39 = vpop.permute.xlu1 %1016 }
 0x1dc   : > { %1136 = vrot.lane.b32.xlu0 %v4048_v57, %s3807_s29 }
 0x1de   : > { %v4977_v11 = vpop.permute.xlu0 %1020 }
 0x1df   : > { %1140 = vrot.lane.b32.xlu2 %v4065_v16, %s3807_s29 }
 0x1e1   : > { %1138 = vrot.lane.b32.xlu1 %v4068_v18, %s3807_s29  ;;  %v4983_v9 = vpop.permute.xlu2 %1042 }
 0x1e2   : > { %8311 = vst [vmem:[#allocation190_spill] sm:$0xff] %v4983_v9 }
 0x1e3   : > { %v4985_v59 = vpop.permute.xlu1 %1022 }
 0x1e4   : > { %1142 = vrot.lane.b32.xlu0 %v4106_v8, %s3807_s29 }
 0x1e6   : > { %v4989_v42 = vpop.permute.xlu0 %1026 }
 0x1e7   : > { %1146 = vrot.lane.b32.xlu2 %v4123_v46, %s3807_s29 }
 0x1e9   : > { %1144 = vrot.lane.b32.xlu1 %v4096_v55, %s3807_s29  ;;  %v4995_v37 = vpop.permute.xlu2 %1048 }
 0x1eb   : > { %v4997_v13 = vpop.permute.xlu1 %1028 }
 0x1ec   : > { %1148 = vrot.lane.b32.xlu0 %v4120_v40, %s3807_s29 }
 0x1ee   : > { %v5001_v9 = vpop.permute.xlu0 %1032 }
 0x1ef   : > { %8312 = vst [vmem:[#allocation191_spill] sm:$0xff] %v5001_v9  ;;  %1152 = vrot.lane.b32.xlu2 %v4142_v61, %s3807_s29 }
 0x1f1   : > { %1150 = vrot.lane.b32.xlu1 %v4133_v54, %s3807_s29  ;;  %v5007_v2 = vpop.permute.xlu2 %1054 }
 0x1f2   : > { %8313 = vst [vmem:[#allocation192_spill] sm:$0xff] %v5007_v2 }
 0x1f3   : > { %v5009_v63 = vpop.permute.xlu1 %1034 }
 0x1f4   : > { %8314 = vst [vmem:[#allocation193_spill] sm:$0xff] %v5009_v63  ;;  %1154 = vrot.lane.b32.xlu0 %v4177_v47, %s3807_s29 }
 0x1f6   : > { %v5013_v46 = vpop.permute.xlu0 %1038 }
 0x1f7   : > { %8315 = vst [vmem:[#allocation194_spill] sm:$0xff] %v5013_v46  ;;  %1158 = vrot.lane.b32.xlu2 %v4195_v50, %s3807_s29 }
 0x1f9   : > { %1156 = vrot.lane.b32.xlu1 %v4171_v32, %s3807_s29  ;;  %v5019_v40 = vpop.permute.xlu2 %1060  ;;  %v8321_v32 = vld [vmem:[#allocation3_spill] sm:$0xff] }
 0x1fa   : > { %8316 = vst [vmem:[#allocation195_spill] sm:$0xff] %v5019_v40 }
 0x1fb   : > { %v5021_v61 = vpop.permute.xlu1 %1040 }
 0x1fc   : > { %8317 = vst [vmem:[#allocation196_spill] sm:$0xff] %v5021_v61  ;;  %1160 = vrot.lane.b32.xlu0 %v4192_v53, %s3807_s29  ;;  %v8322_v61 = vld [vmem:[#allocation2_spill] sm:$0xff] }
 0x1fd   : > { %v5039_v46 = vpack.i.bf16 %v8322_v61, %v8321_v32 }
 0x1fe   : > { %v5025_v54 = vpop.permute.xlu0 %1044 }
 0x1ff   : > { %8318 = vst [vmem:[#allocation197_spill] sm:$0xff] %v5025_v54  ;;  %1164 = vrot.lane.b32.xlu2 %v4208_v58, %s3807_s29 }
 0x200   : > { %8323 = vst [vmem:[#allocation200_spill] sm:$0xff] %v5039_v46 }
 0x201   : > { %1162 = vrot.lane.b32.xlu1 %v4211_v12, %s3807_s29  ;;  %v5031_v47 = vpop.permute.xlu2 %1066 }
 0x202   : > { %8319 = vst [vmem:[#allocation198_spill] sm:$0xff] %v5031_v47  ;;  %v8330_v47 = vld [vmem:[#allocation14_spill] sm:$0xff] }
 0x203   : > { %v5033_v50 = vpop.permute.xlu1 %1046 }
 0x204   : > { %8320 = vst [vmem:[#allocation199_spill] sm:$0xff] %v5033_v50  ;;  %1166 = vrot.lane.b32.xlu0 %v4622_v62, %s3807_s29  ;;  %v8326_v50 = vld [vmem:[#allocation9_spill] sm:$0xff] }
 0x206   : > { %v5041_v53 = vpop.permute.xlu0 %1050 }
 0x207   : > { %3762 = vrot.lane.b32.xlu2 %v5039_v46, %s3807_s29 }
 0x209   : > { %1168 = vrot.lane.b32.xlu1 %v4634_v43, %s3807_s29  ;;  %v5047_v58 = vpop.permute.xlu2 %1072  ;;  %v8328_v43 = vld [vmem:[#allocation11_spill] sm:$0xff] }
 0x20a   : > { %8324 = vst [vmem:[#allocation201_spill] sm:$0xff] %v5047_v58 }
 0x20b   : > { %v5049_v12 = vpop.permute.xlu1 %1052 }
 0x20c   : > { %1206 = vrot.lane.b32.xlu0 %v3951_v49, %s3808_s30  ;;  %v8331_v49 = vld [vmem:[#allocation15_spill] sm:$0xff] }
 0x20e   : > { %v5053_v62 = vpop.permute.xlu0 %1056 }
 0x20f   : > { %8325 = vst [vmem:[#allocation202_spill] sm:$0xff] %v5053_v62  ;;  %1210 = vrot.lane.b32.xlu2 %v3948_v48, %s3808_s30 }
 0x211   : > { %1208 = vrot.lane.b32.xlu1 %v8326_v50, %s3808_s30  ;;  %v5059_v46 = vpop.permute.xlu2 %1110  ;;  %v8333_v50 = vld [vmem:[#allocation18_spill] sm:$0xff] }
 0x213   : > { %v5061_v54 = vpop.permute.xlu1 %1058 }
 0x214   : > { %8327 = vst [vmem:[#allocation9_spill] sm:$0xff] %v5061_v54  ;;  %1212 = vrot.lane.b32.xlu0 %v8328_v43, %s3808_s30  ;;  %v8335_v54 = vld [vmem:[#allocation19_spill] sm:$0xff]  ;;  %v8336_v43 = vld [vmem:[#allocation21_spill] sm:$0xff] }
 0x216   : > { %v5065_v58 = vpop.permute.xlu0 %1062 }
 0x217   : > { %8329 = vst [vmem:[#allocation11_spill] sm:$0xff] %v5065_v58  ;;  %1216 = vrot.lane.b32.xlu2 %v8330_v47, %s3808_s30 }
 0x219   : > { %1214 = vrot.lane.b32.xlu1 %v8331_v49, %s3808_s30  ;;  %v5071_v40 = vpop.permute.xlu2 %1116  ;;  %v8338_v49 = vld [vmem:[#allocation23_spill] sm:$0xff] }
 0x21b   : > { %v5073_v48 = vpop.permute.xlu1 %1064 }
 0x21c   : > { %8332 = vst [vmem:[#allocation14_spill] sm:$0xff] %v5073_v48  ;;  %1218 = vrot.lane.b32.xlu0 %v8333_v50, %s3808_s30  ;;  %v8340_v48 = vld [vmem:[#allocation25_spill] sm:$0xff]  ;;  %v8341_v50 = vld [vmem:[#allocation26_spill] sm:$0xff] }
 0x21e   : > { %v5077_v63 = vpop.permute.xlu0 %1068 }
 0x21f   : > { %8334 = vst [vmem:[#allocation15_spill] sm:$0xff] %v5077_v63  ;;  %1222 = vrot.lane.b32.xlu2 %v8335_v54, %s3808_s30 }
 0x221   : > { %1220 = vrot.lane.b32.xlu1 %v8336_v43, %s3808_s30  ;;  %v5083_v58 = vpop.permute.xlu2 %1122  ;;  %v8344_v43 = vld [vmem:[#allocation27_spill] sm:$0xff] }
 0x223   : > { %v5085_v47 = vpop.permute.xlu1 %1070 }
 0x224   : > { %8337 = vst [vmem:[#allocation18_spill] sm:$0xff] %v5085_v47  ;;  %1224 = vrot.lane.b32.xlu0 %v8338_v49, %s3808_s30  ;;  %v8345_v47 = vld [vmem:[#allocation28_spill] sm:$0xff]  ;;  %v8346_v49 = vld [vmem:[#allocation30_spill] sm:$0xff] }
 0x226   : > { %v5089_v62 = vpop.permute.xlu0 %1074 }
 0x227   : > { %8339 = vst [vmem:[#allocation19_spill] sm:$0xff] %v5089_v62  ;;  %1228 = vrot.lane.b32.xlu2 %v8340_v48, %s3808_s30 }
 0x229   : > { %1226 = vrot.lane.b32.xlu1 %v8341_v50, %s3808_s30  ;;  %v5095_v63 = vpop.permute.xlu2 %1128  ;;  %v8348_v50 = vld [vmem:[#allocation31_spill] sm:$0xff] }
 0x22a   : > { %8342 = vst [vmem:[#allocation21_spill] sm:$0xff] %v5095_v63 }
 0x22b   : > { %v5097_v54 = vpop.permute.xlu1 %1076 }
 0x22c   : > { %8343 = vst [vmem:[#allocation23_spill] sm:$0xff] %v5097_v54  ;;  %1230 = vrot.lane.b32.xlu0 %v8344_v43, %s3808_s30  ;;  %v8349_v54 = vld [vmem:[#allocation34_spill] sm:$0xff]  ;;  %v8350_v43 = vld [vmem:[#allocation36_spill] sm:$0xff] }
 0x22e   : > { %v5101_v9 = vpop.permute.xlu0 %1112 }
 0x22f   : > { %1234 = vrot.lane.b32.xlu2 %v8345_v47, %s3808_s30 }
 0x231   : > { %1232 = vrot.lane.b32.xlu1 %v8346_v49, %s3808_s30  ;;  %v5107_v62 = vpop.permute.xlu2 %1134  ;;  %v8352_v49 = vld [vmem:[#allocation38_spill] sm:$0xff] }
 0x232   : > { %8347 = vst [vmem:[#allocation25_spill] sm:$0xff] %v5107_v62 }
 0x233   : > { %v5109_v48 = vpop.permute.xlu1 %1114 }
 0x234   : > { %1236 = vrot.lane.b32.xlu0 %v8348_v50, %s3808_s30 }
 0x236   : > { %v5113_v63 = vpop.permute.xlu0 %1118 }
 0x237   : > { %1240 = vrot.lane.b32.xlu2 %v8349_v54, %s3808_s30 }
 0x239   : > { %1238 = vrot.lane.b32.xlu1 %v8350_v43, %s3808_s30  ;;  %v5119_v55 = vpop.permute.xlu2 %1140  ;;  %v8354_v43 = vld [vmem:[#allocation43_spill] sm:$0xff] }
 0x23a   : > { %8351 = vst [vmem:[#allocation26_spill] sm:$0xff] %v5119_v55 }
 0x23b   : > { %v5121_v47 = vpop.permute.xlu1 %1120 }
 0x23c   : > { %1242 = vrot.lane.b32.xlu0 %v8352_v49, %s3808_s30 }
 0x23e   : > { %v5125_v62 = vpop.permute.xlu0 %1124 }
 0x23f   : > { %1246 = vrot.lane.b32.xlu2 %v8353_v51, %s3808_s30 }
 0x241   : > { %1244 = vrot.lane.b32.xlu1 %v8244_v3, %s3808_s30  ;;  %v5131_v50 = vpop.permute.xlu2 %1146  ;;  %v8358_v3 = vld [vmem:[#allocation50_spill] sm:$0xff] }
 0x243   : > { %v5133_v54 = vpop.permute.xlu1 %1126 }
 0x244   : > { %1248 = vrot.lane.b32.xlu0 %v8354_v43, %s3808_s30  ;;  %v8360_v43 = vld [vmem:[#allocation51_spill] sm:$0xff] }
 0x246   : > { %v5137_v55 = vpop.permute.xlu0 %1130 }
 0x247   : > { %8355 = vst [vmem:[#allocation27_spill] sm:$0xff] %v5137_v55  ;;  %1252 = vrot.lane.b32.xlu2 %v8249_v27, %s3808_s30 }
 0x249   : > { %1250 = vrot.lane.b32.xlu1 %v8250_v21, %s3808_s30  ;;  %v5143_v49 = vpop.permute.xlu2 %1152 }
 0x24a   : > { %8356 = vst [vmem:[#allocation28_spill] sm:$0xff] %v5143_v49 }
 0x24b   : > { %v5145_v51 = vpop.permute.xlu1 %1132 }
 0x24c   : > { %8357 = vst [vmem:[#allocation30_spill] sm:$0xff] %v5145_v51  ;;  %1254 = vrot.lane.b32.xlu0 %v8358_v3, %s3808_s30  ;;  %v8402_v51 = vld [vmem:[#allocation66_spill] sm:$0xff] }
 0x24e   : > { %v5149_v2 = vpop.permute.xlu0 %1136 }
 0x24f   : > { %8359 = vst [vmem:[#allocation31_spill] sm:$0xff] %v5149_v2  ;;  %1258 = vrot.lane.b32.xlu2 %v4232_v17, %s3808_s30 }
 0x251   : > { %1256 = vrot.lane.b32.xlu1 %v8360_v43, %s3808_s30  ;;  %v5155_v55 = vpop.permute.xlu2 %1158  ;;  %v8365_v43 = vld [vmem:[#allocation6_spill] sm:$0xff] }
 0x252   : > { %8361 = vst [vmem:[#allocation34_spill] sm:$0xff] %v5155_v55 }
 0x253   : > { %v5157_v27 = vpop.permute.xlu1 %1138 }
 0x254   : > { %8362 = vst [vmem:[#allocation36_spill] sm:$0xff] %v5157_v27  ;;  %1260 = vrot.lane.b32.xlu0 %v4246_v41, %s3808_s30 }
 0x256   : > { %v5161_v21 = vpop.permute.xlu0 %1142 }
 0x257   : > { %8363 = vst [vmem:[#allocation38_spill] sm:$0xff] %v5161_v21  ;;  %1264 = vrot.lane.b32.xlu2 %v4771_v28, %s3808_s30  ;;  %v8368_v21 = vld [vmem:[#allocation58_spill] sm:$0xff] }
 0x259   : > { %1262 = vrot.lane.b32.xlu1 %v4776_v7, %s3808_s30  ;;  %v5167_v3 = vpop.permute.xlu2 %1164 }
 0x25a   : > { %8364 = vst [vmem:[#allocation39_spill] sm:$0xff] %v5167_v3 }
 0x25b   : > { %v5169_v17 = vpop.permute.xlu1 %1144 }
 0x25c   : > { %3767 = vrot.lane.b32.xlu0 %v8365_v43, %s3808_s30 }
 0x25e   : > { %v5173_v2 = vpop.permute.xlu0 %1148 }
 0x25f   : > { %1304 = vrot.lane.b32.xlu2 %v8263_v45, %s3809_s6 }
 0x261   : > { %1302 = vrot.lane.b32.xlu1 %v4284_v5, %s3809_s6  ;;  %v5179_v41 = vpop.permute.xlu2 %3762  ;;  %v8370_v5 = vld [vmem:[#allocation59_spill] sm:$0xff] }
 0x262   : > { %8366 = vst [vmem:[#allocation43_spill] sm:$0xff] %v5179_v41 }
 0x263   : > { %v5181_v28 = vpop.permute.xlu1 %1150 }
 0x264   : > { %1306 = vrot.lane.b32.xlu0 %v4291_v23, %s3809_s6  ;;  %v8372_v23 = vld [vmem:[#allocation62_spill] sm:$0xff] }
 0x266   : > { %v5185_v7 = vpop.permute.xlu0 %1154 }
 0x267   : > { %8367 = vst [vmem:[#allocation50_spill] sm:$0xff] %v5185_v7  ;;  %1310 = vrot.lane.b32.xlu2 %v8267_v34, %s3809_s6  ;;  %v8374_v34 = vld [vmem:[#allocation63_spill] sm:$0xff]  ;;  %v3754_v7 = vunpack.i.l.bf16 %v8402_v51 }
 0x269   : > { %1308 = vrot.lane.b32.xlu1 %v8368_v21, %s3809_s6  ;;  %v5193_v45 = vpop.permute.xlu2 %1210 }
 0x26b   : > { %v5191_v43 = vpop.permute.xlu1 %1156 }
 0x26c   : > { %8369 = vst [vmem:[#allocation51_spill] sm:$0xff] %v5191_v43  ;;  %1312 = vrot.lane.b32.xlu0 %v8370_v5, %s3809_s6  ;;  %v8376_v5 = vld [vmem:[#allocation67_spill] sm:$0xff] }
 0x26e   : > { %v5197_v41 = vpop.permute.xlu0 %1160 }
 0x26f   : > { %8371 = vst [vmem:[#allocation58_spill] sm:$0xff] %v5197_v41  ;;  %1316 = vrot.lane.b32.xlu2 %v8272_v29, %s3809_s6 }
 0x271   : > { %1314 = vrot.lane.b32.xlu1 %v8372_v23, %s3809_s6  ;;  %v5207_v21 = vpop.permute.xlu2 %1216 }
 0x273   : > { %v5203_v3 = vpop.permute.xlu1 %1162 }
 0x274   : > { %8373 = vst [vmem:[#allocation59_spill] sm:$0xff] %v5203_v3  ;;  %1318 = vrot.lane.b32.xlu0 %v8374_v34, %s3809_s6  ;;  %v8378_v34 = vld [vmem:[#allocation73_spill] sm:$0xff] }
 0x276   : > { %v5209_v27 = vpop.permute.xlu0 %1166 }
 0x277   : > { %8375 = vst [vmem:[#allocation62_spill] sm:$0xff] %v5209_v27  ;;  %1322 = vrot.lane.b32.xlu2 %v8277_v24, %s3809_s6  ;;  %v8379_v24 = vld [vmem:[#allocation74_spill] sm:$0xff] }
 0x279   : > { %1320 = vrot.lane.b32.xlu1 %v8376_v5, %s3809_s6  ;;  %v5221_v23 = vpop.permute.xlu2 %1222 }
 0x27b   : > { %v5215_v41 = vpop.permute.xlu1 %1168 }
 0x27c   : > { %8377 = vst [vmem:[#allocation63_spill] sm:$0xff] %v5215_v41  ;;  %1324 = vrot.lane.b32.xlu0 %v8279_v1, %s3809_s6  ;;  %v8380_v1 = vld [vmem:[#allocation79_spill] sm:$0xff] }
 0x27e   : > { %v5219_v29 = vpop.permute.xlu0 %1206 }
 0x27f   : > { %1328 = vrot.lane.b32.xlu2 %v8282_v38, %s3809_s6 }
 0x281   : > { %1326 = vrot.lane.b32.xlu1 %v8378_v34, %s3809_s6  ;;  %v5237_v41 = vpop.permute.xlu2 %1228 }
 0x282   : > { %8381 = vst [vmem:[#allocation67_spill] sm:$0xff] %v5237_v41 }
 0x283   : > { %v5227_v27 = vpop.permute.xlu1 %1208 }
 0x284   : > { %1330 = vrot.lane.b32.xlu0 %v8379_v24, %s3809_s6 }
 0x286   : > { %v5231_v5 = vpop.permute.xlu0 %1212 }
 0x287   : > { %1334 = vrot.lane.b32.xlu2 %v8286_v20, %s3809_s6 }
 0x289   : > { %1332 = vrot.lane.b32.xlu1 %v8380_v1, %s3809_s6  ;;  %v5251_v20 = vpop.permute.xlu2 %1234  ;;  %v8384_v1 = vld [vmem:[#allocation87_spill] sm:$0xff] }
 0x28a   : > { %8382 = vst [vmem:[#allocation73_spill] sm:$0xff] %v5251_v20  ;;  %v8388_v20 = vld [vmem:[#allocation93_spill] sm:$0xff] }
 0x28b   : > { %v5239_v3 = vpop.permute.xlu1 %1214 }
 0x28c   : > { %1336 = vrot.lane.b32.xlu0 %v8288_v60, %s3809_s6  ;;  %v8385_v60 = vld [vmem:[#allocation89_spill] sm:$0xff] }
 0x28e   : > { %v5243_v38 = vpop.permute.xlu0 %1218 }
 0x28f   : > { %1340 = vrot.lane.b32.xlu2 %v8291_v15, %s3809_s6 }
 0x291   : > { %1338 = vrot.lane.b32.xlu1 %v4427_v19, %s3809_s6  ;;  %v5265_v15 = vpop.permute.xlu2 %1240 }
 0x293   : > { %v5249_v34 = vpop.permute.xlu1 %1220 }
 0x294   : > { %1342 = vrot.lane.b32.xlu0 %v4434_v36, %s3809_s6  ;;  %v8389_v36 = vld [vmem:[#allocation95_spill] sm:$0xff] }
 0x296   : > { %v5255_v24 = vpop.permute.xlu0 %1224 }
 0x297   : > { %8383 = vst [vmem:[#allocation74_spill] sm:$0xff] %v5255_v24  ;;  %1346 = vrot.lane.b32.xlu2 %v8384_v1, %s3809_s6 }
 0x299   : > { %1344 = vrot.lane.b32.xlu1 %v8385_v60, %s3809_s6  ;;  %v5279_v60 = vpop.permute.xlu2 %1246 }
 0x29b   : > { %v5261_v55 = vpop.permute.xlu1 %1226 }
 0x29c   : > { %8386 = vst [vmem:[#allocation79_spill] sm:$0xff] %v5261_v55  ;;  %1348 = vrot.lane.b32.xlu0 %v8296_v44, %s3809_s6  ;;  %v8403_v55 = vld [vmem:[#allocation112_spill] sm:$0xff] }
 0x29e   : > { %v5267_v19 = vpop.permute.xlu0 %1230 }
 0x29f   : > { %8387 = vst [vmem:[#allocation87_spill] sm:$0xff] %v5267_v19  ;;  %1352 = vrot.lane.b32.xlu2 %v8388_v20, %s3809_s6  ;;  %v1666_v20 = vld [vmem:[%s7828_s1 + $0x20] sm:$0xf] }
 0x2a0   : > { %3647 = vmatpush.msk.msra.mxu0 %vm1768_vm3, %v1666_v20  ;;  %3716 = vmatpush.msk.msra.mxu3 %vm1768_vm3, %v1666_v20 }
 0x2a1   : > { %1350 = vrot.lane.b32.xlu1 %v8389_v36, %s3809_s6  ;;  %v1663_v36 = vld [vmem:[%s7828_s1 + $0x8] sm:$0xff] }
 0x2a3   : > { %v5273_v43 = vpop.permute.xlu1 %1232 }
 0x2a4   : > { %8390 = vst [vmem:[#allocation89_spill] sm:$0xff] %v5273_v43  ;;  %1354 = vrot.lane.b32.xlu0 %v4485_v52, %s3809_s6  ;;  %v1665_v52 = vld [vmem:[%s7828_s1 + $0x18] sm:$0xff] }
 0x2a5   : > { %1784 = vmatpush.msra.mxu0 %v1665_v52  ;;  %3717 = vmatpush.msra.mxu3 %v1665_v52 }
 0x2a6   : > { %v5277_v1 = vpop.permute.xlu0 %1236 }
 0x2a7   : > { %8391 = vst [vmem:[#allocation93_spill] sm:$0xff] %v5277_v1  ;;  %1358 = vrot.lane.b32.xlu2 %v4905_v4, %s3809_s6  ;;  %v1662_v1 = vld [vmem:[%s7828_s1] sm:$0xff] }
 0x2a9   : > { %1356 = vrot.lane.b32.xlu1 %v4497_v6, %s3809_s6  ;;  %v1664_v6 = vld [vmem:[%s7828_s1 + $0x10] sm:$0xff] }
 0x2aa   : > { %1785 = vmatpush.msra.mxu0 %v1664_v6  ;;  %3718 = vmatpush.msra.mxu3 %v1664_v6 }
 0x2ab   : > { %v5285_v44 = vpop.permute.xlu1 %1238 }
 0x2ac   : > { %8392 = vst [vmem:[#allocation95_spill] sm:$0xff] %v5285_v44  ;;  %1360 = vrot.lane.b32.xlu0 %v4917_v26, %s3809_s6  ;;  %v8393_v26 = vld [vmem:[#allocation54_spill] sm:$0xff]  ;;  %v5305_v44 = vpop.permute.xlu2 %1252  ;;  %1786 = vmatpush.msra.mxu0 %v1663_v36 }
 0x2ad   : > { %8394 = vst [vmem:[#allocation203_spill] sm:$0xff] %v5305_v44  ;;  %3719 = vmatpush.msra.mxu3 %v1663_v36  ;;  %v3759_v36 = vunpack.i.l.bf16 %v8403_v55 }
 0x2ae   : > { %v5295_v4 = vpop.permute.xlu0 %1242  ;;  %1787 = vmatpush.msra.mxu0 %v1662_v1 }
 0x2af   : > { %3720 = vmatpush.msra.mxu3 %v1662_v1  ;;  %v1399_v1 = vsel %vm1398_vm4, %v8321_v32, %v3754_v7  ;;  %v3760_v7 = vunpack.i.h.bf16 %v8403_v55 }
 0x2b1   : > { %3772 = vrot.lane.b32.xlu1 %v8393_v26, %s3809_s6 }
 0x2b3   : > { %v5307_v20 = vpop.permute.xlu1 %1244 }
 0x2b4   : > { %v5316_v19 = vpop.permute.xlu2 %1258 }
 0x2b5   : > { %8397 = vst [vmem:[#allocation206_spill] sm:$0xff] %v5316_v19  ;;  %v1432_v19 = vsel %vm1431_vm6, %v1399_v1, %v3759_v36 }
 0x2b6   : > { %v5312_v43 = vpop.permute.xlu0 %1248 }
 0x2b7   : > { %8395 = vst [vmem:[#allocation204_spill] sm:$0xff] %v5312_v43  ;;  %v3755_v43 = vunpack.i.h.bf16 %v8402_v51 }
 0x2b9   : > { %v1400_v51 = vsel %vm1398_vm4, %v8322_v61, %v3755_v43 }
 0x2bb   : > { %v5314_v52 = vpop.permute.xlu1 %1250 }
 0x2bc   : > { %8396 = vst [vmem:[#allocation205_spill] sm:$0xff] %v5314_v52  ;;  %v5322_v44 = vpop.permute.xlu2 %1264 }
 0x2bd   : > { %8400 = vst [vmem:[#allocation209_spill] sm:$0xff] %v5322_v44 }
 0x2be   : > { %v5318_v26 = vpop.permute.xlu0 %1254 }
 0x2bf   : > { %8398 = vst [vmem:[#allocation207_spill] sm:$0xff] %v5318_v26 }
 0x2c3   : > { %v5320_v6 = vpop.permute.xlu1 %1256 }
 0x2c4   : > { %8399 = vst [vmem:[#allocation208_spill] sm:$0xff] %v5320_v6  ;;  %v8405_v6 = vld [vmem:[#allocation132_spill] sm:$0xff] }
 0x2c5   : > { %v1465_v44 = vsel %vm1464_vm5, %v1432_v19, %v8405_v6 }
 0x2c6   : > { %v5324_v41 = vpop.permute.xlu0 %1260 }
 0x2c7   : > { %8401 = vst [vmem:[#allocation210_spill] sm:$0xff] %v5324_v41  ;;  %v8406_v41 = vld [vmem:[#allocation169_spill] sm:$0xff] }
 0x2c8   : > { %v1498_v52 = vsel %vm1497_vm7, %v1465_v44, %v8406_v41  ;;  %v8407_v44 = vld [vmem:[#allocation143_spill] sm:$0xff] }
 0x2c9   : > { %v1531_v24 = vsel %vm1530_vm9, %v1498_v52, %v4965_v0  ;;  %v1433_v0 = vsel %vm1431_vm6, %v1400_v51, %v3760_v7 }
 0x2ca   : > { %v1564_v36 = vsel %vm1563_vm8, %v1531_v24, %v5059_v46  ;;  %v1466_v46 = vsel %vm1464_vm5, %v1433_v0, %v8407_v44  ;;  %v8408_v24 = vld [vmem:[#allocation162_spill] sm:$0xff] }
 0x2cb   : > { %v5328_v49 = vpop.permute.xlu1 %1262  ;;  %v1597_v19 = vsel %vm1596_vm10, %v1564_v36, %v5219_v29  ;;  %v1499_v52 = vsel %vm1497_vm7, %v1466_v46, %v8408_v24  ;;  %v8411_v0 = vld [vmem:[#allocation102_spill] sm:$0xff]  ;;  %v8412_v46 = vld [vmem:[#allocation145_spill] sm:$0xff] }
 0x2cc   : > { %8404 = vst [vmem:[#allocation66_spill] sm:$0xff] %v5328_v49  ;;  %v1305_v49 = vpop.permute.xlu2 %1304  ;;  %v1532_v29 = vsel %vm1530_vm9, %v1499_v52, %v4973_v39  ;;  %v8413_v24 = vld [vmem:[#allocation65_spill] sm:$0xff] }
 0x2cd   : > { %v1565_v1 = vsel %vm1563_vm8, %v1532_v29, %v5101_v9 }
 0x2ce   : > { %v5333_v26 = vpop.permute.xlu0 %3767  ;;  %v1598_v43 = vsel %vm1596_vm10, %v1565_v1, %v5227_v27 }
 0x2cf   : > { %v1631_v7 = vsel %vm1629_vm12, %v1598_v43, %v1305_v49 }
 0x2d3   : > { %v1303_v6 = vpop.permute.xlu1 %1302 }
 0x2d4   : > { %v1630_v41 = vsel %vm1629_vm12, %v1597_v19, %v1303_v6  ;;  %v1311_v36 = vpop.permute.xlu2 %1310  ;;  %v8409_v6 = vld [vmem:[#allocation72_spill] sm:$0xff] }
 0x2d5   : > { %3648 = vmatmul.msk.f32.vlgmr.msra.gmra.mxu0 %vm1671_vm11, %v1630_v41  ;;  %v8410_v41 = vld [vmem:[#allocation7_spill] sm:$0xff] }
 0x2d6   : > { %v1307_v55 = vpop.permute.xlu0 %1306  ;;  %v1401_v51 = vsel %vm1398_vm4, %v8410_v41, %v8409_v6  ;;  %v8414_v6 = vld [vmem:[#allocation70_spill] sm:$0xff]  ;;  %v8415_v41 = vld [vmem:[#allocation8_spill] sm:$0xff] }
 0x2d7   : > { %v1434_v44 = vsel %vm1431_vm6, %v1401_v51, %v8411_v0  ;;  %v1402_v51 = vsel %vm1398_vm4, %v8415_v41, %v8414_v6  ;;  %v8416_v0 = vld [vmem:[#allocation113_spill] sm:$0xff]  ;;  %v8420_v6 = vld [vmem:[#allocation115_spill] sm:$0xff] }
 0x2d8   : > { %v1467_v9 = vsel %vm1464_vm5, %v1434_v44, %v8412_v46  ;;  %v8418_v46 = vld [vmem:[#allocation170_spill] sm:$0xff] }
 0x2d9   : > { %v1500_v52 = vsel %vm1497_vm7, %v1467_v9, %v8413_v24 }
 0x2da   : > { %v1533_v27 = vsel %vm1530_vm9, %v1500_v52, %v4935_v30  ;;  %v1435_v30 = vsel %vm1431_vm6, %v1402_v51, %v8416_v0  ;;  %v8422_v0 = vld [vmem:[#allocation164_spill] sm:$0xff] }
 0x2db   : > { %v1309_v19 = vpop.permute.xlu1 %1308  ;;  %v1566_v49 = vsel %vm1563_vm8, %v1533_v27, %v5109_v48  ;;  %v8417_v48 = vld [vmem:[#allocation135_spill] sm:$0xff] }
 0x2dc   : > { %v1599_v29 = vsel %vm1596_vm10, %v1566_v49, %v5193_v45  ;;  %v5381_v43 = vpop.permute.xlu2 %1316  ;;  %v1468_v45 = vsel %vm1464_vm5, %v1435_v30, %v8417_v48 }
 0x2dd   : > { %3649 = vmatmul.msk.f32.gmra.mxu0 %vm1671_vm11, %v1631_v7  ;;  %v1632_v7 = vsel %vm1629_vm12, %v1599_v29, %v1307_v55  ;;  %v1501_v9 = vsel %vm1497_vm7, %v1468_v45, %v8418_v46  ;;  %v8419_v29 = vld [vmem:[#allocation76_spill] sm:$0xff] }
 0x2de   : > { %v1313_v39 = vpop.permute.xlu0 %1312  ;;  %v1534_v55 = vsel %vm1530_vm9, %v1501_v9, %v4977_v11  ;;  %v8423_v9 = vld [vmem:[#allocation56_spill] sm:$0xff] }
 0x2df   : > { %v1567_v24 = vsel %vm1563_vm8, %v1534_v55, %v5071_v40  ;;  %v8421_v40 = vld [vmem:[#allocation146_spill] sm:$0xff]  ;;  %v1404_v55 = vsel %vm1398_vm4, %v3894_v22, %v8423_v9  ;;  %v8428_v22 = vld [vmem:[#allocation117_spill] sm:$0xff] }
 0x2e0   : > { %v1600_v52 = vsel %vm1596_vm10, %v1567_v24, %v5231_v5  ;;  %v8424_v24 = vld [vmem:[#allocation105_spill] sm:$0xff] }
 0x2e1   : > { %v1633_v49 = vsel %vm1629_vm12, %v1600_v52, %v1309_v19  ;;  %v1437_v52 = vsel %vm1431_vm6, %v1404_v55, %v8424_v24  ;;  %v8432_v24 = vld [vmem:[#allocation116_spill] sm:$0xff] }
 0x2e3   : > { %v5379_v1 = vpop.permute.xlu1 %1314 }
 0x2e4   : > { %v5411_v11 = vpop.permute.xlu2 %1322 }
 0x2e5   : > { %3650 = vmatmul.msk.f32.gmra.mxu0 %vm1671_vm11, %v1632_v7  ;;  %v1403_v7 = vsel %vm1398_vm4, %v3903_v25, %v8419_v29  ;;  %v8426_v29 = vld [vmem:[#allocation97_spill] sm:$0xff] }
 0x2e6   : > { %v5390_v44 = vpop.permute.xlu0 %1318  ;;  %v1436_v41 = vsel %vm1431_vm6, %v1403_v7, %v8420_v6  ;;  %v8427_v7 = vld [vmem:[#allocation71_spill] sm:$0xff] }
 0x2e7   : > { %v1469_v5 = vsel %vm1464_vm5, %v1436_v41, %v8421_v40 }
 0x2e8   : > { %v1502_v30 = vsel %vm1497_vm7, %v1469_v5, %v8422_v0  ;;  %v8429_v5 = vld [vmem:[#allocation157_spill] sm:$0xff] }
 0x2e9   : > { %v1535_v19 = vsel %vm1530_vm9, %v1502_v30, %v4985_v59 }
 0x2ea   : > { %v1568_v25 = vsel %vm1563_vm8, %v1535_v19, %v5113_v63  ;;  %v8430_v19 = vld [vmem:[#allocation178_spill] sm:$0xff] }
 0x2eb   : > { %v5402_v27 = vpop.permute.xlu1 %1320  ;;  %v1601_v48 = vsel %vm1596_vm10, %v1568_v25, %v5239_v3  ;;  %v1416_v3 = vsel %vm1398_vm4, %v4048_v57, %v8426_v29  ;;  %v8434_v29 = vld [vmem:[#allocation81_spill] sm:$0xff] }
 0x2ec   : > { %v1634_v46 = vsel %vm1629_vm12, %v1601_v48, %v1311_v36  ;;  %v5443_v6 = vpop.permute.xlu2 %1328  ;;  %v1449_v41 = vsel %vm1431_vm6, %v1416_v3, %v8428_v22  ;;  %v8435_v3 = vld [vmem:[#allocation172_spill] sm:$0xff]  ;;  %v8437_v22 = vld [vmem:[#allocation150_spill] sm:$0xff] }
 0x2ed   : > { %3651 = vmatmul.msk.f32.gmra.mxu0 %vm1671_vm11, %v1633_v49  ;;  %v8425_v49 = vld [vmem:[#allocation148_spill] sm:$0xff]  ;;  %v1482_v0 = vsel %vm1464_vm5, %v1449_v41, %v8429_v5 }
 0x2ee   : > { %v5413_v51 = vpop.permute.xlu0 %1324  ;;  %v1470_v63 = vsel %vm1464_vm5, %v1437_v52, %v8425_v49  ;;  %v1515_v57 = vsel %vm1497_vm7, %v1482_v0, %v8430_v19 }
 0x2ef   : > { %v1503_v36 = vsel %vm1497_vm7, %v1470_v63, %v8427_v7  ;;  %v8433_v63 = vld [vmem:[#allocation138_spill] sm:$0xff]  ;;  %v8436_v7 = vld [vmem:[#allocation128_spill] sm:$0xff] }
 0x2f0   : > { %v1536_v40 = vsel %vm1530_vm9, %v1503_v36, %v4947_v14  ;;  %v8431_v14 = vld [vmem:[#allocation60_spill] sm:$0xff] }
 0x2f1   : > { %v1569_v30 = vsel %vm1563_vm8, %v1536_v40, %v5121_v47  ;;  %v1405_v55 = vsel %vm1398_vm4, %v3923_v35, %v8431_v14  ;;  %v1417_v35 = vsel %vm1398_vm4, %v4068_v18, %v8434_v29  ;;  %v8441_v14 = vld [vmem:[#allocation98_spill] sm:$0xff] }
 0x2f2   : > { %v1602_v25 = vsel %vm1596_vm10, %v1569_v30, %v5207_v21  ;;  %v1438_v52 = vsel %vm1431_vm6, %v1405_v55, %v8432_v24  ;;  %v1450_v36 = vsel %vm1431_vm6, %v1417_v35, %v8436_v7  ;;  %v8442_v55 = vld [vmem:[#allocation166_spill] sm:$0xff] }
 0x2f3   : > { %v5425_v45 = vpop.permute.xlu1 %1326  ;;  %v1635_v9 = vsel %vm1629_vm12, %v1602_v25, %v1313_v39  ;;  %v1483_v41 = vsel %vm1464_vm5, %v1450_v36, %v8437_v22  ;;  %v8450_v22 = vld [vmem:[#allocation77_spill] sm:$0xff] }
 0x2f4   : > { %v5489_v5 = vpop.permute.xlu2 %1334  ;;  %v1516_v18 = vsel %vm1497_vm7, %v1483_v41, %v4910_v10  ;;  %v8439_v10 = vld [vmem:[#allocation118_spill] sm:$0xff]  ;;  %v8451_v41 = vld [vmem:[#allocation120_spill] sm:$0xff] }
 0x2f5   : > { %3652 = vmatmul.msk.f32.gmra.mxu0 %vm1671_vm11, %v1634_v46  ;;  %v1548_v46 = vsel %vm1530_vm9, %v1515_v57, %v4995_v37  ;;  %v1471_v37 = vsel %vm1464_vm5, %v1438_v52, %v8433_v63  ;;  %v1549_v30 = vsel %vm1530_vm9, %v1516_v18, %v5041_v53  ;;  %v8438_v57 = vld [vmem:[#allocation78_spill] sm:$0xff]  ;;  %v8440_v53 = vld [vmem:[#allocation149_spill] sm:$0xff]  ;;  %v8445_v63 = vld [vmem:[#allocation80_spill] sm:$0xff] }
 0x2f6   : > { %v5434_v59 = vpop.permute.xlu0 %1330  ;;  %v1581_v47 = vsel %vm1563_vm8, %v1548_v46, %v5169_v17  ;;  %v1504_v17 = vsel %vm1497_vm7, %v1471_v37, %v8435_v3  ;;  %v1406_v25 = vsel %vm1398_vm4, %v3917_v33, %v8438_v57  ;;  %v1418_v33 = vsel %vm1398_vm4, %v4065_v16, %v8441_v14  ;;  %v8444_v52 = vld [vmem:[#allocation158_spill] sm:$0xff]  ;;  %v8452_v18 = vld [vmem:[#allocation160_spill] sm:$0xff] }
 0x2f7   : > { %v1614_v21 = vsel %vm1596_vm10, %v1581_v47, %v5265_v15  ;;  %v1537_v15 = vsel %vm1530_vm9, %v1504_v17, %v4989_v42  ;;  %v1439_v46 = vsel %vm1431_vm6, %v1406_v25, %v8439_v10  ;;  %v8443_v47 = vld [vmem:[#allocation130_spill] sm:$0xff]  ;;  %v8447_v17 = vld [vmem:[#allocation108_spill] sm:$0xff] }
 0x2f8   : > { %v1570_v40 = vsel %vm1563_vm8, %v1537_v15, %v5083_v58  ;;  %v1582_v58 = vsel %vm1563_vm8, %v1549_v30, %v5131_v50  ;;  %v1451_v24 = vsel %vm1431_vm6, %v1418_v33, %v8443_v47  ;;  %v8449_v15 = vld [vmem:[#allocation100_spill] sm:$0xff]  ;;  %v8459_v33 = vld [vmem:[#allocation85_spill] sm:$0xff] }
 0x2f9   : > { %v1603_v0 = vsel %vm1596_vm10, %v1570_v40, %v5243_v38  ;;  %v1615_v38 = vsel %vm1596_vm10, %v1582_v58, %v5295_v4  ;;  %v8454_v57 = vld [vmem:[#allocation192_spill] sm:$0xff]  ;;  %v8461_v47 = vld [vmem:[#allocation173_spill] sm:$0xff] }
 0x2fa   : > { %v1636_v42 = vsel %vm1629_vm12, %v1603_v0, %v5379_v1 }
 0x2fb   : > { %v5457_v48 = vpop.permute.xlu1 %1332 }
 0x2fc   : > { %v1341_v29 = vpop.permute.xlu2 %1340 }
 0x2fd   : > { %3653 = vmatmul.msk.f32.gmra.mxu0 %vm1671_vm11, %v1635_v9  ;;  %v1472_v9 = vsel %vm1464_vm5, %v1439_v46, %v8440_v53  ;;  %v8456_v46 = vld [vmem:[#allocation10_spill] sm:$0xff]  ;;  %v8457_v53 = vld [vmem:[#allocation119_spill] sm:$0xff] }
 0x2fe   : > { %v1337_v49 = vpop.permute.xlu0 %1336  ;;  %v1505_v50 = vsel %vm1497_vm7, %v1472_v9, %v8442_v55  ;;  %v8460_v55 = vld [vmem:[#allocation29_spill] sm:$0xff] }
 0x2ff   : > { %v1647_v39 = vsel %vm1629_vm12, %v1614_v21, %v1337_v49  ;;  %v1538_v4 = vsel %vm1530_vm9, %v1505_v50, %v4997_v13  ;;  %v1484_v21 = vsel %vm1464_vm5, %v1451_v24, %v8444_v52  ;;  %v8446_v13 = vld [vmem:[#allocation82_spill] sm:$0xff]  ;;  %v1420_v50 = vsel %vm1398_vm4, %v8460_v55, %v8459_v33  ;;  %v8462_v24 = vld [vmem:[#allocation131_spill] sm:$0xff]  ;;  %v8486_v55 = vld [vmem:[#allocation12_spill] sm:$0xff] }
 0x300   : > { %3665 = vmatmul.msk.f32.vlgmr.msra.gmra.mxu3 %vm1671_vm11, %v1647_v39  ;;  %v1571_v49 = vsel %vm1563_vm8, %v1538_v4, %v5125_v62  ;;  %v1517_v16 = vsel %vm1497_vm7, %v1484_v21, %v8445_v63  ;;  %v1407_v3 = vsel %vm1398_vm4, %v3962_v56, %v8446_v13  ;;  %v1419_v56 = vsel %vm1398_vm4, %v4106_v8, %v8449_v15  ;;  %v8463_v52 = vld [vmem:[#allocation191_spill] sm:$0xff]  ;;  %v8464_v21 = vld [vmem:[#allocation40_spill] sm:$0xff]  ;;  %v8465_v63 = vld [vmem:[#allocation21_spill] sm:$0xff] }
 0x301   : > { %v1604_v37 = vsel %vm1596_vm10, %v1571_v49, %v5249_v34  ;;  %v1550_v39 = vsel %vm1530_vm9, %v1517_v16, %v5049_v12  ;;  %v1440_v7 = vsel %vm1431_vm6, %v1407_v3, %v8447_v17  ;;  %v8448_v12 = vld [vmem:[#allocation151_spill] sm:$0xff]  ;;  %v1452_v40 = vsel %vm1431_vm6, %v1419_v56, %v8451_v41  ;;  %v8468_v13 = vld [vmem:[#allocation202_spill] sm:$0xff]  ;;  %v8472_v15 = vld [vmem:[#allocation121_spill] sm:$0xff] }
 0x302   : > { %v1637_v35 = vsel %vm1629_vm12, %v1604_v37, %v5381_v43  ;;  %v1583_v62 = vsel %vm1563_vm8, %v1550_v39, %v5173_v2  ;;  %v1473_v36 = vsel %vm1464_vm5, %v1440_v7, %v8448_v12  ;;  %v1485_v0 = vsel %vm1464_vm5, %v1452_v40, %v8452_v18  ;;  %v8466_v37 = vld [vmem:[#allocation182_spill] sm:$0xff]  ;;  %v8469_v7 = vld [vmem:[#allocation84_spill] sm:$0xff]  ;;  %v8476_v18 = vld [vmem:[#allocation33_spill] sm:$0xff] }
 0x303   : > { %v1339_v19 = vpop.permute.xlu1 %1338  ;;  %v1616_v34 = vsel %vm1596_vm10, %v1583_v62, %v5307_v20  ;;  %v1506_v2 = vsel %vm1497_vm7, %v1473_v36, %v8450_v22  ;;  %v1453_v4 = vsel %vm1431_vm6, %v1420_v50, %v8462_v24  ;;  %v8471_v36 = vld [vmem:[#allocation28_spill] sm:$0xff]  ;;  %v8485_v33 = vld [vmem:[#allocation86_spill] sm:$0xff]  ;;  %v8488_v24 = vld [vmem:[#allocation111_spill] sm:$0xff] }
 0x304   : > { %v1648_v1 = vsel %vm1629_vm12, %v1615_v38, %v1339_v19  ;;  %v1649_v43 = vsel %vm1629_vm12, %v1616_v34, %v1341_v29  ;;  %v1539_v20 = vsel %vm1530_vm9, %v1506_v2, %v4959_v31  ;;  %v8453_v19 = vld [vmem:[#allocation180_spill] sm:$0xff]  ;;  %v1486_v49 = vsel %vm1464_vm5, %v1453_v4, %v8464_v21  ;;  %v8467_v29 = vld [vmem:[#allocation74_spill] sm:$0xff]  ;;  %v8470_v34 = vld [vmem:[#allocation13_spill] sm:$0xff] }
 0x305   : > { %3654 = vmatmul.msk.f32.gmra.mxu0 %vm1671_vm11, %v1636_v42  ;;  %v1572_v30 = vsel %vm1563_vm8, %v1539_v20, %v5133_v54  ;;  %v1518_v8 = vsel %vm1497_vm7, %v1485_v0, %v8453_v19  ;;  %v8455_v31 = vld [vmem:[#allocation64_spill] sm:$0xff]  ;;  %v1519_v39 = vsel %vm1497_vm7, %v1486_v49, %v8466_v37  ;;  %v1409_v12 = vsel %vm1398_vm4, %v8470_v34, %v8469_v7  ;;  %v8475_v20 = vld [vmem:[#allocation101_spill] sm:$0xff]  ;;  %v8497_v34 = vld [vmem:[#allocation30_spill] sm:$0xff] }
 0x306   : > { %v1605_v42 = vsel %vm1596_vm10, %v1572_v30, %v5221_v23  ;;  %v1551_v25 = vsel %vm1530_vm9, %v1518_v8, %v8454_v57  ;;  %v1343_v58 = vpop.permute.xlu0 %1342  ;;  %v1408_v38 = vsel %vm1398_vm4, %v8456_v46, %v8455_v31  ;;  %v1552_v3 = vsel %vm1530_vm9, %v1519_v39, %v8468_v13  ;;  %v8473_v22 = vld [vmem:[#allocation204_spill] sm:$0xff]  ;;  %v8478_v8 = vld [vmem:[#allocation133_spill] sm:$0xff]  ;;  %v8481_v31 = vld [vmem:[#allocation27_spill] sm:$0xff] }
 0x307   : > { %v1638_v10 = vsel %vm1629_vm12, %v1605_v42, %v5390_v44  ;;  %v1584_v54 = vsel %vm1563_vm8, %v1551_v25, %v5181_v28  ;;  %v1441_v9 = vsel %vm1431_vm6, %v1408_v38, %v8457_v53  ;;  %v1442_v56 = vsel %vm1431_vm6, %v1409_v12, %v8472_v15  ;;  %v8474_v41 = vld [vmem:[#allocation152_spill] sm:$0xff]  ;;  %v8479_v57 = vld [vmem:[#allocation193_spill] sm:$0xff]  ;;  %v8482_v38 = vld [vmem:[#allocation174_spill] sm:$0xff] }
 0x308   : > { %3666 = vmatmul.msk.f32.gmra.mxu3 %vm1671_vm11, %v1648_v1  ;;  %v1617_v23 = vsel %vm1596_vm10, %v1584_v54, %v5279_v60  ;;  %v8458_v1 = vld [vmem:[#allocation141_spill] sm:$0xff]  ;;  %v1475_v40 = vsel %vm1464_vm5, %v1442_v56, %v8474_v41  ;;  %v1421_v0 = vsel %vm1398_vm4, %v8476_v18, %v8475_v20  ;;  %v8477_v30 = vld [vmem:[#allocation168_spill] sm:$0xff]  ;;  %v8483_v53 = vld [vmem:[#allocation79_spill] sm:$0xff]  ;;  %v1410_v50 = vsel %vm1398_vm4, %v8486_v55, %v8485_v33 }
 0x309   : > { %v1474_v14 = vsel %vm1464_vm5, %v1441_v9, %v8458_v1  ;;  %v1650_v44 = vsel %vm1629_vm12, %v1617_v23, %v1343_v58  ;;  %v1508_v19 = vsel %vm1497_vm7, %v1475_v40, %v8477_v30  ;;  %v1454_v42 = vsel %vm1431_vm6, %v1421_v0, %v8478_v8  ;;  %v8480_v58 = vld [vmem:[#allocation161_spill] sm:$0xff]  ;;  %v8493_v39 = vld [vmem:[#allocation83_spill] sm:$0xff] }
 0x30a   : > { %v1507_v28 = vsel %vm1497_vm7, %v1474_v14, %v8461_v47  ;;  %v1541_v25 = vsel %vm1530_vm9, %v1508_v19, %v8479_v57  ;;  %v8484_v23 = vld [vmem:[#allocation9_spill] sm:$0xff]  ;;  %v1347_v14 = vpop.permute.xlu2 %1346  ;;  %v8487_v47 = vld [vmem:[#allocation50_spill] sm:$0xff]  ;;  %v1443_v4 = vsel %vm1431_vm6, %v1410_v50, %v8488_v24  ;;  %v8499_v15 = vld [vmem:[#allocation67_spill] sm:$0xff] }
 0x30b   : > { %v1540_v60 = vsel %vm1530_vm9, %v1507_v28, %v8463_v52  ;;  %v1345_v62 = vpop.permute.xlu1 %1344  ;;  %v1574_v46 = vsel %vm1563_vm8, %v1541_v25, %v8481_v31  ;;  %v8489_v52 = vld [vmem:[#allocation205_spill] sm:$0xff]  ;;  %v8503_v0 = vld [vmem:[#allocation51_spill] sm:$0xff]  ;;  %v8504_v19 = vld [vmem:[#allocation122_spill] sm:$0xff] }
 0x30c   : > { %v1573_v16 = vsel %vm1563_vm8, %v1540_v60, %v8465_v63  ;;  %v1607_v9 = vsel %vm1596_vm10, %v1574_v46, %v8483_v53  ;;  %v8490_v21 = vld [vmem:[#allocation153_spill] sm:$0xff]  ;;  %v8491_v63 = vld [vmem:[#allocation103_spill] sm:$0xff]  ;;  %v8506_v25 = vld [vmem:[#allocation144_spill] sm:$0xff] }
 0x30d   : > { %3655 = vmatmul.msk.f32.gmra.mxu0 %vm1671_vm11, %v1637_v35  ;;  %v1606_v35 = vsel %vm1596_vm10, %v1573_v16, %v8467_v29  ;;  %v1476_v49 = vsel %vm1464_vm5, %v1443_v4, %v8490_v21  ;;  %v8492_v16 = vld [vmem:[#allocation32_spill] sm:$0xff]  ;;  %v8502_v20 = vld [vmem:[#allocation17_spill] sm:$0xff]  ;;  %v8508_v31 = vld [vmem:[#allocation35_spill] sm:$0xff] }
 0x30e   : > { %v1639_v17 = vsel %vm1629_vm12, %v1606_v35, %v5402_v27  ;;  %v1422_v37 = vsel %vm1398_vm4, %v8492_v16, %v8491_v63  ;;  %v1509_v29 = vsel %vm1497_vm7, %v1476_v49, %v8493_v39  ;;  %v8494_v35 = vld [vmem:[#allocation123_spill] sm:$0xff]  ;;  %v1349_v41 = vpop.permute.xlu0 %1348  ;;  %v8510_v53 = vld [vmem:[#allocation134_spill] sm:$0xff]  ;;  %v8513_v33 = vld [vmem:[#allocation25_spill] sm:$0xff] }
 0x30f   : > { %v1455_v13 = vsel %vm1431_vm6, %v1422_v37, %v8494_v35  ;;  %v8514_v50 = vld [vmem:[#allocation184_spill] sm:$0xff]  ;;  %v8516_v4 = vld [vmem:[#allocation11_spill] sm:$0xff]  ;;  %v8519_v16 = vld [vmem:[#allocation34_spill] sm:$0xff] }
 0x310   : > { %3667 = vmatmul.msk.f32.gmra.mxu3 %vm1671_vm11, %v1649_v43  ;;  %v1585_v43 = vsel %vm1563_vm8, %v1552_v3, %v8471_v36  ;;  %v8495_v3 = vld [vmem:[#allocation189_spill] sm:$0xff]  ;;  %v8498_v36 = vld [vmem:[#allocation183_spill] sm:$0xff]  ;;  %v8517_v49 = vld [vmem:[#allocation88_spill] sm:$0xff] }
 0x311   : > { %v1618_v2 = vsel %vm1596_vm10, %v1585_v43, %v8473_v22  ;;  %v8500_v22 = vld [vmem:[#allocation195_spill] sm:$0xff]  ;;  %v8520_v39 = vld [vmem:[#allocation124_spill] sm:$0xff] }
 0x312   : > { %v1651_v27 = vsel %vm1629_vm12, %v1618_v2, %v1345_v62  ;;  %v1542_v62 = vsel %vm1530_vm9, %v1509_v29, %v8495_v3  ;;  %v8521_v35 = vld [vmem:[#allocation207_spill] sm:$0xff]  ;;  %v8522_v3 = vld [vmem:[#allocation154_spill] sm:$0xff] }
 0x313   : > { %v1575_v12 = vsel %vm1563_vm8, %v1542_v62, %v8497_v34 }
 0x314   : > { %v1608_v56 = vsel %vm1596_vm10, %v1575_v12, %v8499_v15  ;;  %v8525_v12 = vld [vmem:[#allocation68_spill] sm:$0xff] }
 0x315   : > { %3656 = vmatmul.msk.f32.gmra.mxu0 %vm1671_vm11, %v1638_v10  ;;  %v1487_v10 = vsel %vm1464_vm5, %v1454_v42, %v8480_v58  ;;  %v1641_v40 = vsel %vm1629_vm12, %v1608_v56, %v5413_v51  ;;  %v8505_v42 = vld [vmem:[#allocation203_spill] sm:$0xff]  ;;  %v8527_v56 = vld [vmem:[#allocation196_spill] sm:$0xff] }
 0x316   : > { %v1520_v54 = vsel %vm1497_vm7, %v1487_v10, %v8482_v38  ;;  %v8507_v10 = vld [vmem:[#allocation91_spill] sm:$0xff] }
 0x317   : > { %v1553_v1 = vsel %vm1530_vm9, %v1520_v54, %v8484_v23  ;;  %v1423_v46 = vsel %vm1398_vm4, %v8508_v31, %v8507_v10  ;;  %v8509_v38 = vld [vmem:[#allocation175_spill] sm:$0xff]  ;;  %v8511_v23 = vld [vmem:[#allocation194_spill] sm:$0xff] }
 0x318   : > { %3668 = vmatmul.msk.f32.gmra.mxu3 %vm1671_vm11, %v1650_v44  ;;  %v1640_v44 = vsel %vm1629_vm12, %v1607_v9, %v5411_v11  ;;  %v1586_v28 = vsel %vm1563_vm8, %v1553_v1, %v8487_v47  ;;  %v1456_v9 = vsel %vm1431_vm6, %v1423_v46, %v8510_v53  ;;  %v8535_v10 = vld [vmem:[#allocation58_spill] sm:$0xff] }
 0x319   : > { %v1619_v60 = vsel %vm1596_vm10, %v1586_v28, %v8489_v52  ;;  %v8515_v28 = vld [vmem:[#allocation87_spill] sm:$0xff]  ;;  %v8536_v46 = vld [vmem:[#allocation114_spill] sm:$0xff] }
 0x31a   : > { %v1652_v11 = vsel %vm1629_vm12, %v1619_v60, %v1347_v14  ;;  %v8512_v14 = vld [vmem:[#allocation46_spill] sm:$0xff]  ;;  %v1351_v60 = vpop.permute.xlu1 %1350 }
 0x31d   : > { %3657 = vmatmul.msk.f32.gmra.mxu0 %vm1671_vm11, %v1639_v17  ;;  %v8496_v17 = vld [vmem:[#allocation163_spill] sm:$0xff] }
 0x31e   : > { %v1488_v7 = vsel %vm1464_vm5, %v1455_v13, %v8496_v17  ;;  %v8523_v17 = vld [vmem:[#allocation104_spill] sm:$0xff] }
 0x31f   : > { %v1521_v43 = vsel %vm1497_vm7, %v1488_v7, %v8498_v36  ;;  %v8524_v7 = vld [vmem:[#allocation37_spill] sm:$0xff] }
 0x320   : > { %3669 = vmatmul.msk.f32.gmra.mxu3 %vm1671_vm11, %v1651_v27  ;;  %v1554_v2 = vsel %vm1530_vm9, %v1521_v43, %v8500_v22  ;;  %v8501_v27 = vld [vmem:[#allocation69_spill] sm:$0xff]  ;;  %v1424_v34 = vsel %vm1398_vm4, %v8524_v7, %v8523_v17  ;;  %v8526_v43 = vld [vmem:[#allocation136_spill] sm:$0xff] }
 0x321   : > { %v1411_v18 = vsel %vm1398_vm4, %v8502_v20, %v8501_v27  ;;  %v1587_v30 = vsel %vm1563_vm8, %v1554_v2, %v8503_v0  ;;  %v1457_v15 = vsel %vm1431_vm6, %v1424_v34, %v8526_v43  ;;  %v8528_v2 = vld [vmem:[#allocation55_spill] sm:$0xff]  ;;  %v8530_v20 = vld [vmem:[#allocation90_spill] sm:$0xff]  ;;  %v8531_v0 = vld [vmem:[#allocation89_spill] sm:$0xff] }
 0x322   : > { %v1444_v8 = vsel %vm1431_vm6, %v1411_v18, %v8504_v19  ;;  %v1620_v57 = vsel %vm1596_vm10, %v1587_v30, %v8505_v42  ;;  %v8532_v19 = vld [vmem:[#allocation14_spill] sm:$0xff]  ;;  %v1353_v42 = vpop.permute.xlu2 %1352  ;;  %v8552_v7 = vld [vmem:[#allocation125_spill] sm:$0xff]  ;;  %v8554_v43 = vld [vmem:[#allocation147_spill] sm:$0xff] }
 0x323   : > { %v1477_v58 = vsel %vm1464_vm5, %v1444_v8, %v8506_v25  ;;  %v1653_v51 = vsel %vm1629_vm12, %v1620_v57, %v1349_v41  ;;  %v1490_v41 = vsel %vm1464_vm5, %v1457_v15, %v8528_v2  ;;  %v8533_v25 = vld [vmem:[#allocation92_spill] sm:$0xff] }
 0x324   : > { %v1510_v54 = vsel %vm1497_vm7, %v1477_v58, %v8509_v38  ;;  %v1523_v18 = vsel %vm1497_vm7, %v1490_v41, %v8530_v20  ;;  %v8534_v58 = vld [vmem:[#allocation20_spill] sm:$0xff]  ;;  %v8557_v41 = vld [vmem:[#allocation177_spill] sm:$0xff] }
 0x325   : > { %3658 = vmatmul.msk.f32.gmra.mxu0 %vm1671_vm11, %v1640_v44  ;;  %v1543_v1 = vsel %vm1530_vm9, %v1510_v54, %v8511_v23  ;;  %v1489_v44 = vsel %vm1464_vm5, %v1456_v9, %v8512_v14  ;;  %v1556_v8 = vsel %vm1530_vm9, %v1523_v18, %v8532_v19  ;;  %v8537_v54 = vld [vmem:[#allocation208_spill] sm:$0xff]  ;;  %v8538_v9 = vld [vmem:[#allocation47_spill] sm:$0xff]  ;;  %v8540_v14 = vld [vmem:[#allocation42_spill] sm:$0xff] }
 0x326   : > { %v1576_v55 = vsel %vm1563_vm8, %v1543_v1, %v8513_v33  ;;  %v1522_v47 = vsel %vm1497_vm7, %v1489_v44, %v8514_v50  ;;  %v1589_v31 = vsel %vm1563_vm8, %v1556_v8, %v8535_v10  ;;  %v8539_v1 = vld [vmem:[#allocation106_spill] sm:$0xff]  ;;  %v8541_v33 = vld [vmem:[#allocation176_spill] sm:$0xff]  ;;  %v8559_v18 = vld [vmem:[#allocation197_spill] sm:$0xff] }
 0x327   : > { %v1609_v24 = vsel %vm1596_vm10, %v1576_v55, %v8515_v28  ;;  %v1555_v52 = vsel %vm1530_vm9, %v1522_v47, %v8516_v4  ;;  %v1622_v53 = vsel %vm1596_vm10, %v1589_v31, %v8537_v54  ;;  %v1425_v44 = vsel %vm1398_vm4, %v8540_v14, %v8539_v1  ;;  %v8542_v50 = vld [vmem:[#allocation126_spill] sm:$0xff]  ;;  %v8544_v4 = vld [vmem:[#allocation165_spill] sm:$0xff]  ;;  %v8564_v10 = vld [vmem:[#allocation15_spill] sm:$0xff] }
 0x328   : > { %3670 = vmatmul.msk.f32.gmra.mxu3 %vm1671_vm11, %v1652_v11  ;;  %v1642_v21 = vsel %vm1629_vm12, %v1609_v24, %v5425_v45  ;;  %v8518_v11 = vld [vmem:[#allocation16_spill] sm:$0xff]  ;;  %v1588_v37 = vsel %vm1563_vm8, %v1555_v52, %v8519_v16  ;;  %v1458_v47 = vsel %vm1431_vm6, %v1425_v44, %v8542_v50  ;;  %v8543_v28 = vld [vmem:[#allocation190_spill] sm:$0xff]  ;;  %v8569_v14 = vld [vmem:[#allocation127_spill] sm:$0xff] }
 0x329   : > { %v1412_v63 = vsel %vm1398_vm4, %v8518_v11, %v8517_v49  ;;  %v1621_v13 = vsel %vm1596_vm10, %v1588_v37, %v8521_v35  ;;  %v1491_v52 = vsel %vm1464_vm5, %v1458_v47, %v8544_v4  ;;  %v8546_v49 = vld [vmem:[#allocation185_spill] sm:$0xff]  ;;  %v8548_v37 = vld [vmem:[#allocation198_spill] sm:$0xff]  ;;  %v8571_v50 = vld [vmem:[#allocation155_spill] sm:$0xff] }
 0x32a   : > { %v1445_v29 = vsel %vm1431_vm6, %v1412_v63, %v8520_v39  ;;  %v1654_v45 = vsel %vm1629_vm12, %v1621_v13, %v1351_v60  ;;  %v8545_v60 = vld [vmem:[#allocation36_spill] sm:$0xff]  ;;  %v1524_v11 = vsel %vm1497_vm7, %v1491_v52, %v8546_v49  ;;  %v8547_v63 = vld [vmem:[#allocation73_spill] sm:$0xff]  ;;  %v8549_v13 = vld [vmem:[#allocation75_spill] sm:$0xff] }
 0x32b   : > { %v1478_v62 = vsel %vm1464_vm5, %v1445_v29, %v8522_v3  ;;  %v1557_v39 = vsel %vm1530_vm9, %v1524_v11, %v8548_v37  ;;  %v1355_v29 = vpop.permute.xlu0 %1354  ;;  %v8550_v3 = vld [vmem:[#allocation22_spill] sm:$0xff]  ;;  %v8573_v4 = vld [vmem:[#allocation45_spill] sm:$0xff]  ;;  %v8575_v49 = vld [vmem:[#allocation139_spill] sm:$0xff] }
 0x32c   : > { %v1511_v36 = vsel %vm1497_vm7, %v1478_v62, %v8525_v12  ;;  %v1414_v62 = vsel %vm1398_vm4, %v8550_v3, %v8549_v13  ;;  %v8553_v12 = vld [vmem:[#allocation206_spill] sm:$0xff]  ;;  %v8577_v37 = vld [vmem:[#allocation57_spill] sm:$0xff]  ;;  %v8579_v3 = vld [vmem:[#allocation179_spill] sm:$0xff] }
 0x32d   : > { %3659 = vmatmul.msk.f32.gmra.mxu0 %vm1671_vm11, %v1641_v40  ;;  %v1544_v22 = vsel %vm1530_vm9, %v1511_v36, %v8527_v56  ;;  %v8529_v40 = vld [vmem:[#allocation31_spill] sm:$0xff]  ;;  %v1447_v34 = vsel %vm1431_vm6, %v1414_v62, %v8552_v7  ;;  %v8555_v56 = vld [vmem:[#allocation96_spill] sm:$0xff]  ;;  %v8561_v8 = vld [vmem:[#allocation26_spill] sm:$0xff] }
 0x32e   : > { %v1577_v27 = vsel %vm1563_vm8, %v1544_v22, %v8529_v40  ;;  %v1480_v15 = vsel %vm1464_vm5, %v1447_v34, %v8554_v43  ;;  %v8556_v22 = vld [vmem:[#allocation41_spill] sm:$0xff]  ;;  %v8565_v54 = vld [vmem:[#allocation94_spill] sm:$0xff] }
 0x32f   : > { %v1610_v30 = vsel %vm1596_vm10, %v1577_v27, %v8531_v0  ;;  %v1426_v2 = vsel %vm1398_vm4, %v8556_v22, %v8555_v56  ;;  %v1513_v40 = vsel %vm1497_vm7, %v1480_v15, %v8557_v41  ;;  %v8558_v27 = vld [vmem:[#allocation137_spill] sm:$0xff]  ;;  %v8568_v1 = vld [vmem:[#allocation6_spill] sm:$0xff] }
 0x330   : > { %3671 = vmatmul.msk.f32.gmra.mxu3 %vm1671_vm11, %v1653_v51  ;;  %v1643_v57 = vsel %vm1629_vm12, %v1610_v30, %v5443_v6  ;;  %v1413_v51 = vsel %vm1398_vm4, %v8534_v58, %v8533_v25  ;;  %v1655_v6 = vsel %vm1629_vm12, %v1622_v53, %v1353_v42  ;;  %v1459_v20 = vsel %vm1431_vm6, %v1426_v2, %v8558_v27  ;;  %v8560_v30 = vld [vmem:[#allocation156_spill] sm:$0xff]  ;;  %v8563_v58 = vld [vmem:[#allocation93_spill] sm:$0xff]  ;;  %v8581_v34 = vld [vmem:[#allocation18_spill] sm:$0xff] }
 0x331   : > { %v1446_v38 = vsel %vm1431_vm6, %v1413_v51, %v8536_v46  ;;  %v1546_v0 = vsel %vm1530_vm9, %v1513_v40, %v8559_v18  ;;  %v1492_v19 = vsel %vm1464_vm5, %v1459_v20, %v8560_v30  ;;  %v1357_v46 = vpop.permute.xlu1 %1356  ;;  %v8566_v53 = vld [vmem:[#allocation24_spill] sm:$0xff]  ;;  %3777 = vrot.lane.b32.xlu2 %v8568_v1, %s3803_s25  ;;  %v8582_v15 = vld [vmem:[#allocation62_spill] sm:$0xff]  ;;  %v8584_v40 = vld [vmem:[#allocation109_spill] sm:$0xff] }
 0x332   : > { %v1479_v23 = vsel %vm1464_vm5, %v1446_v38, %v8538_v9  ;;  %v1579_v42 = vsel %vm1563_vm8, %v1546_v0, %v8561_v8  ;;  %v1415_v9 = vsel %vm1398_vm4, %v8566_v53, %v8565_v54  ;;  %v8583_v56 = vld [vmem:[#allocation66_spill] sm:$0xff]  ;;  %v8585_v27 = vld [vmem:[#allocation44_spill] sm:$0xff]  ;;  %v8586_v18 = vld [vmem:[#allocation129_spill] sm:$0xff] }
 0x333   : > { %v1512_v55 = vsel %vm1497_vm7, %v1479_v23, %v8541_v33  ;;  %v1612_v51 = vsel %vm1596_vm10, %v1579_v42, %v8563_v58  ;;  %v8567_v23 = vld [vmem:[#allocation39_spill] sm:$0xff]  ;;  %v1448_v44 = vsel %vm1431_vm6, %v1415_v9, %v8569_v14  ;;  %v8570_v33 = vld [vmem:[#allocation210_spill] sm:$0xff]  ;;  %v1428_v20 = vsel %vm1398_vm4, %v8585_v27, %v8584_v40  ;;  %v8589_v58 = vld [vmem:[#allocation201_spill] sm:$0xff] }
 0x334   : > { %v1545_v24 = vsel %vm1530_vm9, %v1512_v55, %v8543_v28  ;;  %v1645_v38 = vsel %vm1629_vm12, %v1612_v51, %v5457_v48  ;;  %v1481_v48 = vsel %vm1464_vm5, %v1448_v44, %v8571_v50  ;;  %v5832_v28 = vld [vmem:[%s7829_s2] ss:$0 sm:$0xff]  ;;  %v8587_v0 = vld [vmem:[#allocation167_spill] sm:$0xff]  ;;  %v8591_v54 = vld [vmem:[#allocation209_spill] sm:$0xff]  ;;  %v3770_v40 = vunpack.i.h.bf16 %v5333_v26 }
 0x335   : > { %3660 = vmatmul.msk.f32.gmra.mxu0 %vm1671_vm11, %v1642_v21  ;;  %v1578_v21 = vsel %vm1563_vm8, %v1545_v24, %v8545_v60  ;;  %v8572_v24 = vld [vmem:[#allocation107_spill] sm:$0xff] }
 0x336   : > { %v1611_v16 = vsel %vm1596_vm10, %v1578_v21, %v8547_v63  ;;  %v1427_v52 = vsel %vm1398_vm4, %v8573_v4, %v8572_v24  ;;  %v8574_v60 = vld [vmem:[#allocation171_spill] sm:$0xff] }
 0x337   : > { %v1644_v35 = vsel %vm1629_vm12, %v1611_v16, %v5434_v59  ;;  %v1514_v21 = vsel %vm1497_vm7, %v1481_v48, %v8574_v60  ;;  %v1460_v11 = vsel %vm1431_vm6, %v1427_v52, %v8575_v49  ;;  %v8576_v63 = vld [vmem:[#allocation199_spill] sm:$0xff] }
 0x338   : > { %3672 = vmatmul.msk.f32.gmra.mxu3 %vm1671_vm11, %v1654_v45  ;;  %v8551_v45 = vld [vmem:[#allocation59_spill] sm:$0xff]  ;;  %v1547_v16 = vsel %vm1530_vm9, %v1514_v21, %v8576_v63  ;;  %v3769_v21 = vunpack.i.l.bf16 %v5333_v26 }
 0x339   : > { %v1590_v17 = vsel %vm1563_vm8, %v1557_v39, %v8551_v45  ;;  %v1493_v39 = vsel %vm1464_vm5, %v1460_v11, %v8577_v37  ;;  %v8580_v45 = vld [vmem:[#allocation95_spill] sm:$0xff]  ;;  %v3773_v50 = vpop.permute.xlu1 %3772  ;;  %v8599_v37 = vld [vmem:[#allocation188_spill] sm:$0xff] }
 0x33a   : > { %v1623_v36 = vsel %vm1596_vm10, %v1590_v17, %v8553_v12  ;;  %v1526_v62 = vsel %vm1497_vm7, %v1493_v39, %v8579_v3  ;;  %v8588_v8 = vld [vmem:[#allocation187_spill] sm:$0xff] }
 0x33b   : > { %v1656_v59 = vsel %vm1629_vm12, %v1623_v36, %v1355_v29  ;;  %v8578_v29 = vld [vmem:[#allocation38_spill] sm:$0xff]  ;;  %v1559_v12 = vsel %vm1530_vm9, %v1526_v62, %v8581_v34  ;;  %v1359_v36 = vpop.permute.xlu2 %1358  ;;  %v8592_v9 = vld [vmem:[#allocation99_spill] sm:$0xff] }
 0x33c   : > { %v8596_v48 = vld [vmem:[#allocation159_spill] sm:$0xff] }
 0x33d   : > { %3661 = vmatmul.msk.f32.gmra.mxu0 %vm1671_vm11, %v1643_v57  ;;  %v8562_v57 = vld [vmem:[#allocation186_spill] sm:$0xff]  ;;  %v8597_v24 = vld [vmem:[#allocation43_spill] sm:$0xff] }
 0x33e   : > { %v1525_v25 = vsel %vm1497_vm7, %v1492_v19, %v8562_v57  ;;  %v3764_v4 = vunpack.i.l.bf16 %v8597_v24 }
 0x33f   : > { %v1558_v31 = vsel %vm1530_vm9, %v1525_v25, %v8564_v10  ;;  %v1361_v10 = vpop.permute.xlu0 %1360 }
 0x340   : > { %3673 = vmatmul.msk.f32.gmra.mxu3 %vm1671_vm11, %v1655_v6  ;;  %v1591_v6 = vsel %vm1563_vm8, %v1558_v31, %v8567_v23  ;;  %v8590_v31 = vld [vmem:[#allocation63_spill] sm:$0xff]  ;;  %v8593_v23 = vld [vmem:[#allocation49_spill] sm:$0xff] }
 0x341   : > { %v1624_v55 = vsel %vm1596_vm10, %v1591_v6, %v8570_v33  ;;  %v1429_v6 = vsel %vm1398_vm4, %v8593_v23, %v8592_v9  ;;  %v8595_v33 = vld [vmem:[#allocation140_spill] sm:$0xff] }
 0x342   : > { %v1657_v47 = vsel %vm1629_vm12, %v1624_v55, %v1357_v46  ;;  %v1462_v55 = vsel %vm1431_vm6, %v1429_v6, %v8595_v33 }
 0x345   : > { %3662 = vmatmul.msk.f32.gmra.mxu0 %vm1671_vm11, %v1644_v35  ;;  %v1580_v35 = vsel %vm1563_vm8, %v1547_v16, %v8578_v29  ;;  %v3774_v29 = vunpack.i.l.bf16 %v3773_v50 }
 0x346   : > { %v1613_v17 = vsel %vm1596_vm10, %v1580_v35, %v8580_v45 }
 0x347   : > { %v1646_v43 = vsel %vm1629_vm12, %v1613_v17, %v5489_v5  ;;  %v1461_v5 = vsel %vm1431_vm6, %v1428_v20, %v8586_v18  ;;  %v8605_v20 = vld [vmem:[#allocation181_spill] sm:$0xff] }
 0x348   : > { %3674 = vmatmul.msk.f32.gmra.mxu3 %vm1671_vm11, %v1656_v59  ;;  %v1592_v59 = vsel %vm1563_vm8, %v1559_v12, %v8582_v15  ;;  %v1494_v30 = vsel %vm1464_vm5, %v1461_v5, %v8587_v0  ;;  %v3775_v5 = vunpack.i.h.bf16 %v3773_v50 }
 0x349   : > { %v1625_v22 = vsel %vm1596_vm10, %v1592_v59, %v8583_v56  ;;  %v1527_v42 = vsel %vm1497_vm7, %v1494_v30, %v8588_v8  ;;  %v8603_v59 = vld [vmem:[#allocation142_spill] sm:$0xff] }
 0x34a   : > { %v1658_v41 = vsel %vm1629_vm12, %v1625_v22, %v1359_v36  ;;  %v1560_v51 = vsel %vm1530_vm9, %v1527_v42, %v8589_v58  ;;  %v8601_v36 = vld [vmem:[#allocation110_spill] sm:$0xff]  ;;  %v3765_v22 = vunpack.i.h.bf16 %v8597_v24 }
 0x34b   : > { %v1593_v46 = vsel %vm1563_vm8, %v1560_v51, %v8590_v31 }
 0x34c   : > { %v1626_v53 = vsel %vm1596_vm10, %v1593_v46, %v8591_v54 }
 0x34d   : > { %3663 = vmatmul.msk.f32.gmra.mxu0 %vm1671_vm11, %v1645_v38  ;;  %v1659_v44 = vsel %vm1629_vm12, %v1626_v53, %v1361_v10 }
 0x350   : > { %3675 = vmatmul.msk.f32.gmra.mxu3 %vm1671_vm11, %v1657_v47  ;;  %v1495_v47 = vsel %vm1464_vm5, %v1462_v55, %v8596_v48 }
 0x351   : > { %v1528_v39 = vsel %vm1497_vm7, %v1495_v47, %v8599_v37 }
 0x352   : > { %v1789_v13 = vpop.f32.mrf.mxu0 }
 0x353   : > { %v1790_v7 = vadd.f32 %v5832_v28, %v1789_v13  ;;  %v8600_v13 = vld [vmem:[#allocation19_spill] sm:$0xff] }
 0x354   : > { %v1561_v3 = vsel %vm1530_vm9, %v1528_v39, %v8600_v13 }
 0x355   : > { %3664 = vmatmul.msk.f32.gmra.mxu0 %vm1671_vm11, %v1646_v43  ;;  %v1885_v2 = vmax.f32 %v1790_v7, 0.0  ;;  %v1594_v17 = vsel %vm1563_vm8, %v1561_v3, %v3764_v4  ;;  %v8602_v43 = vld [vmem:[#allocation48_spill] sm:$0xff] }
 0x356   : > { %v1627_v7 = vsel %vm1596_vm10, %v1594_v17, %v3769_v21  ;;  %v1430_v15 = vsel %vm1398_vm4, %v8602_v43, %v8601_v36 }
 0x357   : > { %v1949_v57 = vrot.slane %v1885_v2, 7  ;;  %v1660_v12 = vsel %vm1629_vm12, %v1627_v7, %v3774_v29  ;;  %v1463_v56 = vsel %vm1431_vm6, %v1430_v15, %v8603_v59  ;;  %v8604_v2 = vld [vmem:[#allocation61_spill] sm:$0xff] }
 0x358   : > { %3676 = vmatmul.msk.f32.gmra.mxu3 %vm1671_vm11, %v1658_v41  ;;  %v1496_v41 = vsel %vm1464_vm5, %v1463_v56, %v8604_v2 }
 0x359   : > { %v5884_v1 = vsel %vm290_vm0, 0.0, %v1949_v57  ;;  %v1529_v18 = vsel %vm1497_vm7, %v1496_v41, %v8605_v20 }
 0x35a   : > { %v1792_v19 = vpop.f32.mrf.mxu0  ;;  %8594 = vst [vmem:[#allocation112_spill] sm:$0xff] %v5884_v1  ;;  %v2106_v49 = vrot.slane %v5884_v1, 1 }
 0x35b   : > { %v1793_v25 = vadd.f32 %v5832_v28, %v1792_v19  ;;  %v8606_v19 = vld [vmem:[#allocation23_spill] sm:$0xff] }
 0x35c   : > { %v1562_v8 = vsel %vm1530_vm9, %v1529_v18, %v8606_v19 }
 0x35d   : > { %v1886_v38 = vmax.f32 %v1793_v25, 0.0 }
 0x35f   : > { %v1950_v14 = vrot.slane %v1886_v38, 7 }
 0x360   : > { %3677 = vmatmul.msk.f32.gmra.mxu3 %vm1671_vm11, %v1659_v44 }
 0x361   : > { %v5894_v52 = vsel %vm290_vm0, %v1949_v57, %v1950_v14  ;;  %v5897_v60 = vsel %vm290_vm0, %v1950_v14, 0.0  ;;  %v1595_v57 = vsel %vm1563_vm8, %v1562_v8, %v3765_v22 }
 0x362   : > { %8598 = vst [vmem:[#allocation132_spill] sm:$0xff] %v5894_v52  ;;  %v2109_v11 = vrot.slane %v5897_v60, 1  ;;  %v1795_v63 = vpop.f32.mrf.mxu0  ;;  %v2107_v16 = vrot.slane %v5894_v52, 1  ;;  %v1628_v25 = vsel %vm1596_vm10, %v1595_v57, %v3770_v40 }
 0x363   : > { %v1796_v35 = vadd.f32 %v5832_v28, %v1795_v63  ;;  %v1661_v51 = vsel %vm1629_vm12, %v1628_v25, %v3775_v5 }
 0x364   : > { %v5909_v62 = vsel %vm456_vm1, %v2107_v16, %v2109_v11  ;;  %v5912_v45 = vsel %vm456_vm1, %v2106_v49, %v2107_v16 }
 0x365   : > { %2187 = vrot.lane.b32.xlu1 %v5909_v62, %s3803_s25  ;;  %2185 = vrot.lane.b32.xlu0 %v5912_v45, %s3803_s25  ;;  %v1887_v34 = vmax.f32 %v1796_v35, 0.0 }
 0x367   : > { %v1952_v0 = vrot.slane %v1887_v34, 7 }
 0x368   : > { %3678 = vmatmul.msk.f32.gmra.mxu3 %vm1671_vm11, %v1660_v12 }
 0x369   : > { %v5939_v58 = vsel %vm290_vm0, 0.0, %v1952_v0 }
 0x36a   : > { %v1798_v27 = vpop.f32.mrf.mxu0  ;;  %8607 = vst [vmem:[#allocation169_spill] sm:$0xff] %v5939_v58  ;;  %v2111_v53 = vrot.slane %v5939_v58, 1 }
 0x36b   : > { %v1799_v30 = vadd.f32 %v5832_v28, %v1798_v27 }
 0x36d   : > { %v1888_v42 = vmax.f32 %v1799_v30, 0.0 }
 0x36f   : > { %v1953_v26 = vrot.slane %v1888_v42, 7 }
 0x370   : > { %3679 = vmatmul.msk.f32.gmra.mxu3 %vm1671_vm11, %v1661_v51 }
 0x371   : > { %v5944_v10 = vsel %vm290_vm0, %v1952_v0, %v1953_v26  ;;  %v5947_v31 = vsel %vm290_vm0, %v1953_v26, 0.0 }
 0x372   : > { %8608 = vst [vmem:[#allocation143_spill] sm:$0xff] %v5944_v10  ;;  %v2114_v46 = vrot.slane %v5947_v31, 1  ;;  %v1801_v38 = vpop.f32.mrf.mxu0  ;;  %v2112_v54 = vrot.slane %v5944_v10, 1 }
 0x373   : > { %v1802_v9 = vadd.f32 %v5832_v28, %v1801_v38 }
 0x374   : > { %v5954_v23 = vsel %vm456_vm1, %v2112_v54, %v2114_v46  ;;  %v5957_v6 = vsel %vm456_vm1, %v2111_v53, %v2112_v54 }
 0x375   : > { %2191 = vrot.lane.b32.xlu0 %v5954_v23, %s3803_s25  ;;  %2189 = vrot.lane.b32.xlu2 %v5957_v6, %s3803_s25  ;;  %v1889_v14 = vmax.f32 %v1802_v9, 0.0 }
 0x377   : > { %v1955_v33 = vrot.slane %v1889_v14, 7 }
 0x379   : > { %v5965_v48 = vsel %vm290_vm0, 0.0, %v1955_v33 }
 0x37a   : > { %v1804_v44 = vpop.f32.mrf.mxu0  ;;  %v2116_v63 = vrot.slane %v5965_v48, 1 }
 0x37b   : > { %v1805_v55 = vadd.f32 %v5832_v28, %v1804_v44 }
 0x37d   : > { %v1890_v50 = vmax.f32 %v1805_v55, 0.0 }
 0x37f   : > { %v1956_v47 = vrot.slane %v1890_v50, 7 }
 0x381   : > { %v5968_v24 = vsel %vm290_vm0, %v1955_v33, %v1956_v47  ;;  %v5971_v4 = vsel %vm290_vm0, %v1956_v47, 0.0 }
 0x382   : > { %v2119_v21 = vrot.slane %v5971_v4, 1  ;;  %v1807_v49 = vpop.f32.mrf.mxu0  ;;  %v2117_v11 = vrot.slane %v5968_v24, 1 }
 0x383   : > { %v1808_v16 = vadd.f32 %v5832_v28, %v1807_v49  ;;  %v5977_v37 = vpop.f32.mrf.mxu3 }
 0x384   : > { %v5980_v39 = vsel %vm456_vm1, %v2117_v11, %v2119_v21  ;;  %v5983_v29 = vsel %vm456_vm1, %v2116_v63, %v2117_v11 }
 0x385   : > { %2195 = vrot.lane.b32.xlu2 %v5980_v39, %s3803_s25  ;;  %2193 = vrot.lane.b32.xlu1 %v5983_v29, %s3803_s25  ;;  %v1891_v35 = vmax.f32 %v1808_v16, 0.0 }
 0x387   : > { %v1958_v3 = vrot.slane %v1891_v35, 7 }
 0x389   : > { %v5993_v12 = vsel %vm290_vm0, 0.0, %v1958_v3 }
 0x38a   : > { %v1810_v13 = vpop.f32.mrf.mxu0  ;;  %8609 = vst [vmem:[#allocation162_spill] sm:$0xff] %v5993_v12  ;;  %v2121_v22 = vrot.slane %v5993_v12, 1 }
 0x38b   : > { %v1811_v17 = vadd.f32 %v5832_v28, %v1810_v13  ;;  %v5990_v7 = vpop.f32.mrf.mxu3 }
 0x38d   : > { %v1892_v34 = vmax.f32 %v1811_v17, 0.0 }
 0x38f   : > { %v1959_v36 = vrot.slane %v1892_v34, 7 }
 0x391   : > { %v5996_v43 = vsel %vm290_vm0, %v1958_v3, %v1959_v36  ;;  %v5999_v15 = vsel %vm290_vm0, %v1959_v36, 0.0 }
 0x392   : > { %8610 = vst [vmem:[#allocation72_spill] sm:$0xff] %v5996_v43  ;;  %v2124_v59 = vrot.slane %v5999_v15, 1  ;;  %v1813_v56 = vpop.f32.mrf.mxu0  ;;  %v2122_v2 = vrot.slane %v5996_v43, 1 }
 0x393   : > { %v1814_v41 = vadd.f32 %v5832_v28, %v1813_v56  ;;  %v6005_v40 = vpop.f32.mrf.mxu3 }
 0x394   : > { %v6008_v27 = vsel %vm456_vm1, %v2121_v22, %v2122_v2  ;;  %v6011_v20 = vsel %vm456_vm1, %v2122_v2, %v2124_v59 }
 0x395   : > { %8611 = vst [vmem:[#allocation7_spill] sm:$0xff] %v6011_v20  ;;  %2197 = vrot.lane.b32.xlu0 %v6008_v27, %s3803_s25  ;;  %2199 = vrot.lane.b32.xlu1 %v6011_v20, %s3803_s25  ;;  %v1893_v18 = vmax.f32 %v1814_v41, 0.0 }
 0x397   : > { %v1961_v0 = vrot.slane %v1893_v18, 7 }
 0x399   : > { %v6021_v42 = vsel %vm290_vm0, 0.0, %v1961_v0 }
 0x39a   : > { %v1816_v5 = vpop.f32.mrf.mxu0  ;;  %8612 = vst [vmem:[#allocation102_spill] sm:$0xff] %v6021_v42  ;;  %v2126_v54 = vrot.slane %v6021_v42, 1 }
 0x39b   : > { %v1817_v30 = vadd.f32 %v5832_v28, %v1816_v5  ;;  %v6018_v19 = vpop.f32.mrf.mxu3 }
 0x39d   : > { %v1894_v8 = vmax.f32 %v1817_v30, 0.0 }
 0x39f   : > { %v1962_v57 = vrot.slane %v1894_v8, 7 }
 0x3a1   : > { %v6024_v25 = vsel %vm290_vm0, %v1961_v0, %v1962_v57  ;;  %v6027_v26 = vsel %vm290_vm0, %v1962_v57, 0.0 }
 0x3a2   : > { %8613 = vst [vmem:[#allocation145_spill] sm:$0xff] %v6024_v25  ;;  %v2129_v51 = vrot.slane %v6027_v26, 1  ;;  %v1819_v46 = vpop.f32.mrf.mxu0  ;;  %v2127_v38 = vrot.slane %v6024_v25, 1 }
 0x3a3   : > { %v1820_v53 = vadd.f32 %v5832_v28, %v1819_v46  ;;  %v1852_v9 = vpop.f32.mrf.mxu3 }
 0x3a4   : > { %v6034_v14 = vsel %vm456_vm1, %v2127_v38, %v2129_v51  ;;  %v6037_v44 = vsel %vm456_vm1, %v2126_v54, %v2127_v38 }
 0x3a5   : > { %8614 = vst [vmem:[#allocation65_spill] sm:$0xff] %v6034_v14  ;;  %2203 = vrot.lane.b32.xlu0 %v6034_v14, %s3803_s25  ;;  %2201 = vrot.lane.b32.xlu2 %v6037_v44, %s3803_s25  ;;  %v1895_v33 = vmax.f32 %v1820_v53, 0.0 }
 0x3a6   : > { %8615 = vst [vmem:[#allocation70_spill] sm:$0xff] %v6037_v44 }
 0x3a7   : > { %v1964_v50 = vrot.slane %v1895_v33, 7 }
 0x3a9   : > { %v6047_v11 = vsel %vm290_vm0, 0.0, %v1964_v50 }
 0x3aa   : > { %v1822_v55 = vpop.f32.mrf.mxu0  ;;  %v2131_v34 = vrot.slane %v6047_v11, 1 }
 0x3ab   : > { %v1823_v47 = vadd.f32 %v5832_v28, %v1822_v55  ;;  %v6044_v21 = vpop.f32.mrf.mxu3 }
 0x3ad   : > { %v1896_v49 = vmax.f32 %v1823_v47, 0.0 }
 0x3af   : > { %v1965_v63 = vrot.slane %v1896_v49, 7 }
 0x3b1   : > { %v6050_v16 = vsel %vm290_vm0, %v1964_v50, %v1965_v63  ;;  %v6053_v35 = vsel %vm290_vm0, %v1965_v63, 0.0 }
 0x3b2   : > { %v2134_v13 = vrot.slane %v6053_v35, 1  ;;  %v1825_v3 = vpop.f32.mrf.mxu0  ;;  %v2132_v17 = vrot.slane %v6050_v16, 1 }
 0x3b3   : > { %v1826_v36 = vadd.f32 %v5832_v28, %v1825_v3  ;;  %v6059_v59 = vpop.f32.mrf.mxu3 }
 0x3b4   : > { %v6062_v56 = vsel %vm456_vm1, %v2132_v17, %v2134_v13  ;;  %v6065_v22 = vsel %vm456_vm1, %v2131_v34, %v2132_v17  ;;  %v1847_v13 = vadd.f32 %v5832_v28, %v6005_v40  ;;  %v1841_v17 = vadd.f32 %v5832_v28, %v5977_v37 }
 0x3b5   : > { %8616 = vst [vmem:[#allocation8_spill] sm:$0xff] %v6062_v56  ;;  %2207 = vrot.lane.b32.xlu2 %v6062_v56, %s3803_s25  ;;  %2205 = vrot.lane.b32.xlu1 %v6065_v22, %s3803_s25  ;;  %v1897_v2 = vmax.f32 %v1826_v36, 0.0  ;;  %v1844_v34 = vadd.f32 %v5832_v28, %v5990_v7 }
 0x3b6   : > { %8617 = vst [vmem:[#allocation113_spill] sm:$0xff] %v6065_v22 }
 0x3b7   : > { %v1967_v18 = vrot.slane %v1897_v2, 7 }
 0x3b9   : > { %v6075_v8 = vsel %vm290_vm0, 0.0, %v1967_v18 }
 0x3ba   : > { %v1828_v41 = vpop.f32.mrf.mxu0  ;;  %v2136_v53 = vrot.slane %v6075_v8, 1 }
 0x3bb   : > { %v1829_v5 = vadd.f32 %v5832_v28, %v1828_v41  ;;  %v6072_v0 = vpop.f32.mrf.mxu3 }
 0x3bd   : > { %v1898_v30 = vmax.f32 %v1829_v5, 0.0 }
 0x3bf   : > { %v1968_v57 = vrot.slane %v1898_v30, 7  ;;  %v1902_v30 = vmax.f32 %v1841_v17, 0.0 }
 0x3c1   : > { %v6078_v51 = vsel %vm290_vm0, %v1967_v18, %v1968_v57  ;;  %v6081_v46 = vsel %vm290_vm0, %v1968_v57, 0.0  ;;  %v1904_v18 = vmax.f32 %v1847_v13, 0.0  ;;  %v1903_v57 = vmax.f32 %v1844_v34, 0.0 }
 0x3c2   : > { %v2139_v38 = vrot.slane %v6081_v46, 1  ;;  %v1831_v54 = vpop.f32.mrf.mxu0  ;;  %v2137_v33 = vrot.slane %v6078_v51, 1  ;;  %v1850_v34 = vadd.f32 %v5832_v28, %v6018_v19 }
 0x3c3   : > { %v1832_v55 = vadd.f32 %v5832_v28, %v1831_v54  ;;  %v1864_v50 = vpop.f32.mrf.mxu3  ;;  %v1853_v54 = vadd.f32 %v5832_v28, %v1852_v9  ;;  %v1976_v17 = vrot.slane %v1903_v57, 7 }
 0x3c4   : > { %v6088_v47 = vsel %vm456_vm1, %v2136_v53, %v2137_v33  ;;  %v6091_v49 = vsel %vm456_vm1, %v2137_v33, %v2139_v38  ;;  %v1977_v53 = vrot.slane %v1904_v18, 7  ;;  %v1905_v57 = vmax.f32 %v1850_v34, 0.0 }
 0x3c5   : > { %8618 = vst [vmem:[#allocation135_spill] sm:$0xff] %v6088_v47  ;;  %2209 = vrot.lane.b32.xlu0 %v6088_v47, %s3803_s25  ;;  %2211 = vrot.lane.b32.xlu1 %v6091_v49, %s3803_s25  ;;  %v1899_v63 = vmax.f32 %v1832_v55, 0.0 }
 0x3c6   : > { %8619 = vst [vmem:[#allocation170_spill] sm:$0xff] %v6091_v49 }
 0x3c7   : > { %v1970_v36 = vrot.slane %v1899_v63, 7 }
 0x3c9   : > { %v6107_v38 = vsel %vm290_vm0, 0.0, %v1970_v36 }
 0x3ca   : > { %v1834_v3 = vpop.f32.mrf.mxu0  ;;  %8620 = vst [vmem:[#allocation76_spill] sm:$0xff] %v6107_v38  ;;  %v2141_v13 = vrot.slane %v6107_v38, 1 }
 0x3cb   : > { %v1835_v2 = vadd.f32 %v5832_v28, %v1834_v3  ;;  %v6104_v41 = vpop.f32.mrf.mxu3  ;;  %v1974_v3 = vrot.slane %v1902_v30, 7  ;;  %v6139_v30 = vsel %vm290_vm0, 0.0, %v1976_v17 }
 0x3cd   : > { %v1900_v5 = vmax.f32 %v1835_v2, 0.0  ;;  %v6136_v19 = vsel %vm290_vm0, %v1974_v3, 0.0 }
 0x3ce   : > { %v2149_v49 = vrot.slane %v6136_v19, 1 }
 0x3cf   : > { %v1971_v40 = vrot.slane %v1900_v5, 7 }
 0x3d1   : > { %v6111_v37 = vsel %vm290_vm0, %v1970_v36, %v1971_v40  ;;  %v6114_v7 = vsel %vm290_vm0, %v1971_v40, 0.0  ;;  %v1906_v36 = vmax.f32 %v1853_v54, 0.0  ;;  %v6129_v40 = vsel %vm290_vm0, %v1976_v17, %v1977_v53 }
 0x3d2   : > { %8621 = vst [vmem:[#allocation115_spill] sm:$0xff] %v6111_v37  ;;  %v2144_v33 = vrot.slane %v6114_v7, 1  ;;  %v1837_v55 = vpop.f32.mrf.mxu0  ;;  %v2142_v63 = vrot.slane %v6111_v37, 1  ;;  %v2151_v17 = vrot.slane %v6139_v30, 1 }
 0x3d3   : > { %v1838_v9 = vadd.f32 %v5832_v28, %v1837_v55  ;;  %v1870_v2 = vpop.f32.mrf.mxu3  ;;  %v2152_v55 = vrot.slane %v6129_v40, 1 }
 0x3d4   : > { %v6123_v18 = vsel %vm456_vm1, %v2142_v63, %v2144_v33  ;;  %v6126_v5 = vsel %vm456_vm1, %v2141_v13, %v2142_v63  ;;  %v1980_v33 = vrot.slane %v1906_v36, 7  ;;  %v1859_v63 = vadd.f32 %v5832_v28, %v6059_v59 }
 0x3d5   : > { %8622 = vst [vmem:[#allocation146_spill] sm:$0xff] %v6123_v18  ;;  %v1901_v61 = vmax.f32 %v1838_v9, 0.0  ;;  %2215 = vrot.lane.b32.xlu0 %v6123_v18, %s3803_s25  ;;  %2213 = vrot.lane.b32.xlu2 %v6126_v5, %s3803_s25  ;;  %v1865_v13 = vadd.f32 %v5832_v28, %v1864_v50  ;;  %v1979_v36 = vrot.slane %v1905_v57, 7  ;;  %v1856_v59 = vadd.f32 %v5832_v28, %v6044_v21 }
 0x3d6   : > { %8623 = vst [vmem:[#allocation164_spill] sm:$0xff] %v6126_v5  ;;  %v1862_v50 = vadd.f32 %v5832_v28, %v6072_v0  ;;  %v6163_v5 = vsel %vm456_vm1, %v2151_v17, %v2152_v55  ;;  %v6175_v21 = vsel %vm290_vm0, %v1980_v33, 0.0  ;;  %v1908_v0 = vmax.f32 %v1859_v63, 0.0 }
 0x3d7   : > { %v1973_v54 = vrot.slane %v1901_v61, 7  ;;  %8625 = vst [vmem:[#allocation105_spill] sm:$0xff] %v6163_v5  ;;  %v6172_v57 = vsel %vm290_vm0, %v1979_v36, %v1980_v33  ;;  %v1910_v56 = vmax.f32 %v1865_v13, 0.0  ;;  %v2159_v33 = vrot.slane %v6175_v21, 1 }
 0x3d8   : > { %v1909_v17 = vmax.f32 %v1862_v50, 0.0  ;;  %v2157_v63 = vrot.slane %v6172_v57, 1  ;;  %v1983_v13 = vrot.slane %v1908_v0, 7 }
 0x3d9   : > { %v6146_v9 = vsel %vm290_vm0, %v1973_v54, %v1974_v3  ;;  %v6149_v32 = vsel %vm290_vm0, 0.0, %v1973_v54  ;;  %v6160_v3 = vsel %vm290_vm0, %v1977_v53, 0.0  ;;  %v1907_v53 = vmax.f32 %v1856_v59, 0.0 }
 0x3da   : > { %8624 = vst [vmem:[#allocation56_spill] sm:$0xff] %v6146_v9  ;;  %v2147_v61 = vrot.slane %v6146_v9, 1  ;;  %v2146_v34 = vrot.slane %v6149_v32, 1  ;;  %v1985_v20 = vrot.slane %v1909_v17, 7  ;;  %v6197_v50 = vsel %vm456_vm1, %v2157_v63, %v2159_v33 }
 0x3db   : > { %v1873_v54 = vpop.f32.mrf.mxu3  ;;  %v1982_v47 = vrot.slane %v1907_v53, 7  ;;  %8629 = vst [vmem:[#allocation117_spill] sm:$0xff] %v6197_v50 }
 0x3dc   : > { %v6166_v18 = vsel %vm456_vm1, %v2147_v61, %v2149_v49  ;;  %v6169_v22 = vsel %vm456_vm1, %v2146_v34, %v2147_v61  ;;  %v6184_v49 = vsel %vm290_vm0, 0.0, %v1979_v36  ;;  %v2154_v61 = vrot.slane %v6160_v3, 1 }
 0x3dd   : > { %8626 = vst [vmem:[#allocation148_spill] sm:$0xff] %v6166_v18  ;;  %2221 = vrot.lane.b32.xlu0 %v6163_v5, %s3803_s25  ;;  %2219 = vrot.lane.b32.xlu2 %v6166_v18, %s3803_s25  ;;  %v1986_v34 = vrot.slane %v1910_v56, 7  ;;  %v1871_v5 = vadd.f32 %v5832_v28, %v1870_v2  ;;  %v2156_v18 = vrot.slane %v6184_v49, 1  ;;  %v1868_v36 = vadd.f32 %v5832_v28, %v6104_v41 }
 0x3de   : > { %8627 = vst [vmem:[#allocation97_spill] sm:$0xff] %v6169_v22  ;;  %2217 = vrot.lane.b32.xlu1 %v6169_v22, %s3803_s25  ;;  %v6194_v59 = vsel %vm456_vm1, %v2152_v55, %v2154_v61  ;;  %v6203_v56 = vsel %vm290_vm0, %v1982_v47, %v1983_v13  ;;  %v6206_v2 = vsel %vm290_vm0, %v1983_v13, 0.0  ;;  %v6221_v17 = vsel %vm290_vm0, 0.0, %v1982_v47 }
 0x3df   : > { %8628 = vst [vmem:[#allocation71_spill] sm:$0xff] %v6194_v59  ;;  %v6200_v22 = vsel %vm456_vm1, %v2156_v18, %v2157_v63  ;;  %v6209_v0 = vsel %vm290_vm0, %v1985_v20, %v1986_v34  ;;  %v1912_v53 = vmax.f32 %v1871_v5, 0.0  ;;  %v6218_v18 = vsel %vm290_vm0, 0.0, %v1985_v20 }
 0x3e0   : > { %8630 = vst [vmem:[#allocation157_spill] sm:$0xff] %v6200_v22  ;;  %v1911_v55 = vmax.f32 %v1868_v36, 0.0  ;;  %v2164_v61 = vrot.slane %v6206_v2, 1  ;;  %v2167_v5 = vrot.slane %v6209_v0, 1  ;;  %v2162_v33 = vrot.slane %v6203_v56, 1 }
 0x3e1   : > { %8631 = vst [vmem:[#allocation178_spill] sm:$0xff] %v6209_v0  ;;  %v1989_v63 = vrot.slane %v1912_v53, 7  ;;  %v2161_v20 = vrot.slane %v6221_v17, 1 }
 0x3e2   : > { %8632 = vst [vmem:[#allocation60_spill] sm:$0xff] %v6218_v18  ;;  %v6234_v47 = vsel %vm456_vm1, %v2162_v33, %v2164_v61 }
 0x3e3   : > { %v1876_v41 = vpop.f32.mrf.mxu3  ;;  %8634 = vst [vmem:[#allocation138_spill] sm:$0xff] %v6234_v47  ;;  %v6240_v53 = vsel %vm290_vm0, %v1989_v63, 0.0 }
 0x3e4   : > { %v1877_v13 = vadd.f32 %v5832_v28, %v1876_v41 }
 0x3e5   : > { %2227 = vrot.lane.b32.xlu0 %v6197_v50, %s3803_s25  ;;  %2225 = vrot.lane.b32.xlu2 %v6200_v22, %s3803_s25  ;;  %v2166_v22 = vrot.slane %v6218_v18, 1  ;;  %v1988_v50 = vrot.slane %v1911_v55, 7 }
 0x3e6   : > { %2223 = vrot.lane.b32.xlu1 %v6194_v59, %s3803_s25  ;;  %v1874_v59 = vadd.f32 %v5832_v28, %v1873_v54  ;;  %v1914_v41 = vmax.f32 %v1877_v13, 0.0  ;;  %v6247_v54 = vsel %vm456_vm1, %v2161_v20, %v2162_v33 }
 0x3e7   : > { %v6231_v36 = vsel %vm456_vm1, %v2166_v22, %v2167_v5  ;;  %v6237_v44 = vsel %vm290_vm0, %v1988_v50, %v1989_v63  ;;  %8636 = vst [vmem:[#allocation172_spill] sm:$0xff] %v6247_v54  ;;  %v6250_v22 = vsel %vm290_vm0, %v1986_v34, 0.0  ;;  %v6255_v55 = vsel %vm290_vm0, 0.0, %v1988_v50 }
 0x3e8   : > { %8633 = vst [vmem:[#allocation116_spill] sm:$0xff] %v6231_v36  ;;  %v1913_v61 = vmax.f32 %v1874_v59, 0.0  ;;  %v2174_v63 = vrot.slane %v6240_v53, 1  ;;  %v2172_v13 = vrot.slane %v6237_v44, 1  ;;  %v2171_v33 = vrot.slane %v6255_v55, 1 }
 0x3e9   : > { %8635 = vst [vmem:[#allocation81_spill] sm:$0xff] %v6237_v44 }
 0x3ea   : > { %8637 = vst [vmem:[#allocation128_spill] sm:$0xff] %v6255_v55  ;;  %v1991_v20 = vrot.slane %v1913_v61, 7  ;;  %v6262_v34 = vsel %vm456_vm1, %v2172_v13, %v2174_v63  ;;  %v6265_v14 = vsel %vm456_vm1, %v2171_v33, %v2172_v13  ;;  %v2280_v33 = vrot.slane %v5897_v60, 2 }
 0x3eb   : > { %8638 = vst [vmem:[#allocation150_spill] sm:$0xff] %v6262_v34 }
 0x3ec   : > { %8639 = vst [vmem:[#allocation78_spill] sm:$0xff] %v6265_v14 }
 0x3ed   : > { %2233 = vrot.lane.b32.xlu0 %v6231_v36, %s3803_s25  ;;  %2231 = vrot.lane.b32.xlu2 %v6234_v47, %s3803_s25  ;;  %v2169_v36 = vrot.slane %v6250_v22, 1  ;;  %v1992_v47 = vrot.slane %v1914_v41, 7  ;;  %v6283_v41 = vsel %vm290_vm0, 0.0, %v1991_v20 }
 0x3ee   : > { %2229 = vrot.lane.b32.xlu1 %v6247_v54, %s3803_s25  ;;  %8642 = vst [vmem:[#allocation98_spill] sm:$0xff] %v6283_v41  ;;  %v2176_v63 = vrot.slane %v6283_v41, 1 }
 0x3ef   : > { %v6268_v50 = vsel %vm290_vm0, %v1991_v20, %v1992_v47  ;;  %v6271_v59 = vsel %vm290_vm0, %v1992_v47, 0.0  ;;  %v6274_v54 = vsel %vm456_vm1, %v2167_v5, %v2169_v36  ;;  %v8644_v36 = vld [vmem:[#allocation54_spill] sm:$0xff]  ;;  %v2283_v20 = vrot.slane %v5944_v10, 2 }
 0x3f0   : > { %8640 = vst [vmem:[#allocation118_spill] sm:$0xff] %v6268_v50  ;;  %v2179_v61 = vrot.slane %v6271_v59, 1  ;;  %v2177_v47 = vrot.slane %v6268_v50, 1 }
 0x3f1   : > { %8641 = vst [vmem:[#allocation149_spill] sm:$0xff] %v6274_v54 }
 0x3f2   : > { %v6289_v5 = vsel %vm456_vm1, %v2177_v47, %v2179_v61  ;;  %v6296_v13 = vsel %vm456_vm1, %v2176_v63, %v2177_v47  ;;  %v2282_v61 = vrot.slane %v5939_v58, 2  ;;  %v6311_v47 = vpop.permute.xlu2 %3777  ;;  %v2290_v63 = vrot.slane %v5971_v4, 2 }
 0x3f3   : > { %8643 = vst [vmem:[#allocation166_spill] sm:$0xff] %v6289_v5 }
 0x3f4   : > { %8645 = vst [vmem:[#allocation130_spill] sm:$0xff] %v6296_v13 }
 0x3f5   : > { %2239 = vrot.lane.b32.xlu0 %v6262_v34, %s3803_s25  ;;  %2237 = vrot.lane.b32.xlu2 %v6265_v14, %s3803_s25  ;;  %v2277_v14 = vrot.slane %v5884_v1, 2  ;;  %8647 = vst [vmem:[#allocation80_spill] sm:$0xff] %v6311_v47  ;;  %v2287_v47 = vrot.slane %v5965_v48, 2 }
 0x3f6   : > { %2235 = vrot.lane.b32.xlu1 %v6274_v54, %s3803_s25  ;;  %v2278_v54 = vrot.slane %v5894_v52, 2 }
 0x3f8   : > { %v6318_v60 = vsel %vm633_vm2, %v2277_v14, %v2278_v54  ;;  %v2295_v14 = vrot.slane %v5999_v15, 2 }
 0x3fd   : > { %3782 = vrot.lane.b32.xlu0 %v8644_v36, %s3805_s27  ;;  %2243 = vrot.lane.b32.xlu2 %v6289_v5, %s3803_s25  ;;  %v6306_v36 = vsel %vm633_vm2, %v2282_v61, %v2283_v20  ;;  %v6309_v5 = vsel %vm633_vm2, %v2278_v54, %v2280_v33  ;;  %v2288_v61 = vrot.slane %v5968_v24, 2  ;;  %v2285_v33 = vrot.slane %v5947_v31, 2  ;;  %v6341_v31 = vpop.permute.xlu2 %2189 }
 0x3fe   : > { %2241 = vrot.lane.b32.xlu1 %v6296_v13, %s3803_s25  ;;  %8646 = vst [vmem:[#allocation158_spill] sm:$0xff] %v6306_v36  ;;  %v2298_v54 = vrot.slane %v6024_v25, 2  ;;  %s3813_s25 = smov 48  }
 0x3ff   : > { %v6327_v13 = vsel %vm633_vm2, %v2288_v61, %v2290_v63  ;;  %v6337_v4 = vsel %vm633_vm2, %v2283_v20, %v2285_v33  ;;  %8650 = vst [vmem:[#allocation151_spill] sm:$0xff] %v6341_v31  ;;  %v2297_v63 = vrot.slane %v6021_v42, 2  ;;  %v2303_v31 = vrot.slane %v6050_v16, 2 }
 0x400   : > { %8648 = vst [vmem:[#allocation82_spill] sm:$0xff] %v6327_v13 }
 0x405   : > { %2360 = vrot.lane.b32.xlu0 %v6306_v36, %s3805_s27  ;;  %2358 = vrot.lane.b32.xlu2 %v6309_v5, %s3805_s27  ;;  %v6330_v36 = vsel %vm633_vm2, %v2287_v47, %v2288_v61  ;;  %v2293_v47 = vrot.slane %v5996_v43, 2  ;;  %v2292_v61 = vrot.slane %v5993_v12, 2  ;;  %v6363_v33 = vpop.permute.xlu2 %2195 }
 0x406   : > { %2356 = vrot.lane.b32.xlu1 %v6318_v60, %s3805_s27  ;;  %8649 = vst [vmem:[#allocation108_spill] sm:$0xff] %v6330_v36 }
 0x407   : > { %v6352_v20 = vsel %vm633_vm2, %v2293_v47, %v2295_v14  ;;  %v6359_v15 = vsel %vm633_vm2, %v2292_v61, %v2293_v47  ;;  %8653 = vst [vmem:[#allocation120_spill] sm:$0xff] %v6363_v33  ;;  %v2300_v14 = vrot.slane %v6027_v26, 2  ;;  %v6384_v26 = vpop.permute.xlu0 %2185  ;;  %v2310_v61 = vrot.slane %v6081_v46, 2 }
 0x408   : > { %8652 = vst [vmem:[#allocation77_spill] sm:$0xff] %v6352_v20  ;;  %v2307_v33 = vrot.slane %v6075_v8, 2 }
 0x409   : > { %8657 = vst [vmem:[#allocation64_spill] sm:$0xff] %v6384_v26 }
 0x40d   : > { %2366 = vrot.lane.b32.xlu0 %v6327_v13, %s3805_s27  ;;  %2364 = vrot.lane.b32.xlu2 %v6330_v36, %s3805_s27  ;;  %v6349_v13 = vsel %vm633_vm2, %v2297_v63, %v2298_v54  ;;  %v2305_v63 = vrot.slane %v6053_v35, 2  ;;  %v2302_v36 = vrot.slane %v6047_v11, 2  ;;  %v6380_v35 = vsel %vm633_vm2, %v2298_v54, %v2300_v14  ;;  %v6386_v47 = vpop.permute.xlu2 %2201 }
 0x40e   : > { %2362 = vrot.lane.b32.xlu1 %v6337_v4, %s3805_s27  ;;  %8651 = vst [vmem:[#allocation100_spill] sm:$0xff] %v6349_v13 }
 0x40f   : > { %8656 = vst [vmem:[#allocation192_spill] sm:$0xff] %v6380_v35 }
 0x410   : > { %8658 = vst [vmem:[#allocation10_spill] sm:$0xff] %v6386_v47  ;;  %v6408_v47 = vpop.permute.xlu0 %2191 }
 0x411   : > { %8662 = vst [vmem:[#allocation29_spill] sm:$0xff] %v6408_v47 }
 0x415   : > { %2372 = vrot.lane.b32.xlu0 %v6349_v13, %s3805_s27  ;;  %2370 = vrot.lane.b32.xlu2 %v6352_v20, %s3805_s27  ;;  %v6370_v13 = vsel %vm633_vm2, %v2303_v31, %v2305_v63  ;;  %v6373_v20 = vsel %vm633_vm2, %v2302_v36, %v2303_v31  ;;  %v2313_v36 = vrot.slane %v6111_v37, 2  ;;  %v2308_v31 = vrot.slane %v6078_v51, 2  ;;  %v6410_v26 = vpop.permute.xlu2 %2207 }
 0x416   : > { %2368 = vrot.lane.b32.xlu1 %v6359_v15, %s3805_s27  ;;  %8654 = vst [vmem:[#allocation160_spill] sm:$0xff] %v6370_v13  ;;  %v2312_v63 = vrot.slane %v6107_v38, 2 }
 0x417   : > { %8655 = vst [vmem:[#allocation180_spill] sm:$0xff] %v6373_v20  ;;  %v6397_v14 = vsel %vm633_vm2, %v2308_v31, %v2310_v61  ;;  %v6404_v46 = vsel %vm633_vm2, %v2307_v33, %v2308_v31  ;;  %v2318_v61 = vrot.slane %v6146_v9, 2 }
 0x418   : > { %v6394_v54 = vsel %vm633_vm2, %v2312_v63, %v2313_v36  ;;  %8660 = vst [vmem:[#allocation141_spill] sm:$0xff] %v6397_v14  ;;  %v6412_v63 = vpop.permute.xlu1 %2187 }
 0x419   : > { %8659 = vst [vmem:[#allocation119_spill] sm:$0xff] %v6394_v54 }
 0x41a   : > { %8661 = vst [vmem:[#allocation85_spill] sm:$0xff] %v6404_v46 }
 0x41b   : > { %8663 = vst [vmem:[#allocation173_spill] sm:$0xff] %v6410_v26  ;;  %v2327_v26 = vrot.slane %v6184_v49, 2 }
 0x41c   : > { %8664 = vst [vmem:[#allocation131_spill] sm:$0xff] %v6412_v63  ;;  %v2323_v63 = vrot.slane %v6129_v40, 2 }
 0x41d   : > { %2378 = vrot.lane.b32.xlu0 %v6370_v13, %s3805_s27  ;;  %2376 = vrot.lane.b32.xlu2 %v6373_v20, %s3805_s27  ;;  %v2317_v13 = vrot.slane %v6149_v32, 2 }
 0x41e   : > { %2374 = vrot.lane.b32.xlu1 %v6380_v35, %s3805_s27 }
 0x41f   : > { %v6422_v31 = vsel %vm633_vm2, %v2317_v13, %v2318_v61 }
 0x420   : > { %8666 = vst [vmem:[#allocation40_spill] sm:$0xff] %v6422_v31  ;;  %v6438_v13 = vpop.permute.xlu1 %2193 }
 0x421   : > { %8670 = vst [vmem:[#allocation202_spill] sm:$0xff] %v6438_v13 }
 0x425   : > { %2384 = vrot.lane.b32.xlu0 %v6394_v54, %s3805_s27  ;;  %2382 = vrot.lane.b32.xlu2 %v6397_v14, %s3805_s27  ;;  %v2315_v54 = vrot.slane %v6114_v7, 2  ;;  %v2320_v14 = vrot.slane %v6136_v19, 2  ;;  %v6433_v7 = vpop.permute.xlu0 %2197 }
 0x426   : > { %2380 = vrot.lane.b32.xlu1 %v6404_v46, %s3805_s27  ;;  %8668 = vst [vmem:[#allocation182_spill] sm:$0xff] %v6433_v7 }
 0x427   : > { %v6419_v33 = vsel %vm633_vm2, %v2318_v61, %v2320_v14  ;;  %v6429_v47 = vsel %vm633_vm2, %v2313_v36, %v2315_v54  ;;  %v2325_v14 = vrot.slane %v6160_v3, 2  ;;  %v2328_v61 = vrot.slane %v6172_v57, 2 }
 0x428   : > { %8665 = vst [vmem:[#allocation191_spill] sm:$0xff] %v6419_v33  ;;  %v2322_v36 = vrot.slane %v6139_v30, 2 }
 0x429   : > { %8667 = vst [vmem:[#allocation21_spill] sm:$0xff] %v6429_v47  ;;  %v6445_v54 = vsel %vm633_vm2, %v2327_v26, %v2328_v61  ;;  %v2335_v26 = vrot.slane %v6206_v2, 2 }
 0x42a   : > { %8671 = vst [vmem:[#allocation84_spill] sm:$0xff] %v6445_v54  ;;  %v6455_v3 = vsel %vm633_vm2, %v2322_v36, %v2323_v63 }
 0x42d   : > { %2390 = vrot.lane.b32.xlu0 %v6419_v33, %s3805_s27  ;;  %2388 = vrot.lane.b32.xlu2 %v6422_v31, %s3805_s27  ;;  %v6448_v33 = vsel %vm633_vm2, %v2323_v63, %v2325_v14  ;;  %v6459_v7 = vpop.permute.xlu0 %2203  ;;  %v6464_v14 = vpop.permute.xlu1 %2199 }
 0x42e   : > { %2386 = vrot.lane.b32.xlu1 %v6429_v47, %s3805_s27  ;;  %8672 = vst [vmem:[#allocation13_spill] sm:$0xff] %v6448_v33 }
 0x42f   : > { %v6435_v19 = vpop.permute.xlu2 %2213  ;;  %8673 = vst [vmem:[#allocation28_spill] sm:$0xff] %v6459_v7 }
 0x430   : > { %8669 = vst [vmem:[#allocation74_spill] sm:$0xff] %v6435_v19  ;;  %v2333_v19 = vrot.slane %v6203_v56, 2 }
 0x431   : > { %8675 = vst [vmem:[#allocation204_spill] sm:$0xff] %v6464_v14  ;;  %v2338_v14 = vrot.slane %v6209_v0, 2 }
 0x432   : > { %v6470_v63 = vsel %vm633_vm2, %v2333_v19, %v2335_v26  ;;  %v2340_v26 = vrot.slane %v6250_v22, 2 }
 0x433   : > { %8676 = vst [vmem:[#allocation152_spill] sm:$0xff] %v6470_v63 }
 0x435   : > { %2396 = vrot.lane.b32.xlu0 %v6445_v54, %s3805_s27  ;;  %2394 = vrot.lane.b32.xlu2 %v6448_v33, %s3805_s27  ;;  %v2330_v54 = vrot.slane %v6175_v21, 2  ;;  %v2332_v33 = vrot.slane %v6221_v17, 2 }
 0x436   : > { %2392 = vrot.lane.b32.xlu1 %v6455_v3, %s3805_s27 }
 0x437   : > { %v6461_v13 = vpop.permute.xlu2 %2219  ;;  %v6473_v36 = vsel %vm633_vm2, %v2332_v33, %v2333_v19  ;;  %v6480_v2 = vsel %vm633_vm2, %v2328_v61, %v2330_v54  ;;  %v6484_v21 = vpop.permute.xlu0 %2209  ;;  %v2343_v19 = vrot.slane %v6237_v44, 2  ;;  %v2337_v61 = vrot.slane %v6218_v18, 2 }
 0x438   : > { %8674 = vst [vmem:[#allocation121_spill] sm:$0xff] %v6461_v13  ;;  %v6489_v33 = vpop.permute.xlu1 %2205  ;;  %v2342_v13 = vrot.slane %v6255_v55, 2 }
 0x439   : > { %8677 = vst [vmem:[#allocation101_spill] sm:$0xff] %v6484_v21  ;;  %v6506_v22 = vsel %vm633_vm2, %v2337_v61, %v2338_v14 }
 0x43a   : > { %8679 = vst [vmem:[#allocation168_spill] sm:$0xff] %v6489_v33  ;;  %v6496_v54 = vsel %vm633_vm2, %v2342_v13, %v2343_v19  ;;  %v2350_v13 = vrot.slane %v6271_v59, 2  ;;  %v2348_v33 = vrot.slane %v6268_v50, 2 }
 0x43b   : > { %8680 = vst [vmem:[#allocation133_spill] sm:$0xff] %v6496_v54 }
 0x43c   : > { %8682 = vst [vmem:[#allocation161_spill] sm:$0xff] %v6506_v22 }
 0x43d   : > { %2402 = vrot.lane.b32.xlu0 %v6470_v63, %s3805_s27  ;;  %2400 = vrot.lane.b32.xlu2 %v6473_v36, %s3805_s27  ;;  %v6499_v63 = vsel %vm633_vm2, %v2338_v14, %v2340_v26  ;;  %v6521_v14 = vsel %vm633_vm2, %v2348_v33, %v2350_v13 }
 0x43e   : > { %2398 = vrot.lane.b32.xlu1 %v6480_v2, %s3805_s27  ;;  %8681 = vst [vmem:[#allocation193_spill] sm:$0xff] %v6499_v63 }
 0x43f   : > { %v6486_v7 = vpop.permute.xlu2 %2225  ;;  %8685 = vst [vmem:[#allocation79_spill] sm:$0xff] %v6521_v14 }
 0x440   : > { %8678 = vst [vmem:[#allocation33_spill] sm:$0xff] %v6486_v7  ;;  %v6515_v26 = vpop.permute.xlu1 %2211 }
 0x445   : > { %2408 = vrot.lane.b32.xlu0 %v6496_v54, %s3805_s27  ;;  %2406 = vrot.lane.b32.xlu2 %v6499_v63, %s3805_s27  ;;  %v2345_v54 = vrot.slane %v6240_v53, 2  ;;  %v2347_v63 = vrot.slane %v6283_v41, 2 }
 0x446   : > { %2404 = vrot.lane.b32.xlu1 %v6506_v22, %s3805_s27 }
 0x447   : > { %v6510_v7 = vpop.permute.xlu2 %2231  ;;  %v6512_v21 = vpop.permute.xlu0 %2215  ;;  %v6524_v61 = vsel %vm633_vm2, %v2347_v63, %v2348_v33  ;;  %v6531_v59 = vsel %vm633_vm2, %v2343_v19, %v2345_v54 }
 0x448   : > { %8683 = vst [vmem:[#allocation27_spill] sm:$0xff] %v6510_v7 }
 0x449   : > { %8684 = vst [vmem:[#allocation174_spill] sm:$0xff] %v6512_v21 }
 0x44a   : > { %8686 = vst [vmem:[#allocation9_spill] sm:$0xff] %v6524_v61 }
 0x44b   : > { %8687 = vst [vmem:[#allocation86_spill] sm:$0xff] %v6531_v59 }
 0x44d   : > { %2414 = vrot.lane.b32.xlu0 %v6521_v14, %s3805_s27  ;;  %2412 = vrot.lane.b32.xlu2 %v6524_v61, %s3805_s27 }
 0x44e   : > { %2410 = vrot.lane.b32.xlu1 %v6531_v59, %s3805_s27 }
 0x44f   : > { %v6535_v53 = vpop.permute.xlu2 %2237  ;;  %v6537_v21 = vpop.permute.xlu0 %2221 }
 0x450   : > { %8688 = vst [vmem:[#allocation12_spill] sm:$0xff] %v6535_v53  ;;  %v6539_v13 = vpop.permute.xlu1 %2217 }
 0x451   : > { %8689 = vst [vmem:[#allocation50_spill] sm:$0xff] %v6537_v21 }
 0x455   : > { %2453 = vrot.lane.b32.xlu0 %v5939_v58, %s3807_s29  ;;  %2451 = vrot.lane.b32.xlu2 %v5894_v52, %s3807_s29 }
 0x456   : > { %2449 = vrot.lane.b32.xlu1 %v5884_v1, %s3807_s29 }
 0x457   : > { %v6547_v63 = vpop.permute.xlu2 %2243  ;;  %v6549_v33 = vpop.permute.xlu0 %2227 }
 0x458   : > { %8690 = vst [vmem:[#allocation111_spill] sm:$0xff] %v6547_v63  ;;  %v6551_v19 = vpop.permute.xlu1 %2223 }
 0x459   : > { %8691 = vst [vmem:[#allocation205_spill] sm:$0xff] %v6549_v33 }
 0x45d   : > { %2459 = vrot.lane.b32.xlu0 %v5968_v24, %s3807_s29  ;;  %2457 = vrot.lane.b32.xlu2 %v5965_v48, %s3807_s29 }
 0x45e   : > { %2455 = vrot.lane.b32.xlu1 %v5944_v10, %s3807_s29 }
 0x45f   : > { %v6559_v54 = vpop.permute.xlu2 %2358  ;;  %v6561_v14 = vpop.permute.xlu0 %2233 }
 0x460   : > { %8692 = vst [vmem:[#allocation153_spill] sm:$0xff] %v6559_v54  ;;  %v6563_v52 = vpop.permute.xlu1 %2229 }
 0x461   : > { %8693 = vst [vmem:[#allocation103_spill] sm:$0xff] %v6561_v14 }
 0x465   : > { %2465 = vrot.lane.b32.xlu0 %v6021_v42, %s3807_s29  ;;  %2463 = vrot.lane.b32.xlu2 %v5996_v43, %s3807_s29 }
 0x466   : > { %2461 = vrot.lane.b32.xlu1 %v5993_v12, %s3807_s29 }
 0x467   : > { %v6571_v63 = vpop.permute.xlu2 %2364  ;;  %v6573_v1 = vpop.permute.xlu0 %2239 }
 0x468   : > { %8694 = vst [vmem:[#allocation32_spill] sm:$0xff] %v6571_v63  ;;  %v6575_v53 = vpop.permute.xlu1 %2235 }
 0x469   : > { %8695 = vst [vmem:[#allocation83_spill] sm:$0xff] %v6573_v1 }
 0x46a   : > { %8696 = vst [vmem:[#allocation123_spill] sm:$0xff] %v6575_v53 }
 0x46d   : > { %2471 = vrot.lane.b32.xlu0 %v6050_v16, %s3807_s29  ;;  %2469 = vrot.lane.b32.xlu2 %v6047_v11, %s3807_s29 }
 0x46e   : > { %2467 = vrot.lane.b32.xlu1 %v6024_v25, %s3807_s29 }
 0x46f   : > { %v6583_v54 = vpop.permute.xlu2 %2370  ;;  %v6585_v42 = vpop.permute.xlu0 %3782 }
 0x470   : > { %8697 = vst [vmem:[#allocation189_spill] sm:$0xff] %v6583_v54  ;;  %v6587_v14 = vpop.permute.xlu1 %2241 }
 0x471   : > { %8698 = vst [vmem:[#allocation163_spill] sm:$0xff] %v6585_v42 }
 0x472   : > { %8699 = vst [vmem:[#allocation30_spill] sm:$0xff] %v6587_v14 }
 0x475   : > { %2477 = vrot.lane.b32.xlu0 %v6107_v38, %s3807_s29  ;;  %2475 = vrot.lane.b32.xlu2 %v6078_v51, %s3807_s29  ;;  %v1879_v38 = vpop.f32.mrf.mxu3 }
 0x476   : > { %2473 = vrot.lane.b32.xlu1 %v6075_v8, %s3807_s29 }
 0x477   : > { %v6595_v1 = vpop.permute.xlu2 %2376  ;;  %v6597_v63 = vpop.permute.xlu0 %2360 }
 0x478   : > { %8700 = vst [vmem:[#allocation183_spill] sm:$0xff] %v6597_v63  ;;  %v6599_v25 = vpop.permute.xlu1 %2356 }
 0x479   : > { %8701 = vst [vmem:[#allocation67_spill] sm:$0xff] %v6599_v25 }
 0x47d   : > { %2483 = vrot.lane.b32.xlu0 %v6146_v9, %s3807_s29  ;;  %2481 = vrot.lane.b32.xlu2 %v6149_v32, %s3807_s29  ;;  %v1882_v7 = vpop.f32.mrf.mxu3 }
 0x47e   : > { %2479 = vrot.lane.b32.xlu1 %v6111_v37, %s3807_s29  ;;  %v1883_v43 = vadd.f32 %v5832_v28, %v1882_v7 }
 0x47f   : > { %v6607_v14 = vpop.permute.xlu2 %2382  ;;  %v6609_v54 = vpop.permute.xlu0 %2366 }
 0x480   : > { %8702 = vst [vmem:[#allocation195_spill] sm:$0xff] %v6609_v54  ;;  %v6611_v42 = vpop.permute.xlu1 %2362  ;;  %v1916_v53 = vmax.f32 %v1883_v43, 0.0 }
 0x481   : > { %8703 = vst [vmem:[#allocation69_spill] sm:$0xff] %v6611_v42 }
 0x482   : > { %v6661_v7 = vrot.slane %v1916_v53, 7 }
 0x485   : > { %2489 = vrot.lane.b32.xlu0 %v6184_v49, %s3807_s29  ;;  %2487 = vrot.lane.b32.xlu2 %v6129_v40, %s3807_s29 }
 0x486   : > { %2485 = vrot.lane.b32.xlu1 %v6139_v30, %s3807_s29 }
 0x487   : > { %v6619_v63 = vpop.permute.xlu2 %2388  ;;  %v6621_v25 = vpop.permute.xlu0 %2372 }
 0x488   : > { %8704 = vst [vmem:[#allocation17_spill] sm:$0xff] %v6621_v25  ;;  %v6623_v37 = vpop.permute.xlu1 %2368 }
 0x489   : > { %8705 = vst [vmem:[#allocation51_spill] sm:$0xff] %v6623_v37 }
 0x48d   : > { %2495 = vrot.lane.b32.xlu0 %v6203_v56, %s3807_s29  ;;  %2493 = vrot.lane.b32.xlu2 %v6221_v17, %s3807_s29 }
 0x48e   : > { %2491 = vrot.lane.b32.xlu1 %v6172_v57, %s3807_s29 }
 0x48f   : > { %v6631_v54 = vpop.permute.xlu2 %2394  ;;  %v6633_v42 = vpop.permute.xlu0 %2378 }
 0x490   : > { %v6635_v33 = vpop.permute.xlu1 %2374 }
 0x491   : > { %8706 = vst [vmem:[#allocation122_spill] sm:$0xff] %v6635_v33  ;;  %v1880_v33 = vadd.f32 %v5832_v28, %v1879_v38 }
 0x493   : > { %v1915_v9 = vmax.f32 %v1880_v33, 0.0 }
 0x495   : > { %2501 = vrot.lane.b32.xlu0 %v6255_v55, %s3807_s29  ;;  %2499 = vrot.lane.b32.xlu2 %v6209_v0, %s3807_s29  ;;  %v1994_v28 = vrot.slane %v1915_v9, 7 }
 0x496   : > { %2497 = vrot.lane.b32.xlu1 %v6218_v18, %s3807_s29 }
 0x497   : > { %v6643_v25 = vpop.permute.xlu2 %2400  ;;  %v6645_v37 = vpop.permute.xlu0 %2384  ;;  %v6667_v43 = vsel %vm290_vm0, %v1994_v28, %v6661_v7  ;;  %v6672_v38 = vsel %vm290_vm0, 0.0, %v1994_v28 }
 0x498   : > { %8707 = vst [vmem:[#allocation203_spill] sm:$0xff] %v6645_v37  ;;  %v6648_v21 = vpop.permute.xlu1 %2380 }
 0x499   : > { %8708 = vst [vmem:[#allocation144_spill] sm:$0xff] %v6648_v21 }
 0x49a   : > { %8712 = vst [vmem:[#allocation134_spill] sm:$0xff] %v6667_v43 }
 0x49b   : > { %8713 = vst [vmem:[#allocation194_spill] sm:$0xff] %v6672_v38 }
 0x49d   : > { %2507 = vrot.lane.b32.xlu0 %v6268_v50, %s3807_s29  ;;  %2505 = vrot.lane.b32.xlu2 %v6283_v41, %s3807_s29 }
 0x49e   : > { %2503 = vrot.lane.b32.xlu1 %v6237_v44, %s3807_s29  ;;  %v8724_v44 = vld [vmem:[#allocation70_spill] sm:$0xff] }
 0x49f   : > { %v6657_v55 = vpop.permute.xlu2 %2406  ;;  %v6659_v37 = vpop.permute.xlu0 %2390 }
 0x4a0   : > { %8709 = vst [vmem:[#allocation91_spill] sm:$0xff] %v6657_v55  ;;  %v6663_v18 = vpop.permute.xlu1 %2386 }
 0x4a1   : > { %8710 = vst [vmem:[#allocation35_spill] sm:$0xff] %v6659_v37 }
 0x4a2   : > { %8711 = vst [vmem:[#allocation175_spill] sm:$0xff] %v6663_v18  ;;  %v8725_v18 = vld [vmem:[#allocation7_spill] sm:$0xff] }
 0x4a5   : > { %2551 = vrot.lane.b32.xlu0 %v5912_v45, %s3809_s6  ;;  %2511 = vrot.lane.b32.xlu2 %v6667_v43, %s3807_s29 }
 0x4a6   : > { %2509 = vrot.lane.b32.xlu1 %v6672_v38, %s3807_s29 }
 0x4a7   : > { %v6678_v53 = vpop.permute.xlu2 %2412  ;;  %v6680_v33 = vpop.permute.xlu0 %2396 }
 0x4a8   : > { %8714 = vst [vmem:[#allocation46_spill] sm:$0xff] %v6678_v53  ;;  %v6682_v9 = vpop.permute.xlu1 %2392 }
 0x4a9   : > { %8715 = vst [vmem:[#allocation25_spill] sm:$0xff] %v6680_v33  ;;  %v8746_v33 = vld [vmem:[#allocation117_spill] sm:$0xff] }
 0x4aa   : > { %8716 = vst [vmem:[#allocation184_spill] sm:$0xff] %v6682_v9 }
 0x4ad   : > { %2557 = vrot.lane.b32.xlu0 %v5954_v23, %s3809_s6  ;;  %2555 = vrot.lane.b32.xlu2 %v5957_v6, %s3809_s6 }
 0x4ae   : > { %2553 = vrot.lane.b32.xlu1 %v5909_v62, %s3809_s6 }
 0x4af   : > { %v6690_v45 = vpop.permute.xlu2 %2451  ;;  %v6692_v28 = vpop.permute.xlu0 %2402 }
 0x4b0   : > { %8717 = vst [vmem:[#allocation87_spill] sm:$0xff] %v6690_v45  ;;  %v6694_v50 = vpop.permute.xlu1 %2398  ;;  %v8723_v45 = vld [vmem:[#allocation65_spill] sm:$0xff] }
 0x4b1   : > { %8718 = vst [vmem:[#allocation11_spill] sm:$0xff] %v6692_v28 }
 0x4b2   : > { %8719 = vst [vmem:[#allocation88_spill] sm:$0xff] %v6694_v50 }
 0x4b5   : > { %2563 = vrot.lane.b32.xlu0 %v6008_v27, %s3809_s6  ;;  %2561 = vrot.lane.b32.xlu2 %v5980_v39, %s3809_s6 }
 0x4b6   : > { %2559 = vrot.lane.b32.xlu1 %v5983_v29, %s3809_s6 }
 0x4b7   : > { %v6702_v53 = vpop.permute.xlu2 %2457  ;;  %v6704_v41 = vpop.permute.xlu0 %2408 }
 0x4b8   : > { %8720 = vst [vmem:[#allocation16_spill] sm:$0xff] %v6702_v53  ;;  %v6706_v62 = vpop.permute.xlu1 %2404  ;;  %v8729_v53 = vld [vmem:[#allocation135_spill] sm:$0xff] }
 0x4b9   : > { %8721 = vst [vmem:[#allocation34_spill] sm:$0xff] %v6704_v41 }
 0x4ba   : > { %8722 = vst [vmem:[#allocation124_spill] sm:$0xff] %v6706_v62  ;;  %v8730_v62 = vld [vmem:[#allocation8_spill] sm:$0xff] }
 0x4bd   : > { %2569 = vrot.lane.b32.xlu0 %v8723_v45, %s3809_s6  ;;  %2567 = vrot.lane.b32.xlu2 %v8724_v44, %s3809_s6  ;;  %v8731_v45 = vld [vmem:[#allocation113_spill] sm:$0xff] }
 0x4be   : > { %2565 = vrot.lane.b32.xlu1 %v8725_v18, %s3809_s6 }
 0x4bf   : > { %v6714_v50 = vpop.permute.xlu2 %2463  ;;  %v6716_v28 = vpop.permute.xlu0 %2414 }
 0x4c0   : > { %8726 = vst [vmem:[#allocation207_spill] sm:$0xff] %v6714_v50  ;;  %v6718_v9 = vpop.permute.xlu1 %2410  ;;  %v8735_v50 = vld [vmem:[#allocation146_spill] sm:$0xff] }
 0x4c1   : > { %8727 = vst [vmem:[#allocation154_spill] sm:$0xff] %v6716_v28  ;;  %v8736_v28 = vld [vmem:[#allocation164_spill] sm:$0xff] }
 0x4c2   : > { %8728 = vst [vmem:[#allocation104_spill] sm:$0xff] %v6718_v9  ;;  %v8737_v9 = vld [vmem:[#allocation170_spill] sm:$0xff] }
 0x4c5   : > { %2575 = vrot.lane.b32.xlu0 %v8729_v53, %s3809_s6  ;;  %2573 = vrot.lane.b32.xlu2 %v8730_v62, %s3809_s6 }
 0x4c6   : > { %2571 = vrot.lane.b32.xlu1 %v8731_v45, %s3809_s6 }
 0x4c7   : > { %v6726_v41 = vpop.permute.xlu2 %2469  ;;  %v6728_v44 = vpop.permute.xlu0 %2453 }
 0x4c8   : > { %8732 = vst [vmem:[#allocation37_spill] sm:$0xff] %v6726_v41  ;;  %v6730_v18 = vpop.permute.xlu1 %2449  ;;  %v8740_v41 = vld [vmem:[#allocation105_spill] sm:$0xff] }
 0x4c9   : > { %8733 = vst [vmem:[#allocation68_spill] sm:$0xff] %v6728_v44  ;;  %v8741_v44 = vld [vmem:[#allocation148_spill] sm:$0xff] }
 0x4ca   : > { %8734 = vst [vmem:[#allocation136_spill] sm:$0xff] %v6730_v18 }
 0x4cd   : > { %2581 = vrot.lane.b32.xlu0 %v8735_v50, %s3809_s6  ;;  %2579 = vrot.lane.b32.xlu2 %v8736_v28, %s3809_s6  ;;  %v8742_v50 = vld [vmem:[#allocation97_spill] sm:$0xff] }
 0x4ce   : > { %2577 = vrot.lane.b32.xlu1 %v8737_v9, %s3809_s6 }
 0x4cf   : > { %v6738_v53 = vpop.permute.xlu2 %2475  ;;  %v6740_v62 = vpop.permute.xlu0 %2459 }
 0x4d0   : > { %8738 = vst [vmem:[#allocation196_spill] sm:$0xff] %v6740_v62  ;;  %v6742_v45 = vpop.permute.xlu1 %2455  ;;  %v8747_v62 = vld [vmem:[#allocation157_spill] sm:$0xff] }
 0x4d1   : > { %8739 = vst [vmem:[#allocation55_spill] sm:$0xff] %v6742_v45  ;;  %v8748_v45 = vld [vmem:[#allocation71_spill] sm:$0xff] }
 0x4d5   : > { %2587 = vrot.lane.b32.xlu0 %v8740_v41, %s3809_s6  ;;  %2585 = vrot.lane.b32.xlu2 %v8741_v44, %s3809_s6 }
 0x4d6   : > { %2583 = vrot.lane.b32.xlu1 %v8742_v50, %s3809_s6 }
 0x4d7   : > { %v6750_v18 = vpop.permute.xlu2 %2481  ;;  %v6752_v28 = vpop.permute.xlu0 %2465 }
 0x4d8   : > { %8743 = vst [vmem:[#allocation31_spill] sm:$0xff] %v6750_v18  ;;  %v6754_v9 = vpop.permute.xlu1 %2461  ;;  %v8752_v18 = vld [vmem:[#allocation116_spill] sm:$0xff] }
 0x4d9   : > { %8744 = vst [vmem:[#allocation90_spill] sm:$0xff] %v6752_v28  ;;  %v8753_v28 = vld [vmem:[#allocation138_spill] sm:$0xff] }
 0x4da   : > { %8745 = vst [vmem:[#allocation89_spill] sm:$0xff] %v6754_v9  ;;  %v8754_v9 = vld [vmem:[#allocation172_spill] sm:$0xff] }
 0x4dd   : > { %2593 = vrot.lane.b32.xlu0 %v8746_v33, %s3809_s6  ;;  %2591 = vrot.lane.b32.xlu2 %v8747_v62, %s3809_s6 }
 0x4de   : > { %2589 = vrot.lane.b32.xlu1 %v8748_v45, %s3809_s6 }
 0x4df   : > { %v6762_v37 = vpop.permute.xlu2 %2487  ;;  %v6764_v44 = vpop.permute.xlu0 %2471 }
 0x4e0   : > { %8749 = vst [vmem:[#allocation14_spill] sm:$0xff] %v6762_v37  ;;  %v6766_v50 = vpop.permute.xlu1 %2467 }
 0x4e1   : > { %8750 = vst [vmem:[#allocation92_spill] sm:$0xff] %v6764_v44  ;;  %v8757_v44 = vld [vmem:[#allocation78_spill] sm:$0xff] }
 0x4e2   : > { %8751 = vst [vmem:[#allocation20_spill] sm:$0xff] %v6766_v50  ;;  %v8758_v50 = vld [vmem:[#allocation149_spill] sm:$0xff] }
 0x4e5   : > { %2599 = vrot.lane.b32.xlu0 %v8752_v18, %s3809_s6  ;;  %2597 = vrot.lane.b32.xlu2 %v8753_v28, %s3809_s6  ;;  %v2547_v28 = vrot.slane %v6667_v43, 1 }
 0x4e6   : > { %2595 = vrot.lane.b32.xlu1 %v8754_v9, %s3809_s6 }
 0x4e7   : > { %v6774_v55 = vpop.permute.xlu2 %2493  ;;  %v6776_v0 = vpop.permute.xlu0 %2477 }
 0x4e8   : > { %8755 = vst [vmem:[#allocation58_spill] sm:$0xff] %v6774_v55  ;;  %v6778_v12 = vpop.permute.xlu1 %2473 }
 0x4e9   : > { %8756 = vst [vmem:[#allocation114_spill] sm:$0xff] %v6776_v0  ;;  %v2546_v0 = vrot.slane %v6672_v38, 1 }
 0x4eb   : > { %v6795_v21 = vsel %vm456_vm1, %v2546_v0, %v2547_v28 }
 0x4ec   : > { %8761 = vst [vmem:[#allocation106_spill] sm:$0xff] %v6795_v21 }
 0x4ed   : > { %2605 = vrot.lane.b32.xlu0 %v6262_v34, %s3809_s6  ;;  %2603 = vrot.lane.b32.xlu2 %v8757_v44, %s3809_s6  ;;  %v8762_v34 = vld [vmem:[#allocation166_spill] sm:$0xff]  ;;  %v6803_v44 = vsel %vm290_vm0, %v6661_v7, 0.0  ;;  %vm3263_vm0 = vcmask 523264  }
 0x4ee   : > { %2601 = vrot.lane.b32.xlu1 %v8758_v50, %s3809_s6  ;;  %8763 = vst [vmem:[#allocation42_spill] sm:$0xff] %v6803_v44  ;;  %v2549_v0 = vrot.slane %v6803_v44, 1 }
 0x4ef   : > { %v6786_v18 = vpop.permute.xlu2 %2499  ;;  %v6788_v37 = vpop.permute.xlu0 %2483 }
 0x4f0   : > { %8759 = vst [vmem:[#allocation208_spill] sm:$0xff] %v6786_v18  ;;  %v6791_v55 = vpop.permute.xlu1 %2479 }
 0x4f1   : > { %8760 = vst [vmem:[#allocation47_spill] sm:$0xff] %v6788_v37  ;;  %v8764_v37 = vld [vmem:[#allocation130_spill] sm:$0xff] }
 0x4f5   : > { %2609 = vrot.lane.b32.xlu2 %v8762_v34, %s3809_s6  ;;  %2611 = vrot.lane.b32.xlu0 %v6795_v21, %s3809_s6  ;;  %v6817_v21 = vsel %vm456_vm1, %v2547_v28, %v2549_v0  ;;  %v8771_v28 = vld [vmem:[#allocation158_spill] sm:$0xff]  ;;  %vm3309_vm1 = vcmask 588800  }
 0x4f6   : > { %2607 = vrot.lane.b32.xlu1 %v8764_v37, %s3809_s6  ;;  %8767 = vst [vmem:[#allocation190_spill] sm:$0xff] %v6817_v21 }
 0x4f7   : > { %v6807_v43 = vpop.permute.xlu2 %2505  ;;  %v6809_v50 = vpop.permute.xlu0 %2489 }
 0x4f8   : > { %8765 = vst [vmem:[#allocation176_spill] sm:$0xff] %v6807_v43  ;;  %v6811_v38 = vpop.permute.xlu1 %2485 }
 0x4f9   : > { %8766 = vst [vmem:[#allocation126_spill] sm:$0xff] %v6809_v50 }
 0x4fd   : > { %2652 = vrot.lane.b32.xlu2 %v6318_v60, %s3810_s22  ;;  %2654 = vrot.lane.b32.xlu0 %v6309_v5, %s3810_s22  ;;  %v8770_v60 = vld [vmem:[#allocation108_spill] sm:$0xff] }
 0x4fe   : > { %2613 = vrot.lane.b32.xlu1 %v6817_v21, %s3809_s6  ;;  %v8775_v21 = vld [vmem:[#allocation82_spill] sm:$0xff] }
 0x4ff   : > { %v6823_v7 = vpop.permute.xlu0 %2495  ;;  %v6825_v34 = vpop.permute.xlu2 %2511 }
 0x500   : > { %8768 = vst [vmem:[#allocation165_spill] sm:$0xff] %v6823_v7  ;;  %v6827_v37 = vpop.permute.xlu1 %2491 }
 0x501   : > { %8769 = vst [vmem:[#allocation36_spill] sm:$0xff] %v6825_v34  ;;  %v8774_v34 = vld [vmem:[#allocation77_spill] sm:$0xff] }
 0x505   : > { %2658 = vrot.lane.b32.xlu2 %v6337_v4, %s3810_s22  ;;  %2660 = vrot.lane.b32.xlu0 %v8770_v60, %s3810_s22 }
 0x506   : > { %2656 = vrot.lane.b32.xlu1 %v8771_v28, %s3810_s22 }
 0x507   : > { %v6835_v0 = vpop.permute.xlu0 %2501  ;;  %v6837_v5 = vpop.permute.xlu2 %2555 }
 0x508   : > { %8772 = vst [vmem:[#allocation185_spill] sm:$0xff] %v6835_v0  ;;  %v6839_v44 = vpop.permute.xlu1 %2497 }
 0x509   : > { %8773 = vst [vmem:[#allocation73_spill] sm:$0xff] %v6837_v5  ;;  %v8778_v5 = vld [vmem:[#allocation100_spill] sm:$0xff] }
 0x50d   : > { %2664 = vrot.lane.b32.xlu2 %v6359_v15, %s3810_s22  ;;  %2666 = vrot.lane.b32.xlu0 %v8774_v34, %s3810_s22 }
 0x50e   : > { %2662 = vrot.lane.b32.xlu1 %v8775_v21, %s3810_s22 }
 0x50f   : > { %v6847_v43 = vpop.permute.xlu0 %2507  ;;  %v6849_v7 = vpop.permute.xlu2 %2561 }
 0x510   : > { %8776 = vst [vmem:[#allocation198_spill] sm:$0xff] %v6847_v43  ;;  %v6851_v18 = vpop.permute.xlu1 %2503  ;;  %v8782_v43 = vld [vmem:[#allocation141_spill] sm:$0xff] }
 0x511   : > { %8777 = vst [vmem:[#allocation75_spill] sm:$0xff] %v6849_v7  ;;  %v8783_v7 = vld [vmem:[#allocation160_spill] sm:$0xff] }
 0x515   : > { %2670 = vrot.lane.b32.xlu2 %v6380_v35, %s3810_s22  ;;  %2672 = vrot.lane.b32.xlu0 %v6373_v20, %s3810_s22 }
 0x516   : > { %2668 = vrot.lane.b32.xlu1 %v8778_v5, %s3810_s22 }
 0x517   : > { %v6859_v0 = vpop.permute.xlu0 %2551  ;;  %v6861_v34 = vpop.permute.xlu2 %2567 }
 0x518   : > { %8779 = vst [vmem:[#allocation22_spill] sm:$0xff] %v6859_v0  ;;  %v6863_v50 = vpop.permute.xlu1 %2509 }
 0x519   : > { %8780 = vst [vmem:[#allocation59_spill] sm:$0xff] %v6861_v34 }
 0x51a   : > { %8781 = vst [vmem:[#allocation125_spill] sm:$0xff] %v6863_v50  ;;  %v8787_v50 = vld [vmem:[#allocation119_spill] sm:$0xff] }
 0x51d   : > { %2676 = vrot.lane.b32.xlu2 %v6404_v46, %s3810_s22  ;;  %2678 = vrot.lane.b32.xlu0 %v8782_v43, %s3810_s22 }
 0x51e   : > { %2674 = vrot.lane.b32.xlu1 %v8783_v7, %s3810_s22 }
 0x51f   : > { %v6871_v35 = vpop.permute.xlu0 %2557  ;;  %v6873_v20 = vpop.permute.xlu2 %2573 }
 0x520   : > { %8784 = vst [vmem:[#allocation206_spill] sm:$0xff] %v6871_v35  ;;  %v6875_v5 = vpop.permute.xlu1 %2553 }
 0x521   : > { %8785 = vst [vmem:[#allocation147_spill] sm:$0xff] %v6873_v20  ;;  %v8790_v20 = vld [vmem:[#allocation13_spill] sm:$0xff] }
 0x522   : > { %8786 = vst [vmem:[#allocation96_spill] sm:$0xff] %v6875_v5 }
 0x525   : > { %2682 = vrot.lane.b32.xlu2 %v6429_v47, %s3810_s22  ;;  %2684 = vrot.lane.b32.xlu0 %v6422_v31, %s3810_s22  ;;  %v8791_v47 = vld [vmem:[#allocation191_spill] sm:$0xff] }
 0x526   : > { %2680 = vrot.lane.b32.xlu1 %v8787_v50, %s3810_s22 }
 0x527   : > { %v6883_v34 = vpop.permute.xlu0 %2563  ;;  %v6885_v43 = vpop.permute.xlu2 %2579 }
 0x528   : > { %8788 = vst [vmem:[#allocation41_spill] sm:$0xff] %v6883_v34  ;;  %v6887_v46 = vpop.permute.xlu1 %2559  ;;  %v8795_v34 = vld [vmem:[#allocation84_spill] sm:$0xff] }
 0x529   : > { %8789 = vst [vmem:[#allocation177_spill] sm:$0xff] %v6887_v46 }
 0x52d   : > { %2688 = vrot.lane.b32.xlu2 %v6455_v3, %s3810_s22  ;;  %2690 = vrot.lane.b32.xlu0 %v8790_v20, %s3810_s22 }
 0x52e   : > { %2686 = vrot.lane.b32.xlu1 %v8791_v47, %s3810_s22  ;;  %v8799_v47 = vld [vmem:[#allocation152_spill] sm:$0xff] }
 0x52f   : > { %v6895_v35 = vpop.permute.xlu0 %2569  ;;  %v6897_v31 = vpop.permute.xlu2 %2585 }
 0x530   : > { %8792 = vst [vmem:[#allocation137_spill] sm:$0xff] %v6895_v35  ;;  %v6899_v50 = vpop.permute.xlu1 %2565  ;;  %v8798_v35 = vld [vmem:[#allocation193_spill] sm:$0xff] }
 0x531   : > { %8793 = vst [vmem:[#allocation197_spill] sm:$0xff] %v6897_v31 }
 0x532   : > { %8794 = vst [vmem:[#allocation156_spill] sm:$0xff] %v6899_v50 }
 0x535   : > { %2694 = vrot.lane.b32.xlu2 %v6480_v2, %s3810_s22  ;;  %2696 = vrot.lane.b32.xlu0 %v6473_v36, %s3810_s22 }
 0x536   : > { %2692 = vrot.lane.b32.xlu1 %v8795_v34, %s3810_s22 }
 0x537   : > { %v2576_v46 = vpop.permute.xlu0 %2575  ;;  %v6907_v7 = vpop.permute.xlu2 %2591 }
 0x538   : > { %8796 = vst [vmem:[#allocation26_spill] sm:$0xff] %v6907_v7  ;;  %v6909_v5 = vpop.permute.xlu1 %2571 }
 0x539   : > { %8797 = vst [vmem:[#allocation186_spill] sm:$0xff] %v6909_v5  ;;  %v8800_v5 = vld [vmem:[#allocation133_spill] sm:$0xff] }
 0x53d   : > { %2700 = vrot.lane.b32.xlu2 %v6506_v22, %s3810_s22  ;;  %2702 = vrot.lane.b32.xlu0 %v8798_v35, %s3810_s22 }
 0x53e   : > { %2698 = vrot.lane.b32.xlu1 %v8799_v47, %s3810_s22 }
 0x53f   : > { %v2582_v50 = vpop.permute.xlu0 %2581  ;;  %v6917_v0 = vpop.permute.xlu2 %2597 }
 0x540   : > { %v6919_v31 = vpop.permute.xlu1 %2577 }
 0x545   : > { %2706 = vrot.lane.b32.xlu2 %v6531_v59, %s3810_s22  ;;  %2708 = vrot.lane.b32.xlu0 %v6524_v61, %s3810_s22 }
 0x546   : > { %2704 = vrot.lane.b32.xlu1 %v8800_v5, %s3810_s22 }
 0x547   : > { %v6927_v22 = vpop.permute.xlu0 %2587  ;;  %v6929_v35 = vpop.permute.xlu2 %2603 }
 0x548   : > { %v6931_v7 = vpop.permute.xlu1 %2583 }
 0x549   : > { %8801 = vst [vmem:[#allocation93_spill] sm:$0xff] %v6931_v7 }
 0x54d   : > { %2876 = vrot.lane.b32.xlu2 %v8740_v41, %s3811_s23  ;;  %2972 = vrot.lane.b32.xlu0 %v6455_v3, %s3812_s24 }
 0x54e   : > { %2780 = vrot.lane.b32.xlu1 %v6139_v30, %s3813_s25 }
 0x54f   : > { %v6939_v61 = vpop.permute.xlu0 %2593  ;;  %v6941_v59 = vpop.permute.xlu2 %2609 }
 0x550   : > { %8802 = vst [vmem:[#allocation15_spill] sm:$0xff] %v6941_v59  ;;  %v6943_v5 = vpop.permute.xlu1 %2589 }
 0x555   : > { %2844 = vrot.lane.b32.xlu2 %v5957_v6, %s3811_s23  ;;  %2782 = vrot.lane.b32.xlu0 %v6129_v40, %s3813_s25 }
 0x556   : > { %2748 = vrot.lane.b32.xlu1 %v5939_v58, %s3813_s25 }
 0x557   : > { %v6951_v41 = vpop.permute.xlu0 %2599  ;;  %v6953_v3 = vpop.permute.xlu2 %2652 }
 0x558   : > { %8803 = vst [vmem:[#allocation94_spill] sm:$0xff] %v6953_v3  ;;  %v6955_v7 = vpop.permute.xlu1 %2595 }
 0x55d   : > { %2878 = vrot.lane.b32.xlu2 %v8748_v45, %s3811_s23  ;;  %2974 = vrot.lane.b32.xlu0 %v8790_v20, %s3812_s24 }
 0x55e   : > { %2940 = vrot.lane.b32.xlu1 %v8771_v28, %s3812_s24 }
 0x55f   : > { %v6963_v6 = vpop.permute.xlu0 %2605  ;;  %v6965_v59 = vpop.permute.xlu2 %2658 }
 0x560   : > { %8804 = vst [vmem:[#allocation24_spill] sm:$0xff] %v6965_v59  ;;  %v6967_v58 = vpop.permute.xlu1 %2601 }
 0x565   : > { %2846 = vrot.lane.b32.xlu2 %v5954_v23, %s3811_s23  ;;  %2784 = vrot.lane.b32.xlu0 %v6184_v49, %s3813_s25 }
 0x566   : > { %2750 = vrot.lane.b32.xlu1 %v5944_v10, %s3813_s25 }
 0x567   : > { %v6975_v45 = vpop.permute.xlu2 %2664  ;;  %v6977_v20 = vpop.permute.xlu0 %2611 }
 0x568   : > { %8805 = vst [vmem:[#allocation39_spill] sm:$0xff] %v6975_v45  ;;  %v6979_v28 = vpop.permute.xlu1 %2607  ;;  %v8807_v45 = vld [vmem:[#allocation168_spill] sm:$0xff] }
 0x569   : > { %8806 = vst [vmem:[#allocation6_spill] sm:$0xff] %v6977_v20  ;;  %v3048_v20 = vsel %vm1431_vm6, %v6047_v11, %v8807_v45 }
 0x56a   : > { %v3080_v3 = vsel %vm1497_vm7, %v3048_v20, %v6595_v1 }
 0x56d   : > { %2880 = vrot.lane.b32.xlu2 %v8747_v62, %s3811_s23  ;;  %2976 = vrot.lane.b32.xlu0 %v8795_v34, %s3812_s24  ;;  %v3112_v34 = vsel %vm1563_vm8, %v3080_v3, %v6778_v12 }
 0x56e   : > { %2942 = vrot.lane.b32.xlu1 %v6337_v4, %s3812_s24  ;;  %v3144_v4 = vsel %vm1629_vm12, %v3112_v34, %v2576_v46 }
 0x56f   : > { %v6987_v23 = vpop.permute.xlu2 %2670  ;;  %v6989_v59 = vpop.permute.xlu0 %2654 }
 0x570   : > { %v6991_v10 = vpop.permute.xlu1 %2613 }
 0x575   : > { %2848 = vrot.lane.b32.xlu2 %v5983_v29, %s3811_s23  ;;  %2786 = vrot.lane.b32.xlu0 %v6172_v57, %s3813_s25  ;;  %v3051_v29 = vsel %vm1431_vm6, %v6078_v51, %v6515_v26 }
 0x576   : > { %2752 = vrot.lane.b32.xlu1 %v5965_v48, %s3813_s25  ;;  %v3083_v12 = vsel %vm1497_vm7, %v3051_v29, %v6607_v14 }
 0x577   : > { %v2677_v62 = vpop.permute.xlu2 %2676  ;;  %v7007_v45 = vpop.permute.xlu0 %2660  ;;  %v3115_v46 = vsel %vm1563_vm8, %v3083_v12, %v6791_v55 }
 0x578   : > { %v7010_v1 = vsel %vm3164_vm13, %v3144_v4, %v2677_v62  ;;  %v7012_v20 = vpop.permute.xlu1 %2656  ;;  %v3147_v3 = vsel %vm1629_vm12, %v3115_v46, %v2582_v50 }
 0x57d   : > { %2882 = vrot.lane.b32.xlu2 %v8746_v33, %s3811_s23  ;;  %2978 = vrot.lane.b32.xlu0 %v6480_v2, %s3812_s24  ;;  %v3054_v2 = vsel %vm1431_vm6, %v6149_v32, %v6539_v13 }
 0x57e   : > { %2944 = vrot.lane.b32.xlu1 %v8770_v60, %s3812_s24  ;;  %v3086_v55 = vsel %vm1497_vm7, %v3054_v2, %v6619_v63 }
 0x57f   : > { %v2683_v34 = vpop.permute.xlu2 %2682  ;;  %v7028_v4 = vpop.permute.xlu0 %2666  ;;  %v3118_v50 = vsel %vm1563_vm8, %v3086_v55, %v6811_v38  ;;  %v3057_v38 = vsel %vm1431_vm6, %v6129_v40, %v6551_v19  ;;  %v8810_v55 = vld [vmem:[#allocation144_spill] sm:$0xff] }
 0x580   : > { %v7031_v26 = vsel %vm3164_vm13, %v3147_v3, %v2683_v34  ;;  %v7033_v14 = vpop.permute.xlu1 %2662  ;;  %v3150_v33 = vsel %vm1629_vm12, %v3118_v50, %v6927_v22  ;;  %v3089_v12 = vsel %vm1497_vm7, %v3057_v38, %v6631_v54 }
 0x581   : > { %v3121_v3 = vsel %vm1563_vm8, %v3089_v12, %v6827_v37  ;;  %v3304_v37 = vld [vmem:[%s7830_s3 + $0x40] sm:$0xff] }
 0x582   : > { %3721 = vmatpush.msra.mxu2 %v3304_v37  ;;  %3413 = vmatpush.msra.mxu1 %v3304_v37 }
 0x585   : > { %2850 = vrot.lane.b32.xlu2 %v5980_v39, %s3811_s23  ;;  %2788 = vrot.lane.b32.xlu0 %v6221_v17, %s3813_s25  ;;  %v8808_v39 = vld [vmem:[#allocation173_spill] sm:$0xff] }
 0x586   : > { %2754 = vrot.lane.b32.xlu1 %v5968_v24, %s3813_s25  ;;  %v3049_v29 = vsel %vm1431_vm6, %v6050_v16, %v8808_v39 }
 0x587   : > { %v2689_v60 = vpop.permute.xlu2 %2688  ;;  %v7050_v13 = vpop.permute.xlu0 %2672  ;;  %v3081_v22 = vsel %vm1497_vm7, %v3049_v29, %v6633_v42  ;;  %v3153_v42 = vsel %vm1629_vm12, %v3121_v3, %v6939_v61  ;;  %v8809_v61 = vld [vmem:[#allocation101_spill] sm:$0xff] }
 0x588   : > { %v7053_v63 = vsel %vm3164_vm13, %v3150_v33, %v2689_v60  ;;  %v7055_v62 = vpop.permute.xlu1 %2668  ;;  %v3113_v46 = vsel %vm1563_vm8, %v3081_v22, %v6738_v53  ;;  %v3050_v34 = vsel %vm1431_vm6, %v6075_v8, %v8809_v61  ;;  %v3302_v33 = vld [vmem:[%s7830_s3 + $0x30] sm:$0xff]  ;;  %v8813_v3 = vld [vmem:[#allocation121_spill] sm:$0xff]  ;;  %v8818_v61 = vld [vmem:[#allocation35_spill] sm:$0xff] }
 0x589   : > { %v3145_v40 = vsel %vm1629_vm12, %v3113_v46, %v6919_v31  ;;  %v3303_v31 = vld [vmem:[%s7830_s3 + $0x38] sm:$0xff]  ;;  %v3082_v50 = vsel %vm1497_vm7, %v3050_v34, %v8810_v55  ;;  %v3301_v46 = vld [vmem:[%s7830_s3 + $0x28] sm:$0xff]  ;;  %v8820_v55 = vld [vmem:[#allocation14_spill] sm:$0xff] }
 0x58a   : > { %3722 = vmatpush.msra.mxu2 %v3303_v31  ;;  %3414 = vmatpush.msra.mxu1 %v3303_v31  ;;  %v8817_v31 = vld [vmem:[#allocation91_spill] sm:$0xff] }
 0x58c   : > { %3723 = vmatpush.msra.mxu2 %v3302_v33  ;;  %3415 = vmatpush.msra.mxu1 %v3302_v33  ;;  %v3298_v33 = vld [vmem:[%s7830_s3 + $0x10] sm:$0xff] }
 0x58d   : > { %2884 = vrot.lane.b32.xlu2 %v8754_v9, %s3811_s23  ;;  %2980 = vrot.lane.b32.xlu0 %v6473_v36, %s3812_s24 }
 0x58e   : > { %2946 = vrot.lane.b32.xlu1 %v8775_v21, %s3812_s24  ;;  %v3060_v21 = vsel %vm1431_vm6, %v6221_v17, %v6563_v52  ;;  %v8811_v17 = vld [vmem:[#allocation162_spill] sm:$0xff]  ;;  %3724 = vmatpush.msra.mxu2 %v3301_v46 }
 0x58f   : > { %v2695_v19 = vpop.permute.xlu2 %2694  ;;  %v2679_v54 = vpop.permute.xlu0 %2678  ;;  %v3092_v2 = vsel %vm1497_vm7, %v3060_v21, %v6643_v25  ;;  %v8812_v25 = vld [vmem:[#allocation114_spill] sm:$0xff]  ;;  %3416 = vmatpush.msra.mxu1 %v3301_v46 }
 0x590   : > { %v7082_v9 = vsel %vm3164_vm13, %v3153_v42, %v2695_v19  ;;  %v7084_v36 = vpop.permute.xlu1 %2674  ;;  %v7087_v53 = vsel %vm3164_vm13, %v3145_v40, %v2679_v54  ;;  %v3124_v52 = vsel %vm1563_vm8, %v3092_v2, %v6839_v44  ;;  %v3114_v60 = vsel %vm1563_vm8, %v3082_v50, %v8812_v25  ;;  %v8814_v40 = vld [vmem:[#allocation56_spill] sm:$0xff]  ;;  %v8815_v19 = vld [vmem:[#allocation123_spill] sm:$0xff]  ;;  %v8816_v54 = vld [vmem:[#allocation178_spill] sm:$0xff] }
 0x591   : > { %v3146_v44 = vsel %vm1629_vm12, %v3114_v60, %v6885_v43  ;;  %v3299_v43 = vld [vmem:[%s7830_s3 + $0x18] sm:$0xff]  ;;  %v3055_v42 = vsel %vm1431_vm6, %v8814_v40, %v8813_v3  ;;  %v3063_v37 = vsel %vm1431_vm6, %v8816_v54, %v8815_v19  ;;  %v8819_v2 = vld [vmem:[#allocation138_spill] sm:$0xff]  ;;  %v8825_v19 = vld [vmem:[#allocation60_spill] sm:$0xff] }
 0x592   : > { %v3095_v21 = vsel %vm1497_vm7, %v3063_v37, %v8817_v31  ;;  %v3087_v34 = vsel %vm1497_vm7, %v3055_v42, %v8818_v61  ;;  %v8822_v46 = vld [vmem:[#allocation50_spill] sm:$0xff]  ;;  %v8824_v42 = vld [vmem:[#allocation7_spill] sm:$0xff]  ;;  %v8826_v37 = vld [vmem:[#allocation184_spill] sm:$0xff] }
 0x593   : > { %v3119_v50 = vsel %vm1563_vm8, %v3087_v34, %v8820_v55  ;;  %v8828_v61 = vld [vmem:[#allocation72_spill] sm:$0xff] }
 0x594   : > { %v3151_v25 = vsel %vm1629_vm12, %v3119_v50, %v6943_v5  ;;  %v3296_v5 = vld [vmem:[%s7830_s3] sm:$0xff] }
 0x595   : > { %2852 = vrot.lane.b32.xlu2 %v6008_v27, %s3811_s23  ;;  %2790 = vrot.lane.b32.xlu0 %v6203_v56, %s3813_s25  ;;  %v3156_v27 = vsel %vm1629_vm12, %v3124_v52, %v6951_v41  ;;  %v3300_v41 = vld [vmem:[%s7830_s3 + $0x20] sm:$0xff]  ;;  %v3127_v52 = vsel %vm1563_vm8, %v3095_v21, %v6851_v18 }
 0x596   : > { %2756 = vrot.lane.b32.xlu1 %v8811_v17, %s3813_s25  ;;  %3725 = vmatpush.msra.mxu2 %v3300_v41  ;;  %v8827_v21 = vld [vmem:[#allocation58_spill] sm:$0xff] }
 0x597   : > { %v2701_v39 = vpop.permute.xlu2 %2700  ;;  %v7120_v29 = vpop.permute.xlu0 %2684  ;;  %3417 = vmatpush.msra.mxu1 %v3300_v41  ;;  %v3056_v41 = vsel %vm1431_vm6, %v6139_v30, %v8822_v46  ;;  %v8829_v30 = vld [vmem:[#allocation126_spill] sm:$0xff]  ;;  %v8834_v46 = vld [vmem:[#allocation116_spill] sm:$0xff] }
 0x598   : > { %v7125_v38 = vsel %vm3164_vm13, %v3156_v27, %v2701_v39  ;;  %v2681_v12 = vpop.permute.xlu1 %2680  ;;  %3726 = vmatpush.msra.mxu2 %v3299_v43  ;;  %v3088_v31 = vsel %vm1497_vm7, %v3056_v41, %v8826_v37  ;;  %v8835_v41 = vld [vmem:[#allocation161_spill] sm:$0xff] }
 0x599   : > { %v7128_v22 = vsel %vm3164_vm13, %v3146_v44, %v2681_v12  ;;  %3418 = vmatpush.msra.mxu1 %v3299_v43  ;;  %v3297_v44 = vld [vmem:[%s7830_s3 + $0x8] sm:$0xff]  ;;  %v8823_v43 = vld [vmem:[#allocation25_spill] sm:$0xff]  ;;  %v3120_v34 = vsel %vm1563_vm8, %v3088_v31, %v8829_v30 }
 0x59a   : > { %3727 = vmatpush.msra.mxu2 %v3298_v33  ;;  %v8839_v31 = vld [vmem:[#allocation165_spill] sm:$0xff] }
 0x59b   : > { %3419 = vmatpush.msra.mxu1 %v3298_v33 }
 0x59c   : > { %3728 = vmatpush.msra.mxu2 %v3297_v44 }
 0x59d   : > { %2886 = vrot.lane.b32.xlu2 %v8819_v2, %s3811_s23  ;;  %2982 = vrot.lane.b32.xlu0 %v8799_v47, %s3812_s24  ;;  %v3159_v47 = vsel %vm1629_vm12, %v3127_v52, %v6963_v6  ;;  %v8821_v6 = vld [vmem:[#allocation33_spill] sm:$0xff]  ;;  %v8830_v52 = vld [vmem:[#allocation26_spill] sm:$0xff] }
 0x59e   : > { %2948 = vrot.lane.b32.xlu1 %v6359_v15, %s3812_s24  ;;  %3420 = vmatpush.msra.mxu1 %v3297_v44  ;;  %v3058_v12 = vsel %vm1431_vm6, %v6184_v49, %v8821_v6  ;;  %v3152_v33 = vsel %vm1629_vm12, %v3120_v34, %v8830_v52  ;;  %v8833_v6 = vld [vmem:[#allocation11_spill] sm:$0xff] }
 0x59f   : > { %v2707_v60 = vpop.permute.xlu2 %2706  ;;  %v2691_v27 = vpop.permute.xlu0 %2690  ;;  %3729 = vmatpush.msra.mxu2 %v3296_v5  ;;  %v3090_v3 = vsel %vm1497_vm7, %v3058_v12, %v8823_v43  ;;  %v8836_v43 = vld [vmem:[#allocation88_spill] sm:$0xff] }
 0x5a0   : > { %v7167_v39 = vsel %vm3164_vm13, %v3159_v47, %v2707_v60  ;;  %v7169_v18 = vpop.permute.xlu1 %2686  ;;  %v7172_v15 = vsel %vm3164_vm13, %v3151_v25, %v2691_v27  ;;  %v3122_v49 = vsel %vm1563_vm8, %v3090_v3, %v8827_v21  ;;  %3421 = vmatpush.msra.mxu1 %v3296_v5  ;;  %v8831_v27 = vld [vmem:[#allocation27_spill] sm:$0xff]  ;;  %v8832_v5 = vld [vmem:[#allocation205_spill] sm:$0xff] }
 0x5a1   : > { %v3154_v2 = vsel %vm1629_vm12, %v3122_v49, %v6955_v7  ;;  %v3061_v44 = vsel %vm1431_vm6, %v6203_v56, %v8831_v27  ;;  %v3059_v7 = vsel %vm1431_vm6, %v6172_v57, %v8832_v5  ;;  %v8838_v56 = vld [vmem:[#allocation77_spill] sm:$0xff]  ;;  %v8843_v5 = vld [vmem:[#allocation34_spill] sm:$0xff] }
 0x5a2   : > { %v3093_v12 = vsel %vm1497_vm7, %v3061_v44, %v8833_v6  ;;  %v3091_v3 = vsel %vm1497_vm7, %v3059_v7, %v8836_v43  ;;  %v8842_v44 = vld [vmem:[#allocation103_spill] sm:$0xff]  ;;  %v8845_v6 = vld [vmem:[#allocation124_spill] sm:$0xff]  ;;  %v8847_v43 = vld [vmem:[#allocation102_spill] sm:$0xff] }
 0x5a3   : > { %v3123_v57 = vsel %vm1563_vm8, %v3091_v3, %v8839_v31  ;;  %v8848_v3 = vld [vmem:[#allocation185_spill] sm:$0xff] }
 0x5a4   : > { %v3155_v34 = vsel %vm1629_vm12, %v3123_v57, %v6917_v0  ;;  %v8844_v0 = vld [vmem:[#allocation70_spill] sm:$0xff] }
 0x5a5   : > { %2854 = vrot.lane.b32.xlu2 %v8824_v42, %s3811_s23  ;;  %2792 = vrot.lane.b32.xlu0 %v8825_v19, %s3813_s25  ;;  %v8837_v42 = vld [vmem:[#allocation208_spill] sm:$0xff] }
 0x5a6   : > { %2758 = vrot.lane.b32.xlu1 %v8828_v61, %s3813_s25  ;;  %v3125_v37 = vsel %vm1563_vm8, %v3093_v12, %v8837_v42 }
 0x5a7   : > { %v2877_v55 = vpop.permute.xlu2 %2876  ;;  %v2697_v50 = vpop.permute.xlu0 %2696  ;;  %v3157_v21 = vsel %vm1629_vm12, %v3125_v37, %v6967_v58  ;;  %v3062_v58 = vsel %vm1431_vm6, %v8825_v19, %v8842_v44  ;;  %v8853_v44 = vld [vmem:[#allocation193_spill] sm:$0xff] }
 0x5a8   : > { %v2693_v25 = vpop.permute.xlu1 %2692  ;;  %v7205_v47 = vsel %vm3164_vm13, %v3154_v2, %v2697_v50  ;;  %v3094_v12 = vsel %vm1497_vm7, %v3062_v58, %v8845_v6 }
 0x5a9   : > { %v7208_v60 = vsel %vm3164_vm13, %v3152_v33, %v2693_v25  ;;  %v8840_v33 = vld [vmem:[#allocation12_spill] sm:$0xff]  ;;  %v3126_v19 = vsel %vm1563_vm8, %v3094_v12, %v8848_v3 }
 0x5aa   : > { %v8841_v25 = vld [vmem:[#allocation128_spill] sm:$0xff] }
 0x5ab   : > { %v3064_v27 = vsel %vm1431_vm6, %v8841_v25, %v8840_v33  ;;  %v8851_v33 = vld [vmem:[#allocation203_spill] sm:$0xff] }
 0x5ac   : > { %v3096_v7 = vsel %vm1497_vm7, %v3064_v27, %v8843_v5  ;;  %v8855_v5 = vld [vmem:[#allocation100_spill] sm:$0xff] }
 0x5ad   : > { %2888 = vrot.lane.b32.xlu2 %v8834_v46, %s3811_s23  ;;  %2984 = vrot.lane.b32.xlu0 %v8835_v41, %s3812_s24  ;;  %v8846_v46 = vld [vmem:[#allocation176_spill] sm:$0xff] }
 0x5ae   : > { %2950 = vrot.lane.b32.xlu1 %v8838_v56, %s3812_s24  ;;  %v3128_v41 = vsel %vm1563_vm8, %v3096_v7, %v8846_v46  ;;  %v8856_v7 = vld [vmem:[#allocation93_spill] sm:$0xff] }
 0x5af   : > { %v7232_v49 = vpop.permute.xlu2 %2844  ;;  %v2703_v30 = vpop.permute.xlu0 %2702  ;;  %v3160_v42 = vsel %vm1629_vm12, %v3128_v41, %v6979_v28  ;;  %v8852_v28 = vld [vmem:[#allocation149_spill] sm:$0xff] }
 0x5b0   : > { %v2699_v2 = vpop.permute.xlu1 %2698  ;;  %v7237_v50 = vsel %vm3164_vm13, %v3157_v21, %v2703_v30  ;;  %v8849_v30 = vld [vmem:[#allocation74_spill] sm:$0xff] }
 0x5b1   : > { %v7240_v52 = vsel %vm3164_vm13, %v3155_v34, %v2699_v2  ;;  %v8850_v34 = vld [vmem:[#allocation76_spill] sm:$0xff] }
 0x5b2   : > { %v3052_v2 = vsel %vm1431_vm6, %v8850_v34, %v8849_v30 }
 0x5b3   : > { %v3084_v27 = vsel %vm1497_vm7, %v3052_v2, %v8851_v33  ;;  %v8859_v2 = vld [vmem:[#allocation65_spill] sm:$0xff]  ;;  %v8861_v33 = vld [vmem:[#allocation174_spill] sm:$0xff] }
 0x5b5   : > { %2856 = vrot.lane.b32.xlu2 %v8844_v0, %s3811_s23  ;;  %2794 = vrot.lane.b32.xlu0 %v8816_v54, %s3813_s25  ;;  %v3158_v54 = vsel %vm1629_vm12, %v3126_v19, %v6929_v35  ;;  %v8854_v35 = vld [vmem:[#allocation31_spill] sm:$0xff] }
 0x5b6   : > { %2760 = vrot.lane.b32.xlu1 %v8847_v43, %s3813_s25  ;;  %v3116_v58 = vsel %vm1563_vm8, %v3084_v27, %v8854_v35  ;;  %v8862_v27 = vld [vmem:[#allocation115_spill] sm:$0xff] }
 0x5b7   : > { %v2879_v37 = vpop.permute.xlu2 %2878  ;;  %v2709_v56 = vpop.permute.xlu0 %2708  ;;  %v3148_v0 = vsel %vm1629_vm12, %v3116_v58, %v8856_v7  ;;  %v8863_v35 = vld [vmem:[#allocation175_spill] sm:$0xff] }
 0x5b8   : > { %v2705_v31 = vpop.permute.xlu1 %2704  ;;  %v7267_v57 = vsel %vm3164_vm13, %v3160_v42, %v2709_v56  ;;  %v3181_v46 = vsel %vm3164_vm13, %v3148_v0, %v7120_v29  ;;  %v8857_v56 = vld [vmem:[#allocation80_spill] sm:$0xff]  ;;  %v8860_v29 = vld [vmem:[#allocation145_spill] sm:$0xff] }
 0x5b9   : > { %v7270_v21 = vsel %vm3164_vm13, %v3158_v54, %v2705_v31  ;;  %v3779_v54 = vunpack.i.l.bf16 %v8857_v56  ;;  %v8858_v31 = vld [vmem:[#allocation163_spill] sm:$0xff] }
 0x5ba   : > { %v3784_v30 = vunpack.i.l.bf16 %v8858_v31 }
 0x5bd   : > { %2890 = vrot.lane.b32.xlu2 %v8852_v28, %s3811_s23  ;;  %2986 = vrot.lane.b32.xlu0 %v8853_v44, %s3812_s24 }
 0x5be   : > { %2952 = vrot.lane.b32.xlu1 %v8855_v5, %s3812_s24  ;;  %v8864_v5 = vld [vmem:[#allocation3_spill] sm:$0xff] }
 0x5bf   : > { %v7287_v6 = vpop.permute.xlu2 %2846  ;;  %v2973_v12 = vpop.permute.xlu0 %2972  ;;  %v3036_v7 = vsel %vm1431_vm6, %v8864_v5, %v3779_v54 }
 0x5c0   : > { %v2781_v41 = vpop.permute.xlu1 %2780 }
 0x5c1   : > { %v3214_v3 = vsel %vm3197_vm14, %v3181_v46, %v2781_v41  ;;  %v8865_v46 = vld [vmem:[#allocation47_spill] sm:$0xff]  ;;  %v8866_v41 = vld [vmem:[#allocation136_spill] sm:$0xff] }
 0x5c2   : > { %v3247_v19 = vsel %vm3230_vm15, %v3214_v3, %v2877_v55  ;;  %v3053_v55 = vsel %vm1431_vm6, %v8862_v27, %v8861_v33 }
 0x5c3   : > { %v3280_v42 = vsel %vm3263_vm0, %v3247_v19, %v2973_v12  ;;  %v3085_v58 = vsel %vm1497_vm7, %v3053_v55, %v8863_v35  ;;  %v3068_v12 = vsel %vm1497_vm7, %v3036_v7, %v3784_v30  ;;  %v8867_v19 = vld [vmem:[#allocation197_spill] sm:$0xff]  ;;  %v8869_v35 = vld [vmem:[#allocation94_spill] sm:$0xff] }
 0x5c4   : > { %3696 = vmatmul.msk.f32.vlgmr.msra.gmra.mxu2 %vm3309_vm1, %v3280_v42  ;;  %v3100_v3 = vsel %vm1563_vm8, %v3068_v12, %v8866_v41  ;;  %v8871_v7 = vld [vmem:[#allocation133_spill] sm:$0xff]  ;;  %v8872_v12 = vld [vmem:[#allocation192_spill] sm:$0xff] }
 0x5c5   : > { %2858 = vrot.lane.b32.xlu2 %v8859_v2, %s3811_s23  ;;  %2796 = vrot.lane.b32.xlu0 %v8841_v25, %s3813_s25  ;;  %v3117_v25 = vsel %vm1563_vm8, %v3085_v58, %v8865_v46  ;;  %v8868_v2 = vld [vmem:[#allocation22_spill] sm:$0xff] }
 0x5c6   : > { %2762 = vrot.lane.b32.xlu1 %v8860_v29, %s3813_s25  ;;  %v3149_v42 = vsel %vm1629_vm12, %v3117_v25, %v8867_v19  ;;  %v3132_v33 = vsel %vm1629_vm12, %v3100_v3, %v8868_v2  ;;  %v8870_v58 = vld [vmem:[#allocation78_spill] sm:$0xff]  ;;  %v3780_v19 = vunpack.i.h.bf16 %v8857_v56  ;;  %v8873_v2 = vld [vmem:[#allocation113_spill] sm:$0xff]  ;;  %v8876_v56 = vld [vmem:[#allocation87_spill] sm:$0xff] }
 0x5c7   : > { %v2881_v28 = vpop.permute.xlu2 %2880  ;;  %v2783_v44 = vpop.permute.xlu0 %2782  ;;  %v3182_v55 = vsel %vm3164_vm13, %v3149_v42, %v7169_v18  ;;  %v3165_v54 = vsel %vm3164_vm13, %v3132_v33, %v8869_v35  ;;  %v3785_v42 = vunpack.i.h.bf16 %v8858_v31 }
 0x5c8   : > { %v2749_v0 = vpop.permute.xlu1 %2748  ;;  %v3215_v30 = vsel %vm3197_vm14, %v3182_v55, %v2783_v44  ;;  %v8875_v55 = vld [vmem:[#allocation2_spill] sm:$0xff] }
 0x5c9   : > { %v3198_v5 = vsel %vm3197_vm14, %v3165_v54, %v2749_v0  ;;  %v3248_v18 = vsel %vm3230_vm15, %v3215_v30, %v2879_v37  ;;  %v8874_v37 = vld [vmem:[#allocation81_spill] sm:$0xff]  ;;  %v3037_v35 = vsel %vm1431_vm6, %v8875_v55, %v3780_v19 }
 0x5ca   : > { %v3231_v3 = vsel %vm3230_vm15, %v3198_v5, %v7232_v49  ;;  %v3069_v30 = vsel %vm1497_vm7, %v3037_v35, %v3785_v42  ;;  %v8877_v5 = vld [vmem:[#allocation96_spill] sm:$0xff] }
 0x5cb   : > { %v3101_v31 = vsel %vm1563_vm8, %v3069_v30, %v8876_v56  ;;  %v8884_v35 = vld [vmem:[#allocation112_spill] sm:$0xff]  ;;  %v8885_v56 = vld [vmem:[#allocation67_spill] sm:$0xff] }
 0x5cd   : > { %2892 = vrot.lane.b32.xlu2 %v8870_v58, %s3811_s23  ;;  %2988 = vrot.lane.b32.xlu0 %v8871_v7, %s3812_s24  ;;  %v3133_v58 = vsel %vm1629_vm12, %v3101_v31, %v8877_v5  ;;  %v8886_v5 = vld [vmem:[#allocation68_spill] sm:$0xff] }
 0x5ce   : > { %2954 = vrot.lane.b32.xlu1 %v8872_v12, %s3812_s24  ;;  %v3166_v7 = vsel %vm3164_vm13, %v3133_v58, %v6989_v59 }
 0x5cf   : > { %v2849_v46 = vpop.permute.xlu2 %2848  ;;  %v2975_v25 = vpop.permute.xlu0 %2974 }
 0x5d0   : > { %v2941_v41 = vpop.permute.xlu1 %2940  ;;  %v3281_v44 = vsel %vm3263_vm0, %v3248_v18, %v2975_v25  ;;  %v8878_v25 = vld [vmem:[#allocation150_spill] sm:$0xff] }
 0x5d1   : > { %v3264_v0 = vsel %vm3263_vm0, %v3231_v3, %v2941_v41  ;;  %3697 = vmatmul.msk.f32.gmra.mxu2 %vm3309_vm1, %v3281_v44  ;;  %v8879_v18 = vld [vmem:[#allocation86_spill] sm:$0xff]  ;;  %v8880_v41 = vld [vmem:[#allocation180_spill] sm:$0xff] }
 0x5d2   : > { %3680 = vmatmul.msk.f32.vlgmr.msra.gmra.mxu1 %vm3309_vm1, %v3264_v0 }
 0x5d5   : > { %2860 = vrot.lane.b32.xlu2 %v8873_v2, %s3811_s23  ;;  %2798 = vrot.lane.b32.xlu0 %v8874_v37, %s3813_s25  ;;  %v8881_v2 = vld [vmem:[#allocation8_spill] sm:$0xff] }
 0x5d6   : > { %2764 = vrot.lane.b32.xlu1 %v6047_v11, %s3813_s25 }
 0x5d7   : > { %v2883_v49 = vpop.permute.xlu2 %2882  ;;  %v2785_v33 = vpop.permute.xlu0 %2784 }
 0x5d8   : > { %v2751_v54 = vpop.permute.xlu1 %2750  ;;  %v3216_v11 = vsel %vm3197_vm14, %v7053_v63, %v2785_v33  ;;  %v8882_v33 = vld [vmem:[#allocation98_spill] sm:$0xff] }
 0x5d9   : > { %v3199_v12 = vsel %vm3197_vm14, %v3166_v7, %v2751_v54  ;;  %v3249_v0 = vsel %vm3230_vm15, %v3216_v11, %v2881_v28  ;;  %v8887_v7 = vld [vmem:[#allocation73_spill] sm:$0xff] }
 0x5da   : > { %v3232_v59 = vsel %vm3230_vm15, %v3199_v12, %v7287_v6  ;;  %v8883_v6 = vld [vmem:[#allocation64_spill] sm:$0xff] }
 0x5db   : > { %v3038_v54 = vsel %vm1431_vm6, %v8884_v35, %v8883_v6  ;;  %v8894_v35 = vld [vmem:[#allocation132_spill] sm:$0xff] }
 0x5dc   : > { %v3070_v31 = vsel %vm1497_vm7, %v3038_v54, %v8885_v56  ;;  %v8895_v56 = vld [vmem:[#allocation153_spill] sm:$0xff] }
 0x5dd   : > { %2894 = vrot.lane.b32.xlu2 %v8878_v25, %s3811_s23  ;;  %2990 = vrot.lane.b32.xlu0 %v8879_v18, %s3812_s24  ;;  %v3102_v58 = vsel %vm1563_vm8, %v3070_v31, %v8886_v5  ;;  %v8888_v18 = vld [vmem:[#allocation130_spill] sm:$0xff]  ;;  %v8896_v5 = vld [vmem:[#allocation55_spill] sm:$0xff] }
 0x5de   : > { %2956 = vrot.lane.b32.xlu1 %v8880_v41, %s3812_s24  ;;  %v3134_v11 = vsel %vm1629_vm12, %v3102_v58, %v8887_v7  ;;  %v8889_v41 = vld [vmem:[#allocation9_spill] sm:$0xff]  ;;  %v8897_v7 = vld [vmem:[#allocation206_spill] sm:$0xff] }
 0x5df   : > { %v2851_v3 = vpop.permute.xlu2 %2850  ;;  %v2977_v44 = vpop.permute.xlu0 %2976  ;;  %v3167_v12 = vsel %vm3164_vm13, %v3134_v11, %v7012_v20 }
 0x5e0   : > { %v2943_v19 = vpop.permute.xlu1 %2942  ;;  %v3282_v63 = vsel %vm3263_vm0, %v3249_v0, %v2977_v44  ;;  %v8890_v44 = vld [vmem:[#allocation160_spill] sm:$0xff] }
 0x5e1   : > { %v3265_v42 = vsel %vm3263_vm0, %v3232_v59, %v2943_v19  ;;  %3698 = vmatmul.msk.f32.gmra.mxu2 %vm3309_vm1, %v3282_v63 }
 0x5e2   : > { %3681 = vmatmul.msk.f32.gmra.mxu1 %vm3309_vm1, %v3265_v42 }
 0x5e5   : > { %2862 = vrot.lane.b32.xlu2 %v8881_v2, %s3811_s23  ;;  %2800 = vrot.lane.b32.xlu0 %v8882_v33, %s3813_s25  ;;  %v8891_v2 = vld [vmem:[#allocation135_spill] sm:$0xff] }
 0x5e6   : > { %2766 = vrot.lane.b32.xlu1 %v6050_v16, %s3813_s25 }
 0x5e7   : > { %v2885_v28 = vpop.permute.xlu2 %2884  ;;  %v2787_v55 = vpop.permute.xlu0 %2786 }
 0x5e8   : > { %v2753_v30 = vpop.permute.xlu1 %2752  ;;  %v3217_v16 = vsel %vm3197_vm14, %v7172_v15, %v2787_v55  ;;  %v8892_v55 = vld [vmem:[#allocation118_spill] sm:$0xff] }
 0x5e9   : > { %v3200_v25 = vsel %vm3197_vm14, %v3167_v12, %v2753_v30  ;;  %v3250_v59 = vsel %vm3230_vm15, %v3217_v16, %v2883_v49  ;;  %v8898_v12 = vld [vmem:[#allocation24_spill] sm:$0xff] }
 0x5ea   : > { %v3233_v20 = vsel %vm3230_vm15, %v3200_v25, %v2849_v46  ;;  %v8893_v46 = vld [vmem:[#allocation131_spill] sm:$0xff] }
 0x5eb   : > { %v3039_v54 = vsel %vm1431_vm6, %v8894_v35, %v8893_v46  ;;  %v8905_v35 = vld [vmem:[#allocation169_spill] sm:$0xff] }
 0x5ec   : > { %v3071_v31 = vsel %vm1497_vm7, %v3039_v54, %v8895_v56 }
 0x5ed   : > { %2896 = vrot.lane.b32.xlu2 %v8888_v18, %s3811_s23  ;;  %2992 = vrot.lane.b32.xlu0 %v8889_v41, %s3812_s24  ;;  %v3103_v58 = vsel %vm1563_vm8, %v3071_v31, %v8896_v5  ;;  %v8899_v18 = vld [vmem:[#allocation166_spill] sm:$0xff]  ;;  %v8900_v41 = vld [vmem:[#allocation79_spill] sm:$0xff] }
 0x5ee   : > { %2958 = vrot.lane.b32.xlu1 %v8890_v44, %s3812_s24  ;;  %v3135_v11 = vsel %vm1629_vm12, %v3103_v58, %v8897_v7  ;;  %v8901_v44 = vld [vmem:[#allocation85_spill] sm:$0xff]  ;;  %v8907_v5 = vld [vmem:[#allocation183_spill] sm:$0xff] }
 0x5ef   : > { %v2853_v0 = vpop.permute.xlu2 %2852  ;;  %v2979_v19 = vpop.permute.xlu0 %2978  ;;  %v3168_v16 = vsel %vm3164_vm13, %v3135_v11, %v8898_v12  ;;  %v8908_v11 = vld [vmem:[#allocation16_spill] sm:$0xff] }
 0x5f0   : > { %v2945_v63 = vpop.permute.xlu1 %2944  ;;  %v3283_v15 = vsel %vm3263_vm0, %v3250_v59, %v2979_v19 }
 0x5f1   : > { %v3266_v42 = vsel %vm3263_vm0, %v3233_v20, %v2945_v63  ;;  %3699 = vmatmul.msk.f32.gmra.mxu2 %vm3309_vm1, %v3283_v15 }
 0x5f2   : > { %3682 = vmatmul.msk.f32.gmra.mxu1 %vm3309_vm1, %v3266_v42 }
 0x5f5   : > { %2864 = vrot.lane.b32.xlu2 %v8891_v2, %s3811_s23  ;;  %2802 = vrot.lane.b32.xlu0 %v8892_v55, %s3813_s25  ;;  %v8902_v2 = vld [vmem:[#allocation170_spill] sm:$0xff] }
 0x5f6   : > { %2768 = vrot.lane.b32.xlu1 %v6075_v8, %s3813_s25 }
 0x5f7   : > { %v2887_v49 = vpop.permute.xlu2 %2886  ;;  %v2789_v6 = vpop.permute.xlu0 %2788 }
 0x5f8   : > { %v2755_v30 = vpop.permute.xlu1 %2754  ;;  %v3218_v8 = vsel %vm3197_vm14, %v7208_v60, %v2789_v6  ;;  %v8903_v6 = vld [vmem:[#allocation194_spill] sm:$0xff] }
 0x5f9   : > { %v3201_v25 = vsel %vm3197_vm14, %v3168_v16, %v2755_v30  ;;  %v3251_v63 = vsel %vm3230_vm15, %v3218_v8, %v2885_v28  ;;  %v8906_v30 = vld [vmem:[#allocation134_spill] sm:$0xff]  ;;  %v2647_v7 = vrot.slane %v8903_v6, 2  ;;  %v8909_v16 = vld [vmem:[#allocation177_spill] sm:$0xff] }
 0x5fa   : > { %v3234_v15 = vsel %vm3230_vm15, %v3201_v25, %v2851_v3  ;;  %v8904_v3 = vld [vmem:[#allocation151_spill] sm:$0xff]  ;;  %v2648_v56 = vrot.slane %v8906_v30, 2 }
 0x5fb   : > { %v3040_v54 = vsel %vm1431_vm6, %v8905_v35, %v8904_v3  ;;  %v8914_v3 = vld [vmem:[#allocation143_spill] sm:$0xff] }
 0x5fc   : > { %v3072_v58 = vsel %vm1497_vm7, %v3040_v54, %v8907_v5 }
 0x5fd   : > { %2898 = vrot.lane.b32.xlu2 %v8899_v18, %s3811_s23  ;;  %2994 = vrot.lane.b32.xlu0 %v8900_v41, %s3812_s24  ;;  %v3104_v12 = vsel %vm1563_vm8, %v3072_v58, %v8908_v11  ;;  %v2649_v18 = vsel %vm633_vm2, %v2647_v7, %v2648_v56  ;;  %v8916_v58 = vld [vmem:[#allocation196_spill] sm:$0xff] }
 0x5fe   : > { %2960 = vrot.lane.b32.xlu1 %v8901_v44, %s3812_s24 }
 0x5ff   : > { %v2855_v19 = vpop.permute.xlu2 %2854  ;;  %v2981_v59 = vpop.permute.xlu0 %2980 }
 0x600   : > { %v2947_v20 = vpop.permute.xlu1 %2946  ;;  %v3284_v60 = vsel %vm3263_vm0, %v3251_v63, %v2981_v59  ;;  %v8910_v59 = vld [vmem:[#allocation106_spill] sm:$0xff]  ;;  %v8911_v63 = vld [vmem:[#allocation141_spill] sm:$0xff] }
 0x601   : > { %v3267_v42 = vsel %vm3263_vm0, %v3234_v15, %v2947_v20  ;;  %3700 = vmatmul.msk.f32.gmra.mxu2 %vm3309_vm1, %v3284_v60 }
 0x602   : > { %3683 = vmatmul.msk.f32.gmra.mxu1 %vm3309_vm1, %v3267_v42 }
 0x605   : > { %2866 = vrot.lane.b32.xlu2 %v8902_v2, %s3811_s23  ;;  %2804 = vrot.lane.b32.xlu0 %v8903_v6, %s3813_s25  ;;  %v8912_v6 = vld [vmem:[#allocation164_spill] sm:$0xff] }
 0x606   : > { %2770 = vrot.lane.b32.xlu1 %v6078_v51, %s3813_s25  ;;  %v3136_v51 = vsel %vm1629_vm12, %v3104_v12, %v8909_v16 }
 0x607   : > { %v2889_v28 = vpop.permute.xlu2 %2888  ;;  %v2791_v46 = vpop.permute.xlu0 %2790  ;;  %v3169_v8 = vsel %vm3164_vm13, %v3136_v51, %v7007_v45  ;;  %v8918_v51 = vld [vmem:[#allocation119_spill] sm:$0xff] }
 0x608   : > { %v2757_v31 = vpop.permute.xlu1 %2756  ;;  %v3219_v25 = vsel %vm3197_vm14, %v7082_v9, %v2791_v46 }
 0x609   : > { %v3202_v44 = vsel %vm3197_vm14, %v3169_v8, %v2757_v31  ;;  %v3252_v60 = vsel %vm3230_vm15, %v3219_v25, %v2887_v49  ;;  %v8915_v31 = vld [vmem:[#allocation69_spill] sm:$0xff]  ;;  %v8919_v8 = vld [vmem:[#allocation190_spill] sm:$0xff] }
 0x60a   : > { %v3235_v42 = vsel %vm3230_vm15, %v3202_v44, %v2853_v0  ;;  %v8913_v0 = vld [vmem:[#allocation29_spill] sm:$0xff] }
 0x60b   : > { %v3041_v35 = vsel %vm1431_vm6, %v8914_v3, %v8913_v0  ;;  %v8923_v0 = vld [vmem:[#allocation89_spill] sm:$0xff] }
 0x60c   : > { %v3073_v5 = vsel %vm1497_vm7, %v3041_v35, %v8915_v31  ;;  %v8924_v3 = vld [vmem:[#allocation41_spill] sm:$0xff]  ;;  %v8925_v35 = vld [vmem:[#allocation39_spill] sm:$0xff] }
 0x60d   : > { %2900 = vrot.lane.b32.xlu2 %v8910_v59, %s3811_s23  ;;  %2996 = vrot.lane.b32.xlu0 %v2649_v18, %s3812_s24  ;;  %v3105_v7 = vsel %vm1563_vm8, %v3073_v5, %v8916_v58  ;;  %v8927_v5 = vld [vmem:[#allocation21_spill] sm:$0xff]  ;;  %v8928_v58 = vld [vmem:[#allocation146_spill] sm:$0xff] }
 0x60e   : > { %2962 = vrot.lane.b32.xlu1 %v8911_v63, %s3812_s24 }
 0x60f   : > { %v2857_v20 = vpop.permute.xlu2 %2856  ;;  %v2983_v15 = vpop.permute.xlu0 %2982 }
 0x610   : > { %v2949_v45 = vpop.permute.xlu1 %2948  ;;  %v3285_v9 = vsel %vm3263_vm0, %v3252_v60, %v2983_v15  ;;  %v8920_v15 = vld [vmem:[#allocation42_spill] sm:$0xff] }
 0x611   : > { %v3268_v2 = vsel %vm3263_vm0, %v3235_v42, %v2949_v45  ;;  %3701 = vmatmul.msk.f32.gmra.mxu2 %vm3309_vm1, %v3285_v9  ;;  %v2650_v60 = vrot.slane %v8920_v15, 2  ;;  %v8933_v15 = vld [vmem:[#allocation207_spill] sm:$0xff] }
 0x612   : > { %3684 = vmatmul.msk.f32.gmra.mxu1 %vm3309_vm1, %v3268_v2 }
 0x613   : > { %v2651_v42 = vsel %vm633_vm2, %v2648_v56, %v2650_v60 }
 0x615   : > { %2710 = vrot.lane.b32.xlu2 %v8900_v41, %s3810_s22  ;;  %2868 = vrot.lane.b32.xlu0 %v8912_v6, %s3811_s23  ;;  %v8917_v41 = vld [vmem:[#allocation75_spill] sm:$0xff]  ;;  %v8922_v6 = vld [vmem:[#allocation32_spill] sm:$0xff] }
 0x616   : > { %2772 = vrot.lane.b32.xlu1 %v8850_v34, %s3813_s25  ;;  %v3137_v11 = vsel %vm1629_vm12, %v3105_v7, %v8917_v41 }
 0x617   : > { %v2891_v49 = vpop.permute.xlu2 %2890  ;;  %v2793_v46 = vpop.permute.xlu0 %2792  ;;  %v3170_v12 = vsel %vm3164_vm13, %v3137_v11, %v7033_v14 }
 0x618   : > { %v2759_v54 = vpop.permute.xlu1 %2758  ;;  %v3220_v34 = vsel %vm3197_vm14, %v7205_v47, %v2793_v46 }
 0x619   : > { %v3203_v16 = vsel %vm3197_vm14, %v3170_v12, %v2759_v54  ;;  %v3253_v59 = vsel %vm3230_vm15, %v3220_v34, %v2889_v28 }
 0x61a   : > { %v3236_v14 = vsel %vm3230_vm15, %v3203_v16, %v2855_v19 }
 0x61d   : > { %2964 = vrot.lane.b32.xlu2 %v8918_v51, %s3812_s24  ;;  %2902 = vrot.lane.b32.xlu0 %v8919_v8, %s3811_s23  ;;  %v8929_v51 = vld [vmem:[#allocation52_spill] sm:$0xff] }
 0x61e   : > { %2806 = vrot.lane.b32.xlu1 %v8906_v30, %s3813_s25  ;;  %v8921_v30 = vld [vmem:[#allocation202_spill] sm:$0xff]  ;;  %v8930_v8 = vld [vmem:[#allocation4_spill] sm:$0xff] }
 0x61f   : > { %v2859_v25 = vpop.permute.xlu2 %2858  ;;  %v2985_v44 = vpop.permute.xlu0 %2984  ;;  %v3042_v9 = vsel %vm1431_vm6, %v5965_v48, %v8921_v30  ;;  %v8926_v48 = vld [vmem:[#allocation200_spill] sm:$0xff] }
 0x620   : > { %v2951_v63 = vpop.permute.xlu1 %2950  ;;  %v3286_v47 = vsel %vm3263_vm0, %v3253_v59, %v2985_v44  ;;  %v3074_v46 = vsel %vm1497_vm7, %v3042_v9, %v8922_v6 }
 0x621   : > { %v3269_v45 = vsel %vm3263_vm0, %v3236_v14, %v2951_v63  ;;  %3702 = vmatmul.msk.f32.gmra.mxu2 %vm3309_vm1, %v3286_v47  ;;  %v3106_v56 = vsel %vm1563_vm8, %v3074_v46, %v8923_v0  ;;  %v8932_v14 = vld [vmem:[#allocation195_spill] sm:$0xff] }
 0x622   : > { %3685 = vmatmul.msk.f32.gmra.mxu1 %vm3309_vm1, %v3269_v45  ;;  %v8934_v45 = vld [vmem:[#allocation156_spill] sm:$0xff] }
 0x625   : > { %2774 = vrot.lane.b32.xlu2 %v8862_v27, %s3813_s25  ;;  %2712 = vrot.lane.b32.xlu0 %v2649_v18, %s3810_s22  ;;  %v3138_v27 = vsel %vm1629_vm12, %v3106_v56, %v8924_v3 }
 0x626   : > { %2998 = vrot.lane.b32.xlu1 %v2651_v42, %s3812_s24  ;;  %v3171_v18 = vsel %vm3164_vm13, %v3138_v27, %v8925_v35  ;;  %v8937_v27 = vld [vmem:[#allocation53_spill] sm:$0xff]  ;;  %v8939_v35 = vld [vmem:[#allocation182_spill] sm:$0xff] }
 0x627   : > { %v2893_v19 = vpop.permute.xlu2 %2892  ;;  %v2795_v28 = vpop.permute.xlu0 %2794 }
 0x628   : > { %v2761_v2 = vpop.permute.xlu1 %2760  ;;  %v3221_v54 = vsel %vm3197_vm14, %v7240_v52, %v2795_v28 }
 0x629   : > { %v3204_v31 = vsel %vm3197_vm14, %v3171_v18, %v2761_v2  ;;  %v3254_v11 = vsel %vm3230_vm15, %v3221_v54, %v2891_v49  ;;  %v8936_v2 = vld [vmem:[#allocation40_spill] sm:$0xff]  ;;  %v3044_v18 = vsel %vm1431_vm6, %v8811_v17, %v8939_v35  ;;  %v8942_v17 = vld [vmem:[#allocation59_spill] sm:$0xff] }
 0x62a   : > { %v3237_v34 = vsel %vm3230_vm15, %v3204_v31, %v2857_v20  ;;  %v8931_v20 = vld [vmem:[#allocation120_spill] sm:$0xff] }
 0x62b   : > { %v3043_v59 = vsel %vm1431_vm6, %v5968_v24, %v8931_v20  ;;  %v8935_v24 = vld [vmem:[#allocation97_spill] sm:$0xff] }
 0x62c   : > { %v3075_v47 = vsel %vm1497_vm7, %v3043_v59, %v8932_v14 }
 0x62d   : > { %3787 = vrot.lane.b32.xlu2 %v8926_v48, %s3813_s25  ;;  %2966 = vrot.lane.b32.xlu0 %v8927_v5, %s3812_s24  ;;  %v3107_v60 = vsel %vm1563_vm8, %v3075_v47, %v8933_v15  ;;  %v8940_v5 = vld [vmem:[#allocation51_spill] sm:$0xff] }
 0x62e   : > { %2870 = vrot.lane.b32.xlu1 %v8928_v58, %s3811_s23  ;;  %v3139_v28 = vsel %vm1629_vm12, %v3107_v60, %v8934_v45  ;;  %v3076_v58 = vsel %vm1497_vm7, %v3044_v18, %v8940_v5 }
 0x62f   : > { %v2861_v7 = vpop.permute.xlu2 %2860  ;;  %v2987_v41 = vpop.permute.xlu0 %2986 }
 0x630   : > { %v2953_v12 = vpop.permute.xlu1 %2952  ;;  %v3287_v52 = vsel %vm3263_vm0, %v3254_v11, %v2987_v41  ;;  %v8941_v41 = vld [vmem:[#allocation90_spill] sm:$0xff] }
 0x631   : > { %v3270_v16 = vsel %vm3263_vm0, %v3237_v34, %v2953_v12  ;;  %3703 = vmatmul.msk.f32.gmra.mxu2 %vm3309_vm1, %v3287_v52  ;;  %v3108_v11 = vsel %vm1563_vm8, %v3076_v58, %v8941_v41 }
 0x632   : > { %3686 = vmatmul.msk.f32.gmra.mxu1 %vm3309_vm1, %v3270_v16  ;;  %v3140_v34 = vsel %vm1629_vm12, %v3108_v11, %v8942_v17 }
 0x633   : > { %v3173_v52 = vsel %vm3164_vm13, %v3140_v34, %v7055_v62 }
 0x635   : > { %3000 = vrot.lane.b32.xlu2 %v8929_v51, %s3812_s24  ;;  %2776 = vrot.lane.b32.xlu0 %v6149_v32, %s3813_s25  ;;  %v3172_v32 = vsel %vm3164_vm13, %v3139_v28, %v7028_v4 }
 0x636   : > { %2904 = vrot.lane.b32.xlu1 %v8930_v8, %s3811_s23  ;;  %v8943_v8 = vld [vmem:[#allocation191_spill] sm:$0xff] }
 0x637   : > { %v2895_v49 = vpop.permute.xlu2 %2894  ;;  %v2797_v44 = vpop.permute.xlu0 %2796 }
 0x638   : > { %v2763_v63 = vpop.permute.xlu1 %2762  ;;  %v3222_v30 = vsel %vm3197_vm14, %v7125_v38, %v2797_v44  ;;  %v8944_v44 = vld [vmem:[#allocation148_spill] sm:$0xff] }
 0x639   : > { %v3205_v9 = vsel %vm3197_vm14, %v3172_v32, %v2763_v63  ;;  %v3255_v0 = vsel %vm3230_vm15, %v3222_v30, %v2893_v19 }
 0x63a   : > { %v3238_v4 = vsel %vm3230_vm15, %v3205_v9, %v2859_v25  ;;  %v8938_v25 = vld [vmem:[#allocation5_spill] sm:$0xff] }
 0x63d   : > { %2872 = vrot.lane.b32.xlu2 %v8935_v24, %s3811_s23  ;;  %2968 = vrot.lane.b32.xlu0 %v8936_v2, %s3812_s24  ;;  %v8946_v2 = vld [vmem:[#allocation189_spill] sm:$0xff] }
 0x63e   : > { %2714 = vrot.lane.b32.xlu1 %v2651_v42, %s3810_s22  ;;  %v7567_v42 = vld [vmem:[%s7831_s4] ss:$0 sm:$0xff] }
 0x63f   : > { %v2863_v6 = vpop.permute.xlu2 %2862  ;;  %v2989_v46 = vpop.permute.xlu0 %2988 }
 0x640   : > { %v2955_v56 = vpop.permute.xlu1 %2954  ;;  %v3288_v38 = vsel %vm3263_vm0, %v3255_v0, %v2989_v46  ;;  %v8947_v0 = vld [vmem:[#allocation20_spill] sm:$0xff] }
 0x641   : > { %v3271_v3 = vsel %vm3263_vm0, %v3238_v4, %v2955_v56  ;;  %3704 = vmatmul.msk.f32.gmra.mxu2 %vm3309_vm1, %v3288_v38  ;;  %v8948_v4 = vld [vmem:[#allocation137_spill] sm:$0xff] }
 0x642   : > { %3687 = vmatmul.msk.f32.gmra.mxu1 %vm3309_vm1, %v3271_v3 }
 0x645   : > { %3002 = vrot.lane.b32.xlu2 %v8937_v27, %s3812_s24  ;;  %2778 = vrot.lane.b32.xlu0 %v8814_v40, %s3813_s25  ;;  %s7586_s25 = scalar_lea.vmem %s7832_s5, %s3714_s20 }
 0x646   : > { %2906 = vrot.lane.b32.xlu1 %v8938_v25, %s3811_s23 }
 0x647   : > { %v3471_v19 = vpop.f32.mrf.mxu2  ;;  %v2799_v48 = vpop.permute.xlu0 %2798 }
 0x648   : > { %v3472_v54 = vadd.f32 %v7567_v42, %v3471_v19  ;;  %v2765_v31 = vpop.permute.xlu1 %2764  ;;  %v2897_v40 = vpop.permute.xlu2 %2896  ;;  %v3223_v51 = vsel %vm3197_vm14, %v7237_v50, %v2799_v48 }
 0x649   : > { %v3206_v16 = vsel %vm3197_vm14, %v3173_v52, %v2765_v31  ;;  %v3256_v47 = vsel %vm3230_vm15, %v3223_v51, %v2895_v49  ;;  %v8950_v52 = vld [vmem:[#allocation17_spill] sm:$0xff] }
 0x64a   : > { %v3535_v12 = vmax.f32 %v3472_v54, 0.0  ;;  %v3239_v62 = vsel %vm3230_vm15, %v3206_v16, %v2861_v7  ;;  %v8945_v7 = vld [vmem:[#allocation204_spill] sm:$0xff]  ;;  %v8951_v51 = vld [vmem:[#allocation37_spill] sm:$0xff] }
 0x64b   : > { %v3045_v49 = vsel %vm1431_vm6, %v8828_v61, %v8945_v7 }
 0x64c   : > { %3567 = vst.msk [vmem:[%s7586_s25 + $0x80] sm:$0xff] %vm1431_vm6, %v3535_v12  ;;  %v3077_v46 = vsel %vm1497_vm7, %v3045_v49, %v8946_v2 }
 0x64d   : > { %2970 = vrot.lane.b32.xlu2 %v8943_v8, %s3812_s24  ;;  %v3109_v56 = vsel %vm1563_vm8, %v3077_v46, %v8947_v0  ;;  %v8954_v46 = vld [vmem:[#allocation122_spill] sm:$0xff] }
 0x64e   : > { %2874 = vrot.lane.b32.xlu1 %v8944_v44, %s3811_s23  ;;  %v3141_v38 = vsel %vm1629_vm12, %v3109_v56, %v8948_v4  ;;  %v8952_v44 = vld [vmem:[#allocation186_spill] sm:$0xff]  ;;  %v8955_v56 = vld [vmem:[#allocation92_spill] sm:$0xff] }
 0x64f   : > { %v3423_v20 = vpop.f32.mrf.mxu1  ;;  %v2991_v14 = vpop.permute.xlu0 %2990  ;;  %v3174_v3 = vsel %vm3164_vm13, %v3141_v38, %v6987_v23  ;;  %v8956_v38 = vld [vmem:[#allocation147_spill] sm:$0xff] }
 0x650   : > { %v3424_v59 = vadd.f32 %v7567_v42, %v3423_v20  ;;  %v2957_v63 = vpop.permute.xlu1 %2956  ;;  %v3289_v50 = vsel %vm3263_vm0, %v3256_v47, %v2991_v14  ;;  %v2865_v45 = vpop.permute.xlu2 %2864 }
 0x651   : > { %v3272_v15 = vsel %vm3263_vm0, %v3239_v62, %v2957_v63  ;;  %3705 = vmatmul.msk.f32.gmra.mxu2 %vm3309_vm1, %v3289_v50 }
 0x652   : > { %v3519_v60 = vmax.f32 %v3424_v59, 0.0  ;;  %3688 = vmatmul.msk.f32.gmra.mxu1 %vm3309_vm1, %v3272_v15 }
 0x654   : > { %3551 = vst.msk [vmem:[%s7586_s25] sm:$0xff] %vm1431_vm6, %v3519_v60  ;;  %v3474_v28 = vpop.f32.mrf.mxu2 }
 0x655   : > { %v3475_v32 = vadd.f32 %v7567_v42, %v3474_v28 }
 0x657   : > { %v3536_v30 = vmax.f32 %v3475_v32, 0.0  ;;  %v2801_v24 = vpop.permute.xlu0 %2800 }
 0x658   : > { %v2767_v9 = vpop.permute.xlu1 %2766  ;;  %v2899_v27 = vpop.permute.xlu2 %2898  ;;  %v3224_v25 = vsel %vm3197_vm14, %v7270_v21, %v2801_v24 }
 0x659   : > { %3568 = vst.msk [vmem:[%s7586_s25 + $0x88] sm:$0xff] %vm1431_vm6, %v3536_v30  ;;  %v3207_v61 = vsel %vm3197_vm14, %v3174_v3, %v2767_v9  ;;  %v3257_v48 = vsel %vm3230_vm15, %v3224_v25, %v2897_v40 }
 0x65a   : > { %v3240_v31 = vsel %vm3230_vm15, %v3207_v61, %v2863_v6  ;;  %v8949_v6 = vld [vmem:[#allocation10_spill] sm:$0xff] }
 0x65b   : > { %v3046_v40 = vsel %vm1431_vm6, %v8847_v43, %v8949_v6 }
 0x65c   : > { %v3078_v16 = vsel %vm1497_vm7, %v3046_v40, %v8950_v52 }
 0x65d   : > { %v3110_v8 = vsel %vm1563_vm8, %v3078_v16, %v8951_v51  ;;  %v8957_v16 = vld [vmem:[#allocation83_spill] sm:$0xff] }
 0x65e   : > { %v3142_v20 = vsel %vm1629_vm12, %v3110_v8, %v8952_v44  ;;  %v3065_v51 = vsel %vm1431_vm6, %v8874_v37, %v8957_v16  ;;  %v8966_v16 = vld [vmem:[#allocation154_spill] sm:$0xff] }
 0x65f   : > { %v3426_v19 = vpop.f32.mrf.mxu1  ;;  %v2993_v54 = vpop.permute.xlu0 %2992  ;;  %v3175_v59 = vsel %vm3164_vm13, %v3142_v20, %v7050_v13 }
 0x660   : > { %v3427_v35 = vadd.f32 %v7567_v42, %v3426_v19  ;;  %v2959_v18 = vpop.permute.xlu1 %2958  ;;  %v3290_v23 = vsel %vm3263_vm0, %v3257_v48, %v2993_v54  ;;  %v2867_v11 = vpop.permute.xlu2 %2866 }
 0x661   : > { %v3273_v5 = vsel %vm3263_vm0, %v3240_v31, %v2959_v18  ;;  %3706 = vmatmul.msk.f32.gmra.mxu2 %vm3309_vm1, %v3290_v23 }
 0x662   : > { %v3520_v58 = vmax.f32 %v3427_v35, 0.0  ;;  %3689 = vmatmul.msk.f32.gmra.mxu1 %vm3309_vm1, %v3273_v5 }
 0x664   : > { %3552 = vst.msk [vmem:[%s7586_s25 + $0x8] sm:$0xff] %vm1431_vm6, %v3520_v58  ;;  %v3477_v21 = vpop.f32.mrf.mxu2 }
 0x665   : > { %v3478_v41 = vadd.f32 %v7567_v42, %v3477_v21 }
 0x667   : > { %v3537_v12 = vmax.f32 %v3478_v41, 0.0  ;;  %v2803_v34 = vpop.permute.xlu0 %2802 }
 0x668   : > { %v2769_v17 = vpop.permute.xlu1 %2768  ;;  %v3225_v43 = vsel %vm3197_vm14, %v7167_v39, %v2803_v34  ;;  %v2901_v28 = vpop.permute.xlu2 %2900 }
 0x669   : > { %3569 = vst.msk [vmem:[%s7586_s25 + $0x90] sm:$0xff] %vm1431_vm6, %v3537_v12  ;;  %v3208_v63 = vsel %vm3197_vm14, %v3175_v59, %v2769_v17  ;;  %v3258_v60 = vsel %vm3230_vm15, %v3225_v43, %v2899_v27  ;;  %v8958_v59 = vld [vmem:[#allocation104_spill] sm:$0xff] }
 0x66a   : > { %v3241_v50 = vsel %vm3230_vm15, %v3208_v63, %v2865_v45  ;;  %v8953_v45 = vld [vmem:[#allocation28_spill] sm:$0xff]  ;;  %v8959_v63 = vld [vmem:[#allocation198_spill] sm:$0xff] }
 0x66b   : > { %v3047_v9 = vsel %vm1431_vm6, %v8860_v29, %v8953_v45 }
 0x66c   : > { %v3079_v0 = vsel %vm1497_vm7, %v3047_v9, %v8954_v46  ;;  %v8961_v46 = vld [vmem:[#allocation30_spill] sm:$0xff] }
 0x66d   : > { %v3111_v4 = vsel %vm1563_vm8, %v3079_v0, %v8955_v56  ;;  %v3066_v0 = vsel %vm1431_vm6, %v8882_v33, %v8961_v46 }
 0x66e   : > { %v3143_v3 = vsel %vm1629_vm12, %v3111_v4, %v8956_v38  ;;  %v8962_v4 = vld [vmem:[#allocation46_spill] sm:$0xff] }
 0x66f   : > { %v3429_v14 = vpop.f32.mrf.mxu1  ;;  %v2995_v15 = vpop.permute.xlu0 %2994  ;;  %v3176_v61 = vsel %vm3164_vm13, %v3143_v3, %v7084_v36  ;;  %v3098_v38 = vsel %vm1497_vm7, %v3066_v0, %v8962_v4 }
 0x670   : > { %v3430_v62 = vadd.f32 %v7567_v42, %v3429_v14  ;;  %v2961_v47 = vpop.permute.xlu1 %2960  ;;  %v3291_v13 = vsel %vm3263_vm0, %v3258_v60, %v2995_v15  ;;  %v2711_v27 = vpop.permute.xlu2 %2710 }
 0x671   : > { %v3274_v32 = vsel %vm3263_vm0, %v3241_v50, %v2961_v47  ;;  %3707 = vmatmul.msk.f32.gmra.mxu2 %vm3309_vm1, %v3291_v13 }
 0x672   : > { %v3521_v30 = vmax.f32 %v3430_v62, 0.0  ;;  %3690 = vmatmul.msk.f32.gmra.mxu1 %vm3309_vm1, %v3274_v32  ;;  %v8960_v62 = vld [vmem:[#allocation15_spill] sm:$0xff] }
 0x674   : > { %3553 = vst.msk [vmem:[%s7586_s25 + $0x10] sm:$0xff] %vm1431_vm6, %v3521_v30  ;;  %v3480_v39 = vpop.f32.mrf.mxu2 }
 0x675   : > { %v3481_v7 = vadd.f32 %v7567_v42, %v3480_v39 }
 0x677   : > { %v3538_v49 = vmax.f32 %v3481_v7, 0.0  ;;  %v2805_v2 = vpop.permute.xlu0 %2804 }
 0x678   : > { %v2771_v24 = vpop.permute.xlu1 %2770  ;;  %v3226_v25 = vsel %vm3197_vm14, %v7267_v57, %v2805_v2  ;;  %v2965_v58 = vpop.permute.xlu2 %2964 }
 0x679   : > { %3570 = vst.msk [vmem:[%s7586_s25 + $0x98] sm:$0xff] %vm1431_vm6, %v3538_v49  ;;  %v3209_v29 = vsel %vm3197_vm14, %v3176_v61, %v2771_v24  ;;  %v3259_v48 = vsel %vm3230_vm15, %v3226_v25, %v2901_v28  ;;  %v8963_v61 = vld [vmem:[#allocation125_spill] sm:$0xff]  ;;  %v8964_v25 = vld [vmem:[#allocation6_spill] sm:$0xff] }
 0x67a   : > { %v3242_v31 = vsel %vm3230_vm15, %v3209_v29, %v2867_v11 }
 0x67f   : > { %v3432_v19 = vpop.f32.mrf.mxu1  ;;  %v2997_v54 = vpop.permute.xlu0 %2996 }
 0x680   : > { %v3433_v35 = vadd.f32 %v7567_v42, %v3432_v19  ;;  %v2963_v18 = vpop.permute.xlu1 %2962  ;;  %v3292_v23 = vsel %vm3263_vm0, %v3259_v48, %v2997_v54  ;;  %v2775_v34 = vpop.permute.xlu2 %2774 }
 0x681   : > { %v3275_v5 = vsel %vm3263_vm0, %v3242_v31, %v2963_v18  ;;  %3708 = vmatmul.msk.f32.gmra.mxu2 %vm3309_vm1, %v3292_v23  ;;  %v3211_v45 = vsel %vm3197_vm14, %v7087_v53, %v2775_v34  ;;  %v3130_v53 = vsel %vm1563_vm8, %v3098_v38, %v8963_v61 }
 0x682   : > { %v3522_v36 = vmax.f32 %v3433_v35, 0.0  ;;  %3691 = vmatmul.msk.f32.gmra.mxu1 %vm3309_vm1, %v3275_v5  ;;  %v3162_v19 = vsel %vm1629_vm12, %v3130_v53, %v8964_v25 }
 0x684   : > { %3554 = vst.msk [vmem:[%s7586_s25 + $0x18] sm:$0xff] %vm1431_vm6, %v3522_v36  ;;  %v3483_v57 = vpop.f32.mrf.mxu2 }
 0x685   : > { %v3484_v21 = vadd.f32 %v7567_v42, %v3483_v57 }
 0x687   : > { %v3539_v41 = vmax.f32 %v3484_v21, 0.0  ;;  %v2869_v11 = vpop.permute.xlu0 %2868 }
 0x688   : > { %v2773_v12 = vpop.permute.xlu1 %2772  ;;  %v3788_v39 = vpop.permute.xlu2 %3787 }
 0x689   : > { %3571 = vst.msk [vmem:[%s7586_s25 + $0xa0] sm:$0xff] %vm1431_vm6, %v3539_v41  ;;  %v3210_v6 = vsel %vm3197_vm14, %v7010_v1, %v2773_v12  ;;  %v3097_v1 = vsel %vm1497_vm7, %v3065_v51, %v8958_v59  ;;  %v3789_v35 = vunpack.i.l.bf16 %v3788_v39 }
 0x68a   : > { %v3243_v40 = vsel %vm3230_vm15, %v3210_v6, %v2869_v11  ;;  %v3129_v43 = vsel %vm1563_vm8, %v3097_v1, %v8959_v63  ;;  %v3790_v63 = vunpack.i.h.bf16 %v3788_v39 }
 0x68b   : > { %v3276_v17 = vsel %vm3263_vm0, %v3243_v40, %v2965_v58  ;;  %v3161_v47 = vsel %vm1629_vm12, %v3129_v43, %v8960_v62 }
 0x68c   : > { %3692 = vmatmul.msk.f32.gmra.mxu1 %vm3309_vm1, %v3276_v17  ;;  %v3194_v15 = vsel %vm3164_vm13, %v3161_v47, %v2711_v27  ;;  %v8965_v17 = vld [vmem:[#allocation111_spill] sm:$0xff] }
 0x68d   : > { %v3067_v34 = vsel %vm1431_vm6, %v8892_v55, %v8965_v17 }
 0x68e   : > { %v3099_v51 = vsel %vm1497_vm7, %v3067_v34, %v8966_v16 }
 0x68f   : > { %v3435_v52 = vpop.f32.mrf.mxu1  ;;  %v2903_v20 = vpop.permute.xlu0 %2902 }
 0x690   : > { %v3436_v8 = vadd.f32 %v7567_v42, %v3435_v52  ;;  %v2807_v44 = vpop.permute.xlu1 %2806  ;;  %v3001_v29 = vpop.permute.xlu2 %3000 }
 0x691   : > { %v3227_v50 = vsel %vm3197_vm14, %v3194_v15, %v2807_v44 }
 0x692   : > { %v3523_v14 = vmax.f32 %v3436_v8, 0.0  ;;  %v3260_v32 = vsel %vm3230_vm15, %v3227_v50, %v2903_v20 }
 0x694   : > { %3555 = vst.msk [vmem:[%s7586_s25 + $0x20] sm:$0xff] %vm1431_vm6, %v3523_v14  ;;  %v3486_v37 = vpop.f32.mrf.mxu2 }
 0x695   : > { %v3487_v60 = vadd.f32 %v7567_v42, %v3486_v37 }
 0x697   : > { %v3540_v28 = vmax.f32 %v3487_v60, 0.0  ;;  %v2713_v30 = vpop.permute.xlu0 %2712 }
 0x698   : > { %v2999_v13 = vpop.permute.xlu1 %2998  ;;  %v3195_v18 = vsel %vm3164_vm13, %v3162_v19, %v2713_v30  ;;  %v2873_v58 = vpop.permute.xlu2 %2872 }
 0x699   : > { %3572 = vst.msk [vmem:[%s7586_s25 + $0xa8] sm:$0xff] %vm1431_vm6, %v3540_v28  ;;  %v3293_v7 = vsel %vm3263_vm0, %v3260_v32, %v2999_v13  ;;  %v3228_v5 = vsel %vm3197_vm14, %v3195_v18, %v3789_v35 }
 0x69a   : > { %3709 = vmatmul.msk.f32.gmra.mxu2 %vm3309_vm1, %v3293_v7 }
 0x69f   : > { %v3438_v49 = vpop.f32.mrf.mxu1  ;;  %v2967_v2 = vpop.permute.xlu0 %2966 }
 0x6a0   : > { %v3439_v9 = vadd.f32 %v7567_v42, %v3438_v49  ;;  %v2871_v24 = vpop.permute.xlu1 %2870  ;;  %v3003_v43 = vpop.permute.xlu2 %3002 }
 0x6a1   : > { %v3244_v56 = vsel %vm3230_vm15, %v3211_v45, %v2871_v24 }
 0x6a2   : > { %v3524_v3 = vmax.f32 %v3439_v9, 0.0  ;;  %v3277_v27 = vsel %vm3263_vm0, %v3244_v56, %v2967_v2 }
 0x6a3   : > { %3693 = vmatmul.msk.f32.gmra.mxu1 %vm3309_vm1, %v3277_v27 }
 0x6a4   : > { %3556 = vst.msk [vmem:[%s7586_s25 + $0x28] sm:$0xff] %vm1431_vm6, %v3524_v3  ;;  %v3489_v33 = vpop.f32.mrf.mxu2 }
 0x6a5   : > { %v3490_v54 = vadd.f32 %v7567_v42, %v3489_v33 }
 0x6a7   : > { %v3541_v31 = vmax.f32 %v3490_v54, 0.0  ;;  %v2777_v23 = vpop.permute.xlu0 %2776 }
 0x6a8   : > { %v2905_v48 = vpop.permute.xlu1 %2904  ;;  %v3212_v21 = vsel %vm3197_vm14, %v7128_v22, %v2777_v23  ;;  %v8967_v22 = vld [vmem:[#allocation36_spill] sm:$0xff]  ;;  %v2971_v13 = vpop.permute.xlu2 %2970 }
 0x6a9   : > { %3573 = vst.msk [vmem:[%s7586_s25 + $0xb0] sm:$0xff] %vm1431_vm6, %v3541_v31  ;;  %v3261_v36 = vsel %vm3230_vm15, %v3228_v5, %v2905_v48  ;;  %v3245_v40 = vsel %vm3230_vm15, %v3212_v21, %v2873_v58  ;;  %v3131_v44 = vsel %vm1563_vm8, %v3099_v51, %v8967_v22 }
 0x6aa   : > { %v3294_v57 = vsel %vm3263_vm0, %v3261_v36, %v3001_v29  ;;  %v3163_v20 = vsel %vm1629_vm12, %v3131_v44, %v6991_v10 }
 0x6ab   : > { %3710 = vmatmul.msk.f32.gmra.mxu2 %vm3309_vm1, %v3294_v57 }
 0x6af   : > { %v3441_v41 = vpop.f32.mrf.mxu1  ;;  %v2969_v6 = vpop.permute.xlu0 %2968 }
 0x6b0   : > { %v3442_v12 = vadd.f32 %v7567_v42, %v3441_v41  ;;  %v2715_v11 = vpop.permute.xlu1 %2714  ;;  %v3278_v52 = vsel %vm3263_vm0, %v3245_v40, %v2969_v6 }
 0x6b1   : > { %3694 = vmatmul.msk.f32.gmra.mxu1 %vm3309_vm1, %v3278_v52  ;;  %v3196_v55 = vsel %vm3164_vm13, %v3163_v20, %v2715_v11 }
 0x6b2   : > { %v3525_v8 = vmax.f32 %v3442_v12, 0.0  ;;  %v3229_v47 = vsel %vm3197_vm14, %v3196_v55, %v3790_v63 }
 0x6b4   : > { %3557 = vst.msk [vmem:[%s7586_s25 + $0x30] sm:$0xff] %vm1431_vm6, %v3525_v8  ;;  %v3492_v59 = vpop.f32.mrf.mxu2 }
 0x6b5   : > { %v3493_v1 = vadd.f32 %v7567_v42, %v3492_v59 }
 0x6b7   : > { %v3542_v14 = vmax.f32 %v3493_v1, 0.0  ;;  %v2779_v37 = vpop.permute.xlu0 %2778 }
 0x6b8   : > { %v2907_v62 = vpop.permute.xlu1 %2906  ;;  %v3213_v60 = vsel %vm3197_vm14, %v7031_v26, %v2779_v37 }
 0x6b9   : > { %3574 = vst.msk [vmem:[%s7586_s25 + $0xb8] sm:$0xff] %vm1431_vm6, %v3542_v14  ;;  %v3262_v15 = vsel %vm3230_vm15, %v3229_v47, %v2907_v62 }
 0x6ba   : > { %v3295_v10 = vsel %vm3263_vm0, %v3262_v15, %v3003_v43 }
 0x6bb   : > { %3711 = vmatmul.msk.f32.gmra.mxu2 %vm3309_vm1, %v3295_v10 }
 0x6bf   : > { %v3444_v50 = vpop.f32.mrf.mxu1 }
 0x6c0   : > { %v3445_v28 = vadd.f32 %v7567_v42, %v3444_v50  ;;  %v2875_v32 = vpop.permute.xlu1 %2874 }
 0x6c1   : > { %v3246_v30 = vsel %vm3230_vm15, %v3213_v60, %v2875_v32 }
 0x6c2   : > { %v3526_v39 = vmax.f32 %v3445_v28, 0.0  ;;  %v3279_v7 = vsel %vm3263_vm0, %v3246_v30, %v2971_v13 }
 0x6c3   : > { %3695 = vmatmul.msk.f32.gmra.mxu1 %vm3309_vm1, %v3279_v7 }
 0x6c4   : > { %3558 = vst.msk [vmem:[%s7586_s25 + $0x38] sm:$0xff] %vm1431_vm6, %v3526_v39  ;;  %v3495_v49 = vpop.f32.mrf.mxu2 }
 0x6c5   : > { %v3496_v45 = vadd.f32 %v7567_v42, %v3495_v49 }
 0x6c7   : > { %v3543_v26 = vmax.f32 %v3496_v45, 0.0 }
 0x6c9   : > { %3575 = vst.msk [vmem:[%s7586_s25 + $0xc0] sm:$0xff] %vm1431_vm6, %v3543_v26 }
 0x6cf   : > { %v3447_v9 = vpop.f32.mrf.mxu1 }
 0x6d0   : > { %v3448_v24 = vadd.f32 %v7567_v42, %v3447_v9 }
 0x6d2   : > { %v3527_v2 = vmax.f32 %v3448_v24, 0.0 }
 0x6d4   : > { %3559 = vst.msk [vmem:[%s7586_s25 + $0x40] sm:$0xff] %vm1431_vm6, %v3527_v2  ;;  %v3498_v46 = vpop.f32.mrf.mxu2 }
 0x6d5   : > { %v3499_v0 = vadd.f32 %v7567_v42, %v3498_v46 }
 0x6d7   : > { %v3544_v56 = vmax.f32 %v3499_v0, 0.0 }
 0x6d9   : > { %3576 = vst.msk [vmem:[%s7586_s25 + $0xc8] sm:$0xff] %vm1431_vm6, %v3544_v56 }
 0x6df   : > { %v3450_v4 = vpop.f32.mrf.mxu1 }
 0x6e0   : > { %v3451_v38 = vadd.f32 %v7567_v42, %v3450_v4 }
 0x6e2   : > { %v3528_v3 = vmax.f32 %v3451_v38, 0.0 }
 0x6e4   : > { %3560 = vst.msk [vmem:[%s7586_s25 + $0x48] sm:$0xff] %vm1431_vm6, %v3528_v3  ;;  %v3501_v27 = vpop.f32.mrf.mxu2 }
 0x6e5   : > { %v3502_v61 = vadd.f32 %v7567_v42, %v3501_v27 }
 0x6e7   : > { %v3545_v53 = vmax.f32 %v3502_v61, 0.0 }
 0x6e9   : > { %3577 = vst.msk [vmem:[%s7586_s25 + $0xd0] sm:$0xff] %vm1431_vm6, %v3545_v53 }
 0x6ef   : > { %v3453_v29 = vpop.f32.mrf.mxu1 }
 0x6f0   : > { %v3454_v25 = vadd.f32 %v7567_v42, %v3453_v29 }
 0x6f2   : > { %v3529_v19 = vmax.f32 %v3454_v25, 0.0 }
 0x6f4   : > { %3561 = vst.msk [vmem:[%s7586_s25 + $0x50] sm:$0xff] %vm1431_vm6, %v3529_v19  ;;  %v3504_v35 = vpop.f32.mrf.mxu2 }
 0x6f5   : > { %v3505_v33 = vadd.f32 %v7567_v42, %v3504_v35 }
 0x6f7   : > { %v3546_v18 = vmax.f32 %v3505_v33, 0.0 }
 0x6f9   : > { %3578 = vst.msk [vmem:[%s7586_s25 + $0xd8] sm:$0xff] %vm1431_vm6, %v3546_v18 }
 0x6ff   : > { %v3456_v54 = vpop.f32.mrf.mxu1 }
 0x700   : > { %v3457_v31 = vadd.f32 %v7567_v42, %v3456_v54 }
 0x702   : > { %v3530_v48 = vmax.f32 %v3457_v31, 0.0 }
 0x704   : > { %3562 = vst.msk [vmem:[%s7586_s25 + $0x58] sm:$0xff] %vm1431_vm6, %v3530_v48  ;;  %v3507_v5 = vpop.f32.mrf.mxu2 }
 0x705   : > { %v3508_v23 = vadd.f32 %v7567_v42, %v3507_v5 }
 0x707   : > { %v3547_v36 = vmax.f32 %v3508_v23, 0.0 }
 0x709   : > { %v3459_v57 = vpop.f32.mrf.mxu1  ;;  %3579 = vst.msk [vmem:[%s7586_s25 + $0xe0] sm:$0xff] %vm1431_vm6, %v3547_v36 }
 0x70a   : > { %v3460_v58 = vadd.f32 %v7567_v42, %v3459_v57 }
 0x70c   : > { %v3531_v21 = vmax.f32 %v3460_v58, 0.0 }
 0x70e   : > { %3563 = vst.msk [vmem:[%s7586_s25 + $0x60] sm:$0xff] %vm1431_vm6, %v3531_v21 }
 0x71d   : > { %v3510_v41 = vpop.f32.mrf.mxu2 }
 0x71e   : > { %v3511_v12 = vadd.f32 %v7567_v42, %v3510_v41 }
 0x720   : > { %v3548_v11 = vmax.f32 %v3511_v12, 0.0  ;;  %v3462_v6 = vpop.f32.mrf.mxu1 }
 0x721   : > { %v3463_v40 = vadd.f32 %v7567_v42, %v3462_v6 }
 0x722   : > { %3580 = vst.msk [vmem:[%s7586_s25 + $0xe8] sm:$0xff] %vm1431_vm6, %v3548_v11 }
 0x723   : > { %v3532_v17 = vmax.f32 %v3463_v40, 0.0 }
 0x725   : > { %3564 = vst.msk [vmem:[%s7586_s25 + $0x68] sm:$0xff] %vm1431_vm6, %v3532_v17 }
 0x72e   : > { %v3513_v34 = vpop.f32.mrf.mxu2  ;;  %v3465_v16 = vpop.f32.mrf.mxu1 }
 0x72f   : > { %v3514_v52 = vadd.f32 %v7567_v42, %v3513_v34  ;;  %v3466_v51 = vadd.f32 %v7567_v42, %v3465_v16 }
 0x731   : > { %v3549_v8 = vmax.f32 %v3514_v52, 0.0  ;;  %v3533_v22 = vmax.f32 %v3466_v51, 0.0 }
 0x733   : > { %3581 = vst.msk [vmem:[%s7586_s25 + $0xf0] sm:$0xff] %vm1431_vm6, %v3549_v8 }
 0x734   : > { %3565 = vst.msk [vmem:[%s7586_s25 + $0x70] sm:$0xff] %vm1431_vm6, %v3533_v22 }
 0x73e   : > { %v3516_v44 = vpop.f32.mrf.mxu2 }
 0x73f   : > { %v3517_v20 = vadd.f32 %v7567_v42, %v3516_v44 }
 0x740   : > { %v3468_v59 = vpop.f32.mrf.mxu1 }
 0x741   : > { %v3550_v55 = vmax.f32 %v3517_v20, 0.0  ;;  %v3469_v1 = vadd.f32 %v7567_v42, %v3468_v59 }
 0x743   : > { %3582 = vst.msk [vmem:[%s7586_s25 + $0xf8] sm:$0xff] %vm1431_vm6, %v3550_v55  ;;  %v3534_v63 = vmax.f32 %v3469_v1, 0.0 }
 0x745   : > { %3566 = vst.msk [vmem:[%s7586_s25 + $0x78] sm:$0xff] %vm1431_vm6, %v3534_v63 }
 0x746 PF: > { %s15_s18 = sadd.s32 1, %s3799_s18  }
 0x747   : > { %p12_p4 = scmp.ge.s32.totalorder %s15_s18, 4  }
 0x749   :  { %14 = sbr.rel (!%p12_p4) target bundleno = 1 (0x1), region = 70 }

</bundles_post_ra>
